<compile_context>
chip_gen: v6e
topology: v6e:2x2x1
jax: 0.10.0
libtpu: 0.0.40
codegen_flags: <defaults>
</compile_context>

<pallas_src>
import functools
import math

import numpy as np
import jax
import jax.numpy as jnp
from jax import lax
from jax.experimental import pallas as pl
from jax.experimental.pallas import tpu as pltpu

# ----------------------------- model config ---------------------------------
B, T = 1, 2
C_IN = 4
IMG_H, IMG_W = 8, 8
PATCH = 2
HIDDEN = 64
DEPTH = 2
HEADS = 4
MLP_RATIO = 4.0
FREQ_EMB = 256
HEAD_DIM = HIDDEN // HEADS
MLP_HIDDEN = int(HIDDEN * MLP_RATIO)
LN_EPS = 1e-6


def _compiler_params():
    try:
        return pltpu.CompilerParams(dimension_semantics=("arbitrary",))
    except Exception:   # older jax fallback: just skip the hint
        return None


# ----------------------------- the fused DiT kernel -------------------------
def _dit_kernel(xi_ref, pw_ref, pb_ref, tf_ref, tw0_ref, tb0_ref, tw2_ref, tb2_ref,
                aw_ref, ab_ref, wqkvr_ref, wo_ref, bo_ref, w1_ref, b1_ref, w2_ref, b2_ref,
                cs_ref, ss_ref, ct_ref, st_ref, smask_ref, tmask_ref,
                faw_ref, fab_ref, flw_ref, flb_ref,
                out_ref, tok_scr, c_scr,
                *, n_frames, hw, heads, head_dim, eps, depth):
    """One grid step == one DiT block.  Tokens live in tok_scr (VMEM) across steps."""
    step = pl.program_id(0)
    dm = heads * head_dim
    tok = n_frames * hw
    scale = 1.0 / math.sqrt(head_dim)

    # ---- first grid step only: patch embed + timestep embedder ----
    @pl.when(step == 0)
    def _init():
        emb = jnp.dot(xi_ref[...].astype(jnp.bfloat16), pw_ref[...],
                      preferred_element_type=jnp.float32) + pb_ref[...]
        tok_scr[...] = emb
        h0 = jnp.dot(tf_ref[...].astype(jnp.bfloat16), tw0_ref[...],
                     preferred_element_type=jnp.float32) + tb0_ref[...]
        h0 = jax.nn.silu(h0)
        cc = jnp.dot(h0.astype(jnp.bfloat16), tw2_ref[...],
                     preferred_element_type=jnp.float32) + tb2_ref[...]
        c_scr[...] = jax.nn.silu(cc)        # SiLU folded in: this feeds every adaLN matmul

    c_silu = c_scr[...]                                              # (N, D) f32
    # all 12 adaLN modulations (spatial + temporal) of this block in ONE matmul
    mods = jnp.dot(c_silu.astype(jnp.bfloat16), aw_ref[0],
                   preferred_element_type=jnp.float32) + ab_ref[0]   # (N, 12D)

    def mc(i):                                                       # (N, D) chunk
        return mods[:, i * dm:(i + 1) * dm]

    def ln_mod(x3, sh, sc):
        mu = jnp.mean(x3, axis=-1, keepdims=True)
        var = jnp.mean(jnp.square(x3 - mu), axis=-1, keepdims=True)
        xn = (x3 - mu) * lax.rsqrt(var + eps)
        return xn * (1.0 + sc[:, None, :]) + sh[:, None, :]

    def attn_chain(x3, sh, sc, gt, which, cos_b, sin_b, add_mask):
        """LN+mod -> packed [Q|K|V|Qr|Kr] matmul -> rotary (VPU) -> masked softmax attn
           -> single out-proj matmul -> gate + residual.  Operates on the dense token slab."""
        xn3 = ln_mod(x3, sh, sc)
        xb = xn3.reshape(tok, dm).astype(jnp.bfloat16)
        qkvr = jnp.dot(xb, wqkvr_ref[0, which],
                       preferred_element_type=jnp.float32).reshape(n_frames, hw, 5 * dm)
        q = qkvr[..., 0:dm] * cos_b + qkvr[..., 3 * dm:4 * dm] * sin_b
        k = qkvr[..., dm:2 * dm] * cos_b + qkvr[..., 4 * dm:5 * dm] * sin_b
        qf = q.reshape(tok, dm)
        kf = k.reshape(tok, dm)
        vf = qkvr[..., 2 * dm:3 * dm].reshape(tok, dm)
        outs = []
        for h in range(heads):                                       # small static loop
            sl = slice(h * head_dim, (h + 1) * head_dim)
            qh = qf[:, sl].astype(jnp.bfloat16)
            kh = kf[:, sl].astype(jnp.bfloat16)
            vh = vf[:, sl].astype(jnp.bfloat16)
            s = jnp.einsum('qd,kd->qk', qh, kh,
                           preferred_element_type=jnp.float32) * scale + add_mask
            m = jnp.max(s, axis=-1, keepdims=True)
            p = jnp.exp(s - m)
            l = jnp.sum(p, axis=-1, keepdims=True)
            p = p * pl.reciprocal(l, approx=True)
            outs.append(jnp.dot(p.astype(jnp.bfloat16), vh,
                                preferred_element_type=jnp.float32))
        o = jnp.concatenate(outs, axis=-1).astype(jnp.bfloat16)      # (TOK, D)
        y = jnp.dot(o, wo_ref[0, which],
                    preferred_element_type=jnp.float32) + bo_ref[0, which]
        return x3 + gt[:, None, :] * y.reshape(n_frames, hw, dm)

    def mlp_chain(x3, sh, sc, gt, which):
        xn3 = ln_mod(x3, sh, sc)
        xb = xn3.reshape(tok, dm).astype(jnp.bfloat16)
        h1 = jnp.dot(xb, w1_ref[0, which],
                     preferred_element_type=jnp.float32) + b1_ref[0, which]
        h1 = jax.nn.gelu(h1, approximate=True)                       # GELU(approximate='tanh')
        h2 = jnp.dot(h1.astype(jnp.bfloat16), w2_ref[0, which],
                     preferred_element_type=jnp.float32) + b2_ref[0, which]
        return x3 + gt[:, None, :] * h2.reshape(n_frames, hw, dm)

    x3 = tok_scr[...].reshape(n_frames, hw, dm)
    cos_sp = cs_ref[...][None]        # (1, HW, D) : per spatial position, tiled over heads
    sin_sp = ss_ref[...][None]
    cos_tm = ct_ref[...]              # (N, 1, D)  : per frame, tiled over heads
    sin_tm = st_ref[...]

    # spatial attention (per-frame full attention via block-diagonal mask) + MLP
    x3 = attn_chain(x3, mc(0), mc(1), mc(2), 0, cos_sp, sin_sp, smask_ref[...])
    x3 = mlp_chain(x3, mc(3), mc(4), mc(5), 0)
    # temporal attention (causal over frames, per spatial position via mask) + MLP
    x3 = attn_chain(x3, mc(6), mc(7), mc(8), 1, cos_tm, sin_tm, tmask_ref[...])
    x3 = mlp_chain(x3, mc(9), mc(10), mc(11), 1)

    tok_scr[...] = x3.reshape(tok, dm)

    # ---- last grid step only: final layer (LN + modulate + projection) ----
    @pl.when(step == depth - 1)
    def _final():
        fm = jnp.dot(c_silu.astype(jnp.bfloat16), faw_ref[...],
                     preferred_element_type=jnp.float32) + fab_ref[...]   # (N, 2D)
        xn3 = ln_mod(x3, fm[:, 0:dm], fm[:, dm:2 * dm])
        xf = xn3.reshape(tok, dm).astype(jnp.bfloat16)
        out_ref[...] = jnp.dot(xf, flw_ref[...],
                               preferred_element_type=jnp.float32) + flb_ref[...]


def _dit_core(pk, xi, tfreq, *, n_frames, hw):
    """Single pallas_call for the whole transformer stack (grid == depth)."""
    TOK, _ = xi.shape
    D = HIDDEN
    PC = pk['f_lin_w'].shape[1]
    depth = pk['ada_w'].shape[0]

    kern = functools.partial(_dit_kernel, n_frames=n_frames, hw=hw, heads=HEADS,
                             head_dim=HEAD_DIM, eps=LN_EPS, depth=depth)

    def full(a):
        nd = a.ndim
        return pl.BlockSpec(a.shape, lambda *_: (0,) * nd)

    def per_depth(a):
        nd = a.ndim
        return pl.BlockSpec((1,) + a.shape[1:], lambda d: (d,) + (0,) * (nd - 1))

    in_specs = [
        full(xi), full(pk['patch_w']), full(pk['patch_b']), full(tfreq),
        full(pk['t_w0']), full(pk['t_b0']), full(pk['t_w2']), full(pk['t_b2']),
        per_depth(pk['ada_w']), per_depth(pk['ada_b']),
        per_depth(pk['wqkvr']), per_depth(pk['wo']), per_depth(pk['bo']),
        per_depth(pk['w1']), per_depth(pk['b1']), per_depth(pk['w2']), per_depth(pk['b2']),
        full(pk['cos_sp']), full(pk['sin_sp']), full(pk['cos_tm']), full(pk['sin_tm']),
        full(pk['s_mask']), full(pk['t_mask']),
        full(pk['f_ada_w']), full(pk['f_ada_b']), full(pk['f_lin_w']), full(pk['f_lin_b']),
    ]
    args = [xi, pk['patch_w'], pk['patch_b'], tfreq,
            pk['t_w0'], pk['t_b0'], pk['t_w2'], pk['t_b2'],
            pk['ada_w'], pk['ada_b'],
            pk['wqkvr'], pk['wo'], pk['bo'], pk['w1'], pk['b1'], pk['w2'], pk['b2'],
            pk['cos_sp'], pk['sin_sp'], pk['cos_tm'], pk['sin_tm'],
            pk['s_mask'], pk['t_mask'],
            pk['f_ada_w'], pk['f_ada_b'], pk['f_lin_w'], pk['f_lin_b']]

    return pl.pallas_call(
        kern,
        out_shape=jax.ShapeDtypeStruct((TOK, PC), jnp.float32),
        grid=(depth,),
        in_specs=in_specs,
        out_specs=pl.BlockSpec((TOK, PC), lambda d: (0, 0)),
        scratch_shapes=[pltpu.VMEM((TOK, D), jnp.float32),      # resident token slab
                        pltpu.VMEM((n_frames, D), jnp.float32)],  # silu(c) for adaLN
        compiler_params=_compiler_params(),
    )(*args)


# ----------------------------- rotary / embeddings ---------------------------
def _rot_half_matrix(d):
    """(d, d) matrix R with (x @ R) == interleaved rotate_half(x): [-x1, x0, -x3, x2, ...]."""
    m = np.zeros((d, d), np.float32)
    for i in range(0, d, 2):
        m[i + 1, i] = -1.0
        m[i, i + 1] = 1.0
    return jnp.asarray(m)


def spatial_axial_freqs(h, w, head_dim, max_freq=256.0):
    # RotaryEmbedding(dim=head_dim//2, freqs_for='pixel', max_freq=256).get_axial_freqs(h, w)
    dim_r = head_dim // 2
    n_f = dim_r // 2
    base = jnp.linspace(1.0, max_freq / 2.0, n_f, dtype=jnp.float32) * jnp.pi
    pos_h = jnp.linspace(-1.0, 1.0, h, dtype=jnp.float32)
    pos_w = jnp.linspace(-1.0, 1.0, w, dtype=jnp.float32)
    fh = jnp.repeat(pos_h[:, None] * base[None, :], 2, axis=-1)      # (h, dim_r)
    fw = jnp.repeat(pos_w[:, None] * base[None, :], 2, axis=-1)      # (w, dim_r)
    fh = jnp.broadcast_to(fh[:, None, :], (h, w, dim_r))
    fw = jnp.broadcast_to(fw[None, :, :], (h, w, dim_r))
    return jnp.concatenate([fh, fw], axis=-1).reshape(h * w, head_dim)


def temporal_freqs(t_len, head_dim, theta=10000.0):
    inv = 1.0 / (theta ** (jnp.arange(0, head_dim, 2, dtype=jnp.float32) / head_dim))
    pos = jnp.arange(t_len, dtype=jnp.float32)
    return jnp.repeat(pos[:, None] * inv[None, :], 2, axis=-1)       # (T, head_dim)


def timestep_embedding(t, dim, max_period=10000.0):
    half = dim // 2
    freqs = jnp.exp(-math.log(max_period) * jnp.arange(half, dtype=jnp.float32) / half)
    args = t.astype(jnp.float32)[:, None] * freqs[None, :]
    return jnp.concatenate([jnp.cos(args), jnp.sin(args)], axis=-1)


def _attn_masks(bn, t_len, hw):
    """Additive masks over the flat (TOK, TOK) token grid (frame-major rows b, t, s)."""
    tok = bn * t_len * hw
    idx = np.arange(tok)
    frame = idx // hw                       # n = b*T + t
    bb = frame // t_len
    tt = frame % t_len
    ss = idx % hw
    spatial_ok = frame[:, None] == frame[None, :]                       # same frame
    temporal_ok = ((bb[:, None] == bb[None, :]) &
                   (ss[:, None] == ss[None, :]) &
                   (tt[None, :] <= tt[:, None]))                        # same (b, s), causal
    neg = np.float32(-1e9)
    s_mask = np.where(spatial_ok, np.float32(0.0), neg).astype(np.float32)
    t_mask = np.where(temporal_ok, np.float32(0.0), neg).astype(np.float32)
    return jnp.asarray(s_mask), jnp.asarray(t_mask)


# ----------------------------- one-time weight packing ------------------------
def pack_params(params):
    """Hoisted out of the forward: bf16 casts, QKV+rotate-half packing, rotary tables,
    attention masks and depth-stacking are all done exactly once."""
    D, MH = HIDDEN, MLP_HIDDEN
    rot = _rot_half_matrix(D)               # pair-swap applied per head (heads share layout)

    def attn_pack(p):
        qkv = p['qkv_w']
        wq, wk, wv = qkv[:, :D], qkv[:, D:2 * D], qkv[:, 2 * D:]
        wqkvr = jnp.concatenate([wq, wk, wv, wq @ rot, wk @ rot], axis=1)   # (D, 5D)
        return (wqkvr.astype(jnp.bfloat16),
                p['out_w'].astype(jnp.bfloat16),
                p['out_b'].reshape(1, D).astype(jnp.float32))

    def mlp_pack(p):
        return (p['fc1_w'].astype(jnp.bfloat16),
                p['fc1_b'].reshape(1, MH).astype(jnp.float32),
                p['fc2_w'].astype(jnp.bfloat16),
                p['fc2_b'].reshape(1, D).astype(jnp.float32))

    wqkvr, wo, bo, w1, b1, w2, b2, ada_w, ada_b = [], [], [], [], [], [], [], [], []
    for bp in params['blocks']:
        sq, so, sbo = attn_pack(bp['s_attn'])
        tq, to, tbo = attn_pack(bp['t_attn'])
        wqkvr.append(jnp.stack([sq, tq]))
        wo.append(jnp.stack([so, to]))
        bo.append(jnp.stack([sbo, tbo]))
        s1, sb1, s2, sb2 = mlp_pack(bp['s_mlp'])
        t1, tb1, t2, tb2 = mlp_pack(bp['t_mlp'])
        w1.append(jnp.stack([s1, t1]))
        b1.append(jnp.stack([sb1, tb1]))
        w2.append(jnp.stack([s2, t2]))
        b2.append(jnp.stack([sb2, tb2]))
        ada_w.append(jnp.concatenate([bp['s_ada_w'], bp['t_ada_w']], axis=1).astype(jnp.bfloat16))
        ada_b.append(jnp.concatenate([bp['s_ada_b'], bp['t_ada_b']], axis=0)
                     .reshape(1, 12 * D).astype(jnp.float32))

    h, w = IMG_H // PATCH, IMG_W // PATCH
    sp = spatial_axial_freqs(h, w, HEAD_DIM)                             # (HW, hd)
    cos_sp = jnp.tile(jnp.cos(sp), (1, HEADS)).astype(jnp.float32)       # (HW, D)
    sin_sp = jnp.tile(jnp.sin(sp), (1, HEADS)).astype(jnp.float32)
    tfq = temporal_freqs(T, HEAD_DIM)                                    # (T, hd)
    cos_tm = jnp.tile(jnp.tile(jnp.cos(tfq), (1, HEADS)), (B, 1)).reshape(B * T, 1, D)
    sin_tm = jnp.tile(jnp.tile(jnp.sin(tfq), (1, HEADS)), (B, 1)).reshape(B * T, 1, D)
    s_mask, t_mask = _attn_masks(B, T, h * w)

    fin = params['final']
    return {
        'patch_w': params['patch_w'].reshape(D, -1).T.astype(jnp.bfloat16),   # (C*p*p, D)
        'patch_b': params['patch_b'].reshape(1, D).astype(jnp.float32),
        't_w0': params['t_mlp0_w'].astype(jnp.bfloat16),
        't_b0': params['t_mlp0_b'].reshape(1, D).astype(jnp.float32),
        't_w2': params['t_mlp2_w'].astype(jnp.bfloat16),
        't_b2': params['t_mlp2_b'].reshape(1, D).astype(jnp.float32),
        'ada_w': jnp.stack(ada_w), 'ada_b': jnp.stack(ada_b),
        'wqkvr': jnp.stack(wqkvr), 'wo': jnp.stack(wo), 'bo': jnp.stack(bo),
        'w1': jnp.stack(w1), 'b1': jnp.stack(b1), 'w2': jnp.stack(w2), 'b2': jnp.stack(b2),
        'cos_sp': cos_sp, 'sin_sp': sin_sp,
        'cos_tm': cos_tm.astype(jnp.float32), 'sin_tm': sin_tm.astype(jnp.float32),
        's_mask': s_mask, 't_mask': t_mask,
        'f_ada_w': fin['ada_w'].astype(jnp.bfloat16),
        'f_ada_b': fin['ada_b'].reshape(1, 2 * D).astype(jnp.float32),
        'f_lin_w': fin['lin_w'].astype(jnp.bfloat16),
        'f_lin_b': fin['lin_b'].reshape(1, -1).astype(jnp.float32),
    }


# ----------------------------- forward ----------------------------------------
def dit_forward(packed, x, t):
    """x: (B, T, C, H, W), t: (B, T) -> (B, T, C, H, W)."""
    Bv, Tv, C, H, W = x.shape
    p = PATCH
    h, w = H // p, W // p
    N = Bv * Tv
    TOK = N * h * w

    # patchify (Conv2d k=s=p becomes a matmul over (c, ph, pw)-flattened patches in-kernel)
    xi = x.reshape(N, C, h, p, w, p).transpose(0, 2, 4, 1, 3, 5).reshape(TOK, C * p * p)
    # sinusoidal timestep features (tiny, input-dependent; left to XLA)
    tfreq = timestep_embedding(t.reshape(-1), FREQ_EMB)

    out = _dit_core(packed, xi, tfreq, n_frames=N, hw=h * w)         # (TOK, p*p*C)

    # unpatchify: n h w p q c -> n c h p w q
    out = out.reshape(N, h, w, p, p, C).transpose(0, 5, 1, 3, 2, 4)
    out = out.reshape(N, C, h * p, w * p).reshape(Bv, Tv, C, H, W)
    return out


# ----------------------------- deterministic init ----------------------------
def init_params(key):
    keys = iter(jax.random.split(key, 512))

    def nxt():
        return next(keys)

    def lin(fan_in, fan_out):
        lim = math.sqrt(6.0 / (fan_in + fan_out))
        return jax.random.uniform(nxt(), (fan_in, fan_out), jnp.float32, -lim, lim)

    def zeros(n):
        return jnp.zeros((n,), jnp.float32)

    D, C, p = HIDDEN, C_IN, PATCH

    def attn_params():
        return {'qkv_w': lin(D, 3 * D), 'out_w': lin(D, D), 'out_b': zeros(D)}

    def mlp_params():
        return {'fc1_w': lin(D, MLP_HIDDEN), 'fc1_b': zeros(MLP_HIDDEN),
                'fc2_w': lin(MLP_HIDDEN, D), 'fc2_b': zeros(D)}

    def block_params():
        return {
            's_ada_w': 0.02 * jax.random.normal(nxt(), (D, 6 * D), jnp.float32),
            's_ada_b': zeros(6 * D),
            's_attn': attn_params(), 's_mlp': mlp_params(),
            't_ada_w': 0.02 * jax.random.normal(nxt(), (D, 6 * D), jnp.float32),
            't_ada_b': zeros(6 * D),
            't_attn': attn_params(), 't_mlp': mlp_params(),
        }

    return {
        'patch_w': lin(C * p * p, D).T.reshape(D, C, p, p),
        'patch_b': zeros(D),
        't_mlp0_w': 0.02 * jax.random.normal(nxt(), (FREQ_EMB, D), jnp.float32),
        't_mlp0_b': zeros(D),
        't_mlp2_w': 0.02 * jax.random.normal(nxt(), (D, D), jnp.float32),
        't_mlp2_b': zeros(D),
        'blocks': [block_params() for _ in range(DEPTH)],
        'final': {
            'ada_w': 0.02 * jax.random.normal(nxt(), (D, 2 * D), jnp.float32),
            'ada_b': zeros(2 * D),
            'lin_w': 0.02 * jax.random.normal(nxt(), (D, p * p * C), jnp.float32),
            'lin_b': zeros(p * p * C),
        },
    }


# ----------------------------- main -------------------------------------------
if __name__ == "__main__":
    root = jax.random.PRNGKey(0)
    k_param, k_x, k_t = jax.random.split(root, 3)

    params = init_params(k_param)
    packed = pack_params(params)          # one-time packing, hoisted out of the forward

    x = jax.random.normal(k_x, (B, T, C_IN, IMG_H, IMG_W), jnp.float32)
    t = jax.random.randint(k_t, (B, T), 0, 1000).astype(jnp.float32)

    fwd = jax.jit(dit_forward)
    out = jax.block_until_ready(fwd(packed, x, t))

    assert out.shape == (B, T, C_IN, IMG_H, IMG_W), out.shape
    assert bool(jnp.all(jnp.isfinite(out)))
    print("KERNEL_OK")
</pallas_src>

<mosaic_0001>
module attributes {stable_mosaic.version = 11 : i64} {
  func.func @_dit_kernel(%arg0: i32, %arg1: memref<32x16xf32, #tpu.memory_space<vmem>>, %arg2: memref<16x64xbf16, #tpu.memory_space<vmem>>, %arg3: memref<1x64xf32, #tpu.memory_space<vmem>>, %arg4: memref<2x256xf32, #tpu.memory_space<vmem>>, %arg5: memref<256x64xbf16, #tpu.memory_space<vmem>>, %arg6: memref<1x64xf32, #tpu.memory_space<vmem>>, %arg7: memref<64x64xbf16, #tpu.memory_space<vmem>>, %arg8: memref<1x64xf32, #tpu.memory_space<vmem>>, %arg9: memref<1x64x768xbf16, #tpu.memory_space<vmem>>, %arg10: memref<1x1x768xf32, #tpu.memory_space<vmem>>, %arg11: memref<1x2x64x320xbf16, #tpu.memory_space<vmem>>, %arg12: memref<1x2x64x64xbf16, #tpu.memory_space<vmem>>, %arg13: memref<1x2x1x64xf32, #tpu.memory_space<vmem>>, %arg14: memref<1x2x64x256xbf16, #tpu.memory_space<vmem>>, %arg15: memref<1x2x1x256xf32, #tpu.memory_space<vmem>>, %arg16: memref<1x2x256x64xbf16, #tpu.memory_space<vmem>>, %arg17: memref<1x2x1x64xf32, #tpu.memory_space<vmem>>, %arg18: memref<16x64xf32, #tpu.memory_space<vmem>>, %arg19: memref<16x64xf32, #tpu.memory_space<vmem>>, %arg20: memref<2x1x64xf32, #tpu.memory_space<vmem>>, %arg21: memref<2x1x64xf32, #tpu.memory_space<vmem>>, %arg22: memref<32x32xf32, #tpu.memory_space<vmem>>, %arg23: memref<32x32xf32, #tpu.memory_space<vmem>>, %arg24: memref<64x128xbf16, #tpu.memory_space<vmem>>, %arg25: memref<1x128xf32, #tpu.memory_space<vmem>>, %arg26: memref<64x16xbf16, #tpu.memory_space<vmem>>, %arg27: memref<1x16xf32, #tpu.memory_space<vmem>>, %arg28: memref<32x16xf32, #tpu.memory_space<vmem>>, %arg29: memref<32x64xf32, #tpu.memory_space<vmem>>, %arg30: memref<2x64xf32, #tpu.memory_space<vmem>>) attributes {dimension_semantics = [#tpu.dimension_semantics<arbitrary>], iteration_bounds = array<i64: 2>, scalar_prefetch = 0 : i64, scratch_operands = 2 : i64, tpu.core_type = #tpu.core_type<tc>, window_params = [{pipeline_mode = #tpu.pipeline_mode<synchronous>, transform_indices = @transform_0, window_bounds = array<i64: 32, 16>}, {pipeline_mode = #tpu.pipeline_mode<synchronous>, transform_indices = @transform_1, window_bounds = array<i64: 16, 64>}, {pipeline_mode = #tpu.pipeline_mode<synchronous>, transform_indices = @transform_2, window_bounds = array<i64: 1, 64>}, {pipeline_mode = #tpu.pipeline_mode<synchronous>, transform_indices = @transform_3, window_bounds = array<i64: 2, 256>}, {pipeline_mode = #tpu.pipeline_mode<synchronous>, transform_indices = @transform_4, window_bounds = array<i64: 256, 64>}, {pipeline_mode = #tpu.pipeline_mode<synchronous>, transform_indices = @transform_5, window_bounds = array<i64: 1, 64>}, {pipeline_mode = #tpu.pipeline_mode<synchronous>, transform_indices = @transform_6, window_bounds = array<i64: 64, 64>}, {pipeline_mode = #tpu.pipeline_mode<synchronous>, transform_indices = @transform_7, window_bounds = array<i64: 1, 64>}, {transform_indices = @transform_8, window_bounds = array<i64: 1, 64, 768>}, {transform_indices = @transform_9, window_bounds = array<i64: 1, 1, 768>}, {transform_indices = @transform_10, window_bounds = array<i64: 1, 2, 64, 320>}, {transform_indices = @transform_11, window_bounds = array<i64: 1, 2, 64, 64>}, {transform_indices = @transform_12, window_bounds = array<i64: 1, 2, 1, 64>}, {transform_indices = @transform_13, window_bounds = array<i64: 1, 2, 64, 256>}, {transform_indices = @transform_14, window_bounds = array<i64: 1, 2, 1, 256>}, {transform_indices = @transform_15, window_bounds = array<i64: 1, 2, 256, 64>}, {transform_indices = @transform_16, window_bounds = array<i64: 1, 2, 1, 64>}, {pipeline_mode = #tpu.pipeline_mode<synchronous>, transform_indices = @transform_17, window_bounds = array<i64: 16, 64>}, {pipeline_mode = #tpu.pipeline_mode<synchronous>, transform_indices = @transform_18, window_bounds = array<i64: 16, 64>}, {pipeline_mode = #tpu.pipeline_mode<synchronous>, transform_indices = @transform_19, window_bounds = array<i64: 2, 1, 64>}, {pipeline_mode = #tpu.pipeline_mode<synchronous>, transform_indices = @transform_20, window_bounds = array<i64: 2, 1, 64>}, {pipeline_mode = #tpu.pipeline_mode<synchronous>, transform_indices = @transform_21, window_bounds = array<i64: 32, 32>}, {pipeline_mode = #tpu.pipeline_mode<synchronous>, transform_indices = @transform_22, window_bounds = array<i64: 32, 32>}, {pipeline_mode = #tpu.pipeline_mode<synchronous>, transform_indices = @transform_23, window_bounds = array<i64: 64, 128>}, {pipeline_mode = #tpu.pipeline_mode<synchronous>, transform_indices = @transform_24, window_bounds = array<i64: 1, 128>}, {pipeline_mode = #tpu.pipeline_mode<synchronous>, transform_indices = @transform_25, window_bounds = array<i64: 64, 16>}, {pipeline_mode = #tpu.pipeline_mode<synchronous>, transform_indices = @transform_26, window_bounds = array<i64: 1, 16>}, {pipeline_mode = #tpu.pipeline_mode<synchronous>, transform_indices = @transform_27, window_bounds = array<i64: 32, 16>}]} {
    %c0_i32 = arith.constant 0 : i32
    %0 = arith.cmpi eq, %arg0, %c0_i32 : i32
    %1 = arith.extui %0 : i1 to i32
    %c0_i32_0 = arith.constant 0 : i32
    %2 = arith.cmpi ne, %1, %c0_i32_0 : i32
    scf.if %2 {
      %c0_162 = arith.constant 0 : index
      %c0_163 = arith.constant 0 : index
      %465 = vector.load %arg1[%c0_162, %c0_163] : memref<32x16xf32, #tpu.memory_space<vmem>>, vector<32x16xf32>
      %466 = arith.truncf %465 : vector<32x16xf32> to vector<32x16xbf16>
      %c0_164 = arith.constant 0 : index
      %c0_165 = arith.constant 0 : index
      %467 = vector.load %arg2[%c0_164, %c0_165] : memref<16x64xbf16, #tpu.memory_space<vmem>>, vector<16x64xbf16>
      %cst_166 = arith.constant dense<0.000000e+00> : vector<32x64xf32>
      %468 = tpu.matmul %466, %467, %cst_166 {dimension_numbers = #tpu.dot_dimension_numbers<[1], [0], [0], [1], [0, 0, 1, 1], [], []>} : vector<32x16xbf16>, vector<16x64xbf16>, vector<32x64xf32> -> vector<32x64xf32>
      %c0_167 = arith.constant 0 : index
      %c0_168 = arith.constant 0 : index
      %469 = vector.load %arg3[%c0_167, %c0_168] : memref<1x64xf32, #tpu.memory_space<vmem>>, vector<1x64xf32>
      %470 = vector.broadcast %469 : vector<1x64xf32> to vector<32x64xf32>
      %471 = arith.addf %468, %470 : vector<32x64xf32>
      %c0_169 = arith.constant 0 : index
      %c0_170 = arith.constant 0 : index
      %472 = vector.load %arg29[%c0_169, %c0_170] : memref<32x64xf32, #tpu.memory_space<vmem>>, vector<32x64xf32>
      tpu.vector_store %arg29[%c0_169, %c0_170], %471 {strides = array<i32>} : memref<32x64xf32, #tpu.memory_space<vmem>>, vector<32x64xf32>,
      %c0_171 = arith.constant 0 : index
      %c0_172 = arith.constant 0 : index
      %473 = vector.load %arg4[%c0_171, %c0_172] : memref<2x256xf32, #tpu.memory_space<vmem>>, vector<2x256xf32>
      %474 = arith.truncf %473 : vector<2x256xf32> to vector<2x256xbf16>
      %c0_173 = arith.constant 0 : index
      %c0_174 = arith.constant 0 : index
      %475 = vector.load %arg5[%c0_173, %c0_174] : memref<256x64xbf16, #tpu.memory_space<vmem>>, vector<256x64xbf16>
      %cst_175 = arith.constant dense<0.000000e+00> : vector<2x64xf32>
      %476 = tpu.matmul %474, %475, %cst_175 {dimension_numbers = #tpu.dot_dimension_numbers<[1], [0], [0], [1], [0, 0, 1, 1], [], []>} : vector<2x256xbf16>, vector<256x64xbf16>, vector<2x64xf32> -> vector<2x64xf32>
      %c0_176 = arith.constant 0 : index
      %c0_177 = arith.constant 0 : index
      %477 = vector.load %arg6[%c0_176, %c0_177] : memref<1x64xf32, #tpu.memory_space<vmem>>, vector<1x64xf32>
      %478 = vector.broadcast %477 : vector<1x64xf32> to vector<2x64xf32>
      %479 = arith.addf %476, %478 : vector<2x64xf32>
      %480 = arith.negf %479 : vector<2x64xf32>
      %481 = math.exp %480 : vector<2x64xf32>
      %cst_178 = arith.constant 1.000000e+00 : f32
      %482 = vector.broadcast %cst_178 : f32 to vector<2x64xf32>
      %483 = arith.addf %482, %481 : vector<2x64xf32>
      %484 = arith.divf %482, %483 : vector<2x64xf32>
      %485 = arith.mulf %479, %484 : vector<2x64xf32>
      %486 = arith.truncf %485 : vector<2x64xf32> to vector<2x64xbf16>
      %c0_179 = arith.constant 0 : index
      %c0_180 = arith.constant 0 : index
      %487 = vector.load %arg7[%c0_179, %c0_180] : memref<64x64xbf16, #tpu.memory_space<vmem>>, vector<64x64xbf16>
      %cst_181 = arith.constant dense<0.000000e+00> : vector<2x64xf32>
      %488 = tpu.matmul %486, %487, %cst_181 {dimension_numbers = #tpu.dot_dimension_numbers<[1], [0], [0], [1], [0, 0, 1, 1], [], []>} : vector<2x64xbf16>, vector<64x64xbf16>, vector<2x64xf32> -> vector<2x64xf32>
      %c0_182 = arith.constant 0 : index
      %c0_183 = arith.constant 0 : index
      %489 = vector.load %arg8[%c0_182, %c0_183] : memref<1x64xf32, #tpu.memory_space<vmem>>, vector<1x64xf32>
      %490 = vector.broadcast %489 : vector<1x64xf32> to vector<2x64xf32>
      %491 = arith.addf %488, %490 : vector<2x64xf32>
      %492 = arith.negf %491 : vector<2x64xf32>
      %493 = math.exp %492 : vector<2x64xf32>
      %cst_184 = arith.constant 1.000000e+00 : f32
      %494 = vector.broadcast %cst_184 : f32 to vector<2x64xf32>
      %495 = arith.addf %494, %493 : vector<2x64xf32>
      %496 = arith.divf %494, %495 : vector<2x64xf32>
      %497 = arith.mulf %491, %496 : vector<2x64xf32>
      %c0_185 = arith.constant 0 : index
      %c0_186 = arith.constant 0 : index
      %498 = vector.load %arg30[%c0_185, %c0_186] : memref<2x64xf32, #tpu.memory_space<vmem>>, vector<2x64xf32>
      tpu.vector_store %arg30[%c0_185, %c0_186], %497 {strides = array<i32>} : memref<2x64xf32, #tpu.memory_space<vmem>>, vector<2x64xf32>,
    } else {
    }
    %c0 = arith.constant 0 : index
    %c0_1 = arith.constant 0 : index
    %3 = vector.load %arg30[%c0, %c0_1] : memref<2x64xf32, #tpu.memory_space<vmem>>, vector<2x64xf32>
    %4 = arith.truncf %3 : vector<2x64xf32> to vector<2x64xbf16>
    %c0_2 = arith.constant 0 : index
    %c0_3 = arith.constant 0 : index
    %c0_4 = arith.constant 0 : index
    %5 = vector.load %arg9[%c0_2, %c0_3, %c0_4] : memref<1x64x768xbf16, #tpu.memory_space<vmem>>, vector<1x64x768xbf16>
    %6 = vector.shape_cast %5 : vector<1x64x768xbf16> to vector<64x768xbf16>
    %cst = arith.constant dense<0.000000e+00> : vector<2x768xf32>
    %7 = tpu.matmul %4, %6, %cst {dimension_numbers = #tpu.dot_dimension_numbers<[1], [0], [0], [1], [0, 0, 1, 1], [], []>} : vector<2x64xbf16>, vector<64x768xbf16>, vector<2x768xf32> -> vector<2x768xf32>
    %c0_5 = arith.constant 0 : index
    %c0_6 = arith.constant 0 : index
    %c0_7 = arith.constant 0 : index
    %8 = vector.load %arg10[%c0_5, %c0_6, %c0_7] : memref<1x1x768xf32, #tpu.memory_space<vmem>>, vector<1x1x768xf32>
    %9 = vector.shape_cast %8 : vector<1x1x768xf32> to vector<1x768xf32>
    %10 = vector.broadcast %9 : vector<1x768xf32> to vector<2x768xf32>
    %11 = arith.addf %7, %10 : vector<2x768xf32>
    %c0_8 = arith.constant 0 : index
    %c0_9 = arith.constant 0 : index
    %12 = vector.load %arg29[%c0_8, %c0_9] : memref<32x64xf32, #tpu.memory_space<vmem>>, vector<32x64xf32>
    %13 = vector.shape_cast %12 : vector<32x64xf32> to vector<2x16x64xf32>
    %c0_10 = arith.constant 0 : index
    %c0_11 = arith.constant 0 : index
    %14 = vector.load %arg18[%c0_10, %c0_11] : memref<16x64xf32, #tpu.memory_space<vmem>>, vector<16x64xf32>
    %15 = vector.shape_cast %14 : vector<16x64xf32> to vector<1x16x64xf32>
    %c0_12 = arith.constant 0 : index
    %c0_13 = arith.constant 0 : index
    %16 = vector.load %arg19[%c0_12, %c0_13] : memref<16x64xf32, #tpu.memory_space<vmem>>, vector<16x64xf32>
    %17 = vector.shape_cast %16 : vector<16x64xf32> to vector<1x16x64xf32>
    %c0_14 = arith.constant 0 : index
    %c0_15 = arith.constant 0 : index
    %c0_16 = arith.constant 0 : index
    %18 = vector.load %arg20[%c0_14, %c0_15, %c0_16] : memref<2x1x64xf32, #tpu.memory_space<vmem>>, vector<2x1x64xf32>
    %c0_17 = arith.constant 0 : index
    %c0_18 = arith.constant 0 : index
    %c0_19 = arith.constant 0 : index
    %19 = vector.load %arg21[%c0_17, %c0_18, %c0_19] : memref<2x1x64xf32, #tpu.memory_space<vmem>>, vector<2x1x64xf32>
    %20 = vector.extract_strided_slice %11 {offsets = [0, 0], sizes = [2, 64], strides = [1, 1]} : vector<2x768xf32> to vector<2x64xf32>
    %21 = vector.extract_strided_slice %11 {offsets = [0, 64], sizes = [2, 64], strides = [1, 1]} : vector<2x768xf32> to vector<2x64xf32>
    %22 = vector.extract_strided_slice %11 {offsets = [0, 128], sizes = [2, 64], strides = [1, 1]} : vector<2x768xf32> to vector<2x64xf32>
    %c0_20 = arith.constant 0 : index
    %c0_21 = arith.constant 0 : index
    %23 = vector.load %arg22[%c0_20, %c0_21] : memref<32x32xf32, #tpu.memory_space<vmem>>, vector<32x32xf32>
    %cst_22 = arith.constant dense<0.000000e+00> : vector<2x16xf32>
    %24 = vector.multi_reduction <add>, %13, %cst_22 [2] : vector<2x16x64xf32> to vector<2x16xf32>
    %25 = vector.shape_cast %24 : vector<2x16xf32> to vector<2x16x1xf32>
    %cst_23 = arith.constant 6.400000e+01 : f32
    %26 = vector.broadcast %cst_23 : f32 to vector<2x16x1xf32>
    %27 = arith.divf %25, %26 : vector<2x16x1xf32>
    %28 = vector.broadcast %27 : vector<2x16x1xf32> to vector<2x16x64xf32>
    %29 = arith.subf %13, %28 : vector<2x16x64xf32>
    %30 = arith.mulf %29, %29 : vector<2x16x64xf32>
    %cst_24 = arith.constant dense<0.000000e+00> : vector<2x16xf32>
    %31 = vector.multi_reduction <add>, %30, %cst_24 [2] : vector<2x16x64xf32> to vector<2x16xf32>
    %32 = vector.shape_cast %31 : vector<2x16xf32> to vector<2x16x1xf32>
    %cst_25 = arith.constant 6.400000e+01 : f32
    %33 = vector.broadcast %cst_25 : f32 to vector<2x16x1xf32>
    %34 = arith.divf %32, %33 : vector<2x16x1xf32>
    %35 = vector.broadcast %27 : vector<2x16x1xf32> to vector<2x16x64xf32>
    %36 = arith.subf %13, %35 : vector<2x16x64xf32>
    %cst_26 = arith.constant 9.99999997E-7 : f32
    %37 = vector.broadcast %cst_26 : f32 to vector<2x16x1xf32>
    %38 = arith.addf %34, %37 : vector<2x16x1xf32>
    %39 = math.rsqrt %38 : vector<2x16x1xf32>
    %40 = vector.broadcast %39 : vector<2x16x1xf32> to vector<2x16x64xf32>
    %41 = arith.mulf %36, %40 : vector<2x16x64xf32>
    %42 = vector.shape_cast %21 : vector<2x64xf32> to vector<2x1x64xf32>
    %cst_27 = arith.constant 1.000000e+00 : f32
    %43 = vector.broadcast %cst_27 : f32 to vector<2x1x64xf32>
    %44 = arith.addf %43, %42 : vector<2x1x64xf32>
    %45 = vector.broadcast %44 : vector<2x1x64xf32> to vector<2x16x64xf32>
    %46 = arith.mulf %41, %45 : vector<2x16x64xf32>
    %47 = vector.shape_cast %20 : vector<2x64xf32> to vector<2x1x64xf32>
    %48 = vector.broadcast %47 : vector<2x1x64xf32> to vector<2x16x64xf32>
    %49 = arith.addf %46, %48 : vector<2x16x64xf32>
    %50 = vector.shape_cast %49 : vector<2x16x64xf32> to vector<32x64xf32>
    %51 = arith.truncf %50 : vector<32x64xf32> to vector<32x64xbf16>
    %c0_28 = arith.constant 0 : index
    %c0_29 = arith.constant 0 : index
    %c0_30 = arith.constant 0 : index
    %c0_31 = arith.constant 0 : index
    %52 = vector.load %arg11[%c0_28, %c0_29, %c0_30, %c0_31] : memref<1x2x64x320xbf16, #tpu.memory_space<vmem>>, vector<1x1x64x320xbf16>
    %53 = vector.shape_cast %52 : vector<1x1x64x320xbf16> to vector<64x320xbf16>
    %cst_32 = arith.constant dense<0.000000e+00> : vector<32x320xf32>
    %54 = tpu.matmul %51, %53, %cst_32 {dimension_numbers = #tpu.dot_dimension_numbers<[1], [0], [0], [1], [0, 0, 1, 1], [], []>} : vector<32x64xbf16>, vector<64x320xbf16>, vector<32x320xf32> -> vector<32x320xf32>
    %55 = vector.shape_cast %54 : vector<32x320xf32> to vector<2x16x320xf32>
    %56 = vector.extract_strided_slice %55 {offsets = [0, 0, 0], sizes = [2, 16, 64], strides = [1, 1, 1]} : vector<2x16x320xf32> to vector<2x16x64xf32>
    %57 = vector.broadcast %15 : vector<1x16x64xf32> to vector<2x16x64xf32>
    %58 = arith.mulf %56, %57 : vector<2x16x64xf32>
    %59 = vector.extract_strided_slice %55 {offsets = [0, 0, 192], sizes = [2, 16, 64], strides = [1, 1, 1]} : vector<2x16x320xf32> to vector<2x16x64xf32>
    %60 = vector.broadcast %17 : vector<1x16x64xf32> to vector<2x16x64xf32>
    %61 = arith.mulf %59, %60 : vector<2x16x64xf32>
    %62 = arith.addf %58, %61 : vector<2x16x64xf32>
    %63 = vector.extract_strided_slice %55 {offsets = [0, 0, 64], sizes = [2, 16, 64], strides = [1, 1, 1]} : vector<2x16x320xf32> to vector<2x16x64xf32>
    %64 = vector.broadcast %15 : vector<1x16x64xf32> to vector<2x16x64xf32>
    %65 = arith.mulf %63, %64 : vector<2x16x64xf32>
    %66 = vector.extract_strided_slice %55 {offsets = [0, 0, 256], sizes = [2, 16, 64], strides = [1, 1, 1]} : vector<2x16x320xf32> to vector<2x16x64xf32>
    %67 = vector.broadcast %17 : vector<1x16x64xf32> to vector<2x16x64xf32>
    %68 = arith.mulf %66, %67 : vector<2x16x64xf32>
    %69 = arith.addf %65, %68 : vector<2x16x64xf32>
    %70 = vector.shape_cast %62 : vector<2x16x64xf32> to vector<32x64xf32>
    %71 = vector.shape_cast %69 : vector<2x16x64xf32> to vector<32x64xf32>
    %72 = vector.extract_strided_slice %55 {offsets = [0, 0, 128], sizes = [2, 16, 64], strides = [1, 1, 1]} : vector<2x16x320xf32> to vector<2x16x64xf32>
    %73 = vector.shape_cast %72 : vector<2x16x64xf32> to vector<32x64xf32>
    %74 = vector.extract_strided_slice %70 {offsets = [0, 0], sizes = [32, 16], strides = [1, 1]} : vector<32x64xf32> to vector<32x16xf32>
    %75 = arith.truncf %74 : vector<32x16xf32> to vector<32x16xbf16>
    %76 = vector.extract_strided_slice %71 {offsets = [0, 0], sizes = [32, 16], strides = [1, 1]} : vector<32x64xf32> to vector<32x16xf32>
    %77 = arith.truncf %76 : vector<32x16xf32> to vector<32x16xbf16>
    %78 = vector.extract_strided_slice %73 {offsets = [0, 0], sizes = [32, 16], strides = [1, 1]} : vector<32x64xf32> to vector<32x16xf32>
    %79 = arith.truncf %78 : vector<32x16xf32> to vector<32x16xbf16>
    "tpu.trace_start"() <{level = 10 : i32, message = "qd,kd->qk"}> : () -> ()
    %cst_33 = arith.constant dense<0.000000e+00> : vector<32x32xf32>
    %80 = tpu.matmul %75, %77, %cst_33 {dimension_numbers = #tpu.dot_dimension_numbers<[1], [1], [0], [0], [0, 0, 1, 0], [], []>} : vector<32x16xbf16>, vector<32x16xbf16>, vector<32x32xf32> -> vector<32x32xf32>
    "tpu.trace_stop"() : () -> ()
    %cst_34 = arith.constant 2.500000e-01 : f32
    %81 = vector.broadcast %cst_34 : f32 to vector<32x32xf32>
    %82 = arith.mulf %80, %81 : vector<32x32xf32>
    %83 = arith.addf %82, %23 : vector<32x32xf32>
    %cst_35 = arith.constant dense<0xFF800000> : vector<32xf32>
    %84 = vector.multi_reduction <maximumf>, %83, %cst_35 [1] : vector<32x32xf32> to vector<32xf32>
    %85 = vector.shape_cast %84 : vector<32xf32> to vector<32x1xf32>
    %86 = vector.broadcast %85 : vector<32x1xf32> to vector<32x32xf32>
    %87 = arith.subf %83, %86 : vector<32x32xf32>
    %88 = math.exp %87 : vector<32x32xf32>
    %cst_36 = arith.constant dense<0.000000e+00> : vector<32xf32>
    %89 = vector.multi_reduction <add>, %88, %cst_36 [1] : vector<32x32xf32> to vector<32xf32>
    %90 = vector.shape_cast %89 : vector<32xf32> to vector<32x1xf32>
    %91 = tpu.reciprocal %90 {approx = true} : vector<32x1xf32> -> vector<32x1xf32>
    %92 = vector.broadcast %91 : vector<32x1xf32> to vector<32x32xf32>
    %93 = arith.mulf %88, %92 : vector<32x32xf32>
    %94 = arith.truncf %93 : vector<32x32xf32> to vector<32x32xbf16>
    %cst_37 = arith.constant dense<0.000000e+00> : vector<32x16xf32>
    %95 = tpu.matmul %94, %79, %cst_37 {dimension_numbers = #tpu.dot_dimension_numbers<[1], [0], [0], [1], [0, 0, 1, 1], [], []>} : vector<32x32xbf16>, vector<32x16xbf16>, vector<32x16xf32> -> vector<32x16xf32>
    %96 = vector.extract_strided_slice %70 {offsets = [0, 16], sizes = [32, 16], strides = [1, 1]} : vector<32x64xf32> to vector<32x16xf32>
    %97 = arith.truncf %96 : vector<32x16xf32> to vector<32x16xbf16>
    %98 = vector.extract_strided_slice %71 {offsets = [0, 16], sizes = [32, 16], strides = [1, 1]} : vector<32x64xf32> to vector<32x16xf32>
    %99 = arith.truncf %98 : vector<32x16xf32> to vector<32x16xbf16>
    %100 = vector.extract_strided_slice %73 {offsets = [0, 16], sizes = [32, 16], strides = [1, 1]} : vector<32x64xf32> to vector<32x16xf32>
    %101 = arith.truncf %100 : vector<32x16xf32> to vector<32x16xbf16>
    "tpu.trace_start"() <{level = 10 : i32, message = "qd,kd->qk"}> : () -> ()
    %cst_38 = arith.constant dense<0.000000e+00> : vector<32x32xf32>
    %102 = tpu.matmul %97, %99, %cst_38 {dimension_numbers = #tpu.dot_dimension_numbers<[1], [1], [0], [0], [0, 0, 1, 0], [], []>} : vector<32x16xbf16>, vector<32x16xbf16>, vector<32x32xf32> -> vector<32x32xf32>
    "tpu.trace_stop"() : () -> ()
    %cst_39 = arith.constant 2.500000e-01 : f32
    %103 = vector.broadcast %cst_39 : f32 to vector<32x32xf32>
    %104 = arith.mulf %102, %103 : vector<32x32xf32>
    %105 = arith.addf %104, %23 : vector<32x32xf32>
    %cst_40 = arith.constant dense<0xFF800000> : vector<32xf32>
    %106 = vector.multi_reduction <maximumf>, %105, %cst_40 [1] : vector<32x32xf32> to vector<32xf32>
    %107 = vector.shape_cast %106 : vector<32xf32> to vector<32x1xf32>
    %108 = vector.broadcast %107 : vector<32x1xf32> to vector<32x32xf32>
    %109 = arith.subf %105, %108 : vector<32x32xf32>
    %110 = math.exp %109 : vector<32x32xf32>
    %cst_41 = arith.constant dense<0.000000e+00> : vector<32xf32>
    %111 = vector.multi_reduction <add>, %110, %cst_41 [1] : vector<32x32xf32> to vector<32xf32>
    %112 = vector.shape_cast %111 : vector<32xf32> to vector<32x1xf32>
    %113 = tpu.reciprocal %112 {approx = true} : vector<32x1xf32> -> vector<32x1xf32>
    %114 = vector.broadcast %113 : vector<32x1xf32> to vector<32x32xf32>
    %115 = arith.mulf %110, %114 : vector<32x32xf32>
    %116 = arith.truncf %115 : vector<32x32xf32> to vector<32x32xbf16>
    %cst_42 = arith.constant dense<0.000000e+00> : vector<32x16xf32>
    %117 = tpu.matmul %116, %101, %cst_42 {dimension_numbers = #tpu.dot_dimension_numbers<[1], [0], [0], [1], [0, 0, 1, 1], [], []>} : vector<32x32xbf16>, vector<32x16xbf16>, vector<32x16xf32> -> vector<32x16xf32>
    %118 = vector.extract_strided_slice %70 {offsets = [0, 32], sizes = [32, 16], strides = [1, 1]} : vector<32x64xf32> to vector<32x16xf32>
    %119 = arith.truncf %118 : vector<32x16xf32> to vector<32x16xbf16>
    %120 = vector.extract_strided_slice %71 {offsets = [0, 32], sizes = [32, 16], strides = [1, 1]} : vector<32x64xf32> to vector<32x16xf32>
    %121 = arith.truncf %120 : vector<32x16xf32> to vector<32x16xbf16>
    %122 = vector.extract_strided_slice %73 {offsets = [0, 32], sizes = [32, 16], strides = [1, 1]} : vector<32x64xf32> to vector<32x16xf32>
    %123 = arith.truncf %122 : vector<32x16xf32> to vector<32x16xbf16>
    "tpu.trace_start"() <{level = 10 : i32, message = "qd,kd->qk"}> : () -> ()
    %cst_43 = arith.constant dense<0.000000e+00> : vector<32x32xf32>
    %124 = tpu.matmul %119, %121, %cst_43 {dimension_numbers = #tpu.dot_dimension_numbers<[1], [1], [0], [0], [0, 0, 1, 0], [], []>} : vector<32x16xbf16>, vector<32x16xbf16>, vector<32x32xf32> -> vector<32x32xf32>
    "tpu.trace_stop"() : () -> ()
    %cst_44 = arith.constant 2.500000e-01 : f32
    %125 = vector.broadcast %cst_44 : f32 to vector<32x32xf32>
    %126 = arith.mulf %124, %125 : vector<32x32xf32>
    %127 = arith.addf %126, %23 : vector<32x32xf32>
    %cst_45 = arith.constant dense<0xFF800000> : vector<32xf32>
    %128 = vector.multi_reduction <maximumf>, %127, %cst_45 [1] : vector<32x32xf32> to vector<32xf32>
    %129 = vector.shape_cast %128 : vector<32xf32> to vector<32x1xf32>
    %130 = vector.broadcast %129 : vector<32x1xf32> to vector<32x32xf32>
    %131 = arith.subf %127, %130 : vector<32x32xf32>
    %132 = math.exp %131 : vector<32x32xf32>
    %cst_46 = arith.constant dense<0.000000e+00> : vector<32xf32>
    %133 = vector.multi_reduction <add>, %132, %cst_46 [1] : vector<32x32xf32> to vector<32xf32>
    %134 = vector.shape_cast %133 : vector<32xf32> to vector<32x1xf32>
    %135 = tpu.reciprocal %134 {approx = true} : vector<32x1xf32> -> vector<32x1xf32>
    %136 = vector.broadcast %135 : vector<32x1xf32> to vector<32x32xf32>
    %137 = arith.mulf %132, %136 : vector<32x32xf32>
    %138 = arith.truncf %137 : vector<32x32xf32> to vector<32x32xbf16>
    %cst_47 = arith.constant dense<0.000000e+00> : vector<32x16xf32>
    %139 = tpu.matmul %138, %123, %cst_47 {dimension_numbers = #tpu.dot_dimension_numbers<[1], [0], [0], [1], [0, 0, 1, 1], [], []>} : vector<32x32xbf16>, vector<32x16xbf16>, vector<32x16xf32> -> vector<32x16xf32>
    %140 = vector.extract_strided_slice %70 {offsets = [0, 48], sizes = [32, 16], strides = [1, 1]} : vector<32x64xf32> to vector<32x16xf32>
    %141 = arith.truncf %140 : vector<32x16xf32> to vector<32x16xbf16>
    %142 = vector.extract_strided_slice %71 {offsets = [0, 48], sizes = [32, 16], strides = [1, 1]} : vector<32x64xf32> to vector<32x16xf32>
    %143 = arith.truncf %142 : vector<32x16xf32> to vector<32x16xbf16>
    %144 = vector.extract_strided_slice %73 {offsets = [0, 48], sizes = [32, 16], strides = [1, 1]} : vector<32x64xf32> to vector<32x16xf32>
    %145 = arith.truncf %144 : vector<32x16xf32> to vector<32x16xbf16>
    "tpu.trace_start"() <{level = 10 : i32, message = "qd,kd->qk"}> : () -> ()
    %cst_48 = arith.constant dense<0.000000e+00> : vector<32x32xf32>
    %146 = tpu.matmul %141, %143, %cst_48 {dimension_numbers = #tpu.dot_dimension_numbers<[1], [1], [0], [0], [0, 0, 1, 0], [], []>} : vector<32x16xbf16>, vector<32x16xbf16>, vector<32x32xf32> -> vector<32x32xf32>
    "tpu.trace_stop"() : () -> ()
    %cst_49 = arith.constant 2.500000e-01 : f32
    %147 = vector.broadcast %cst_49 : f32 to vector<32x32xf32>
    %148 = arith.mulf %146, %147 : vector<32x32xf32>
    %149 = arith.addf %148, %23 : vector<32x32xf32>
    %cst_50 = arith.constant dense<0xFF800000> : vector<32xf32>
    %150 = vector.multi_reduction <maximumf>, %149, %cst_50 [1] : vector<32x32xf32> to vector<32xf32>
    %151 = vector.shape_cast %150 : vector<32xf32> to vector<32x1xf32>
    %152 = vector.broadcast %151 : vector<32x1xf32> to vector<32x32xf32>
    %153 = arith.subf %149, %152 : vector<32x32xf32>
    %154 = math.exp %153 : vector<32x32xf32>
    %cst_51 = arith.constant dense<0.000000e+00> : vector<32xf32>
    %155 = vector.multi_reduction <add>, %154, %cst_51 [1] : vector<32x32xf32> to vector<32xf32>
    %156 = vector.shape_cast %155 : vector<32xf32> to vector<32x1xf32>
    %157 = tpu.reciprocal %156 {approx = true} : vector<32x1xf32> -> vector<32x1xf32>
    %158 = vector.broadcast %157 : vector<32x1xf32> to vector<32x32xf32>
    %159 = arith.mulf %154, %158 : vector<32x32xf32>
    %160 = arith.truncf %159 : vector<32x32xf32> to vector<32x32xbf16>
    %cst_52 = arith.constant dense<0.000000e+00> : vector<32x16xf32>
    %161 = tpu.matmul %160, %145, %cst_52 {dimension_numbers = #tpu.dot_dimension_numbers<[1], [0], [0], [1], [0, 0, 1, 1], [], []>} : vector<32x32xbf16>, vector<32x16xbf16>, vector<32x16xf32> -> vector<32x16xf32>
    %162 = tpu.concatenate %95, %117, %139, %161 in 1 : vector<32x16xf32>, vector<32x16xf32>, vector<32x16xf32>, vector<32x16xf32> -> vector<32x64xf32>
    %163 = arith.truncf %162 : vector<32x64xf32> to vector<32x64xbf16>
    %c0_53 = arith.constant 0 : index
    %c0_54 = arith.constant 0 : index
    %c0_55 = arith.constant 0 : index
    %c0_56 = arith.constant 0 : index
    %164 = vector.load %arg12[%c0_53, %c0_54, %c0_55, %c0_56] : memref<1x2x64x64xbf16, #tpu.memory_space<vmem>>, vector<1x1x64x64xbf16>
    %165 = vector.shape_cast %164 : vector<1x1x64x64xbf16> to vector<64x64xbf16>
    %cst_57 = arith.constant dense<0.000000e+00> : vector<32x64xf32>
    %166 = tpu.matmul %163, %165, %cst_57 {dimension_numbers = #tpu.dot_dimension_numbers<[1], [0], [0], [1], [0, 0, 1, 1], [], []>} : vector<32x64xbf16>, vector<64x64xbf16>, vector<32x64xf32> -> vector<32x64xf32>
    %c0_58 = arith.constant 0 : index
    %c0_59 = arith.constant 0 : index
    %c0_60 = arith.constant 0 : index
    %c0_61 = arith.constant 0 : index
    %167 = vector.load %arg13[%c0_58, %c0_59, %c0_60, %c0_61] : memref<1x2x1x64xf32, #tpu.memory_space<vmem>>, vector<1x1x1x64xf32>
    %168 = vector.shape_cast %167 : vector<1x1x1x64xf32> to vector<1x64xf32>
    %169 = vector.broadcast %168 : vector<1x64xf32> to vector<32x64xf32>
    %170 = arith.addf %166, %169 : vector<32x64xf32>
    %171 = vector.shape_cast %22 : vector<2x64xf32> to vector<2x1x64xf32>
    %172 = vector.shape_cast %170 : vector<32x64xf32> to vector<2x16x64xf32>
    %173 = vector.broadcast %171 : vector<2x1x64xf32> to vector<2x16x64xf32>
    %174 = arith.mulf %173, %172 : vector<2x16x64xf32>
    %175 = arith.addf %13, %174 : vector<2x16x64xf32>
    %176 = vector.extract_strided_slice %11 {offsets = [0, 192], sizes = [2, 64], strides = [1, 1]} : vector<2x768xf32> to vector<2x64xf32>
    %177 = vector.extract_strided_slice %11 {offsets = [0, 256], sizes = [2, 64], strides = [1, 1]} : vector<2x768xf32> to vector<2x64xf32>
    %178 = vector.extract_strided_slice %11 {offsets = [0, 320], sizes = [2, 64], strides = [1, 1]} : vector<2x768xf32> to vector<2x64xf32>
    %cst_62 = arith.constant dense<0.000000e+00> : vector<2x16xf32>
    %179 = vector.multi_reduction <add>, %175, %cst_62 [2] : vector<2x16x64xf32> to vector<2x16xf32>
    %180 = vector.shape_cast %179 : vector<2x16xf32> to vector<2x16x1xf32>
    %cst_63 = arith.constant 6.400000e+01 : f32
    %181 = vector.broadcast %cst_63 : f32 to vector<2x16x1xf32>
    %182 = arith.divf %180, %181 : vector<2x16x1xf32>
    %183 = vector.broadcast %182 : vector<2x16x1xf32> to vector<2x16x64xf32>
    %184 = arith.subf %175, %183 : vector<2x16x64xf32>
    %185 = arith.mulf %184, %184 : vector<2x16x64xf32>
    %cst_64 = arith.constant dense<0.000000e+00> : vector<2x16xf32>
    %186 = vector.multi_reduction <add>, %185, %cst_64 [2] : vector<2x16x64xf32> to vector<2x16xf32>
    %187 = vector.shape_cast %186 : vector<2x16xf32> to vector<2x16x1xf32>
    %cst_65 = arith.constant 6.400000e+01 : f32
    %188 = vector.broadcast %cst_65 : f32 to vector<2x16x1xf32>
    %189 = arith.divf %187, %188 : vector<2x16x1xf32>
    %190 = vector.broadcast %182 : vector<2x16x1xf32> to vector<2x16x64xf32>
    %191 = arith.subf %175, %190 : vector<2x16x64xf32>
    %cst_66 = arith.constant 9.99999997E-7 : f32
    %192 = vector.broadcast %cst_66 : f32 to vector<2x16x1xf32>
    %193 = arith.addf %189, %192 : vector<2x16x1xf32>
    %194 = math.rsqrt %193 : vector<2x16x1xf32>
    %195 = vector.broadcast %194 : vector<2x16x1xf32> to vector<2x16x64xf32>
    %196 = arith.mulf %191, %195 : vector<2x16x64xf32>
    %197 = vector.shape_cast %177 : vector<2x64xf32> to vector<2x1x64xf32>
    %cst_67 = arith.constant 1.000000e+00 : f32
    %198 = vector.broadcast %cst_67 : f32 to vector<2x1x64xf32>
    %199 = arith.addf %198, %197 : vector<2x1x64xf32>
    %200 = vector.broadcast %199 : vector<2x1x64xf32> to vector<2x16x64xf32>
    %201 = arith.mulf %196, %200 : vector<2x16x64xf32>
    %202 = vector.shape_cast %176 : vector<2x64xf32> to vector<2x1x64xf32>
    %203 = vector.broadcast %202 : vector<2x1x64xf32> to vector<2x16x64xf32>
    %204 = arith.addf %201, %203 : vector<2x16x64xf32>
    %205 = vector.shape_cast %204 : vector<2x16x64xf32> to vector<32x64xf32>
    %206 = arith.truncf %205 : vector<32x64xf32> to vector<32x64xbf16>
    %c0_68 = arith.constant 0 : index
    %c0_69 = arith.constant 0 : index
    %c0_70 = arith.constant 0 : index
    %c0_71 = arith.constant 0 : index
    %207 = vector.load %arg14[%c0_68, %c0_69, %c0_70, %c0_71] : memref<1x2x64x256xbf16, #tpu.memory_space<vmem>>, vector<1x1x64x256xbf16>
    %208 = vector.shape_cast %207 : vector<1x1x64x256xbf16> to vector<64x256xbf16>
    %cst_72 = arith.constant dense<0.000000e+00> : vector<32x256xf32>
    %209 = tpu.matmul %206, %208, %cst_72 {dimension_numbers = #tpu.dot_dimension_numbers<[1], [0], [0], [1], [0, 0, 1, 1], [], []>} : vector<32x64xbf16>, vector<64x256xbf16>, vector<32x256xf32> -> vector<32x256xf32>
    %c0_73 = arith.constant 0 : index
    %c0_74 = arith.constant 0 : index
    %c0_75 = arith.constant 0 : index
    %c0_76 = arith.constant 0 : index
    %210 = vector.load %arg15[%c0_73, %c0_74, %c0_75, %c0_76] : memref<1x2x1x256xf32, #tpu.memory_space<vmem>>, vector<1x1x1x256xf32>
    %211 = vector.shape_cast %210 : vector<1x1x1x256xf32> to vector<1x256xf32>
    %212 = vector.broadcast %211 : vector<1x256xf32> to vector<32x256xf32>
    %213 = arith.addf %209, %212 : vector<32x256xf32>
    %214 = arith.mulf %213, %213 : vector<32x256xf32>
    %215 = arith.mulf %213, %214 : vector<32x256xf32>
    %cst_77 = arith.constant 4.471500e-02 : f32
    %216 = vector.broadcast %cst_77 : f32 to vector<32x256xf32>
    %217 = arith.mulf %216, %215 : vector<32x256xf32>
    %218 = arith.addf %213, %217 : vector<32x256xf32>
    %cst_78 = arith.constant 0.797884583 : f32
    %219 = vector.broadcast %cst_78 : f32 to vector<32x256xf32>
    %220 = arith.mulf %219, %218 : vector<32x256xf32>
    %221 = math.tanh %220 : vector<32x256xf32>
    %cst_79 = arith.constant 1.000000e+00 : f32
    %222 = vector.broadcast %cst_79 : f32 to vector<32x256xf32>
    %223 = arith.addf %222, %221 : vector<32x256xf32>
    %cst_80 = arith.constant 5.000000e-01 : f32
    %224 = vector.broadcast %cst_80 : f32 to vector<32x256xf32>
    %225 = arith.mulf %224, %223 : vector<32x256xf32>
    %226 = arith.mulf %213, %225 : vector<32x256xf32>
    %227 = arith.truncf %226 : vector<32x256xf32> to vector<32x256xbf16>
    %c0_81 = arith.constant 0 : index
    %c0_82 = arith.constant 0 : index
    %c0_83 = arith.constant 0 : index
    %c0_84 = arith.constant 0 : index
    %228 = vector.load %arg16[%c0_81, %c0_82, %c0_83, %c0_84] : memref<1x2x256x64xbf16, #tpu.memory_space<vmem>>, vector<1x1x256x64xbf16>
    %229 = vector.shape_cast %228 : vector<1x1x256x64xbf16> to vector<256x64xbf16>
    %cst_85 = arith.constant dense<0.000000e+00> : vector<32x64xf32>
    %230 = tpu.matmul %227, %229, %cst_85 {dimension_numbers = #tpu.dot_dimension_numbers<[1], [0], [0], [1], [0, 0, 1, 1], [], []>} : vector<32x256xbf16>, vector<256x64xbf16>, vector<32x64xf32> -> vector<32x64xf32>
    %c0_86 = arith.constant 0 : index
    %c0_87 = arith.constant 0 : index
    %c0_88 = arith.constant 0 : index
    %c0_89 = arith.constant 0 : index
    %231 = vector.load %arg17[%c0_86, %c0_87, %c0_88, %c0_89] : memref<1x2x1x64xf32, #tpu.memory_space<vmem>>, vector<1x1x1x64xf32>
    %232 = vector.shape_cast %231 : vector<1x1x1x64xf32> to vector<1x64xf32>
    %233 = vector.broadcast %232 : vector<1x64xf32> to vector<32x64xf32>
    %234 = arith.addf %230, %233 : vector<32x64xf32>
    %235 = vector.shape_cast %178 : vector<2x64xf32> to vector<2x1x64xf32>
    %236 = vector.shape_cast %234 : vector<32x64xf32> to vector<2x16x64xf32>
    %237 = vector.broadcast %235 : vector<2x1x64xf32> to vector<2x16x64xf32>
    %238 = arith.mulf %237, %236 : vector<2x16x64xf32>
    %239 = arith.addf %175, %238 : vector<2x16x64xf32>
    %240 = vector.extract_strided_slice %11 {offsets = [0, 384], sizes = [2, 64], strides = [1, 1]} : vector<2x768xf32> to vector<2x64xf32>
    %241 = vector.extract_strided_slice %11 {offsets = [0, 448], sizes = [2, 64], strides = [1, 1]} : vector<2x768xf32> to vector<2x64xf32>
    %242 = vector.extract_strided_slice %11 {offsets = [0, 512], sizes = [2, 64], strides = [1, 1]} : vector<2x768xf32> to vector<2x64xf32>
    %c0_90 = arith.constant 0 : index
    %c0_91 = arith.constant 0 : index
    %243 = vector.load %arg23[%c0_90, %c0_91] : memref<32x32xf32, #tpu.memory_space<vmem>>, vector<32x32xf32>
    %cst_92 = arith.constant dense<0.000000e+00> : vector<2x16xf32>
    %244 = vector.multi_reduction <add>, %239, %cst_92 [2] : vector<2x16x64xf32> to vector<2x16xf32>
    %245 = vector.shape_cast %244 : vector<2x16xf32> to vector<2x16x1xf32>
    %cst_93 = arith.constant 6.400000e+01 : f32
    %246 = vector.broadcast %cst_93 : f32 to vector<2x16x1xf32>
    %247 = arith.divf %245, %246 : vector<2x16x1xf32>
    %248 = vector.broadcast %247 : vector<2x16x1xf32> to vector<2x16x64xf32>
    %249 = arith.subf %239, %248 : vector<2x16x64xf32>
    %250 = arith.mulf %249, %249 : vector<2x16x64xf32>
    %cst_94 = arith.constant dense<0.000000e+00> : vector<2x16xf32>
    %251 = vector.multi_reduction <add>, %250, %cst_94 [2] : vector<2x16x64xf32> to vector<2x16xf32>
    %252 = vector.shape_cast %251 : vector<2x16xf32> to vector<2x16x1xf32>
    %cst_95 = arith.constant 6.400000e+01 : f32
    %253 = vector.broadcast %cst_95 : f32 to vector<2x16x1xf32>
    %254 = arith.divf %252, %253 : vector<2x16x1xf32>
    %255 = vector.broadcast %247 : vector<2x16x1xf32> to vector<2x16x64xf32>
    %256 = arith.subf %239, %255 : vector<2x16x64xf32>
    %cst_96 = arith.constant 9.99999997E-7 : f32
    %257 = vector.broadcast %cst_96 : f32 to vector<2x16x1xf32>
    %258 = arith.addf %254, %257 : vector<2x16x1xf32>
    %259 = math.rsqrt %258 : vector<2x16x1xf32>
    %260 = vector.broadcast %259 : vector<2x16x1xf32> to vector<2x16x64xf32>
    %261 = arith.mulf %256, %260 : vector<2x16x64xf32>
    %262 = vector.shape_cast %241 : vector<2x64xf32> to vector<2x1x64xf32>
    %cst_97 = arith.constant 1.000000e+00 : f32
    %263 = vector.broadcast %cst_97 : f32 to vector<2x1x64xf32>
    %264 = arith.addf %263, %262 : vector<2x1x64xf32>
    %265 = vector.broadcast %264 : vector<2x1x64xf32> to vector<2x16x64xf32>
    %266 = arith.mulf %261, %265 : vector<2x16x64xf32>
    %267 = vector.shape_cast %240 : vector<2x64xf32> to vector<2x1x64xf32>
    %268 = vector.broadcast %267 : vector<2x1x64xf32> to vector<2x16x64xf32>
    %269 = arith.addf %266, %268 : vector<2x16x64xf32>
    %270 = vector.shape_cast %269 : vector<2x16x64xf32> to vector<32x64xf32>
    %271 = arith.truncf %270 : vector<32x64xf32> to vector<32x64xbf16>
    %c0_98 = arith.constant 0 : index
    %c1 = arith.constant 1 : index
    %c0_99 = arith.constant 0 : index
    %c0_100 = arith.constant 0 : index
    %272 = vector.load %arg11[%c0_98, %c1, %c0_99, %c0_100] : memref<1x2x64x320xbf16, #tpu.memory_space<vmem>>, vector<1x1x64x320xbf16>
    %273 = vector.shape_cast %272 : vector<1x1x64x320xbf16> to vector<64x320xbf16>
    %cst_101 = arith.constant dense<0.000000e+00> : vector<32x320xf32>
    %274 = tpu.matmul %271, %273, %cst_101 {dimension_numbers = #tpu.dot_dimension_numbers<[1], [0], [0], [1], [0, 0, 1, 1], [], []>} : vector<32x64xbf16>, vector<64x320xbf16>, vector<32x320xf32> -> vector<32x320xf32>
    %275 = vector.shape_cast %274 : vector<32x320xf32> to vector<2x16x320xf32>
    %276 = vector.extract_strided_slice %275 {offsets = [0, 0, 0], sizes = [2, 16, 64], strides = [1, 1, 1]} : vector<2x16x320xf32> to vector<2x16x64xf32>
    %277 = vector.broadcast %18 : vector<2x1x64xf32> to vector<2x16x64xf32>
    %278 = arith.mulf %276, %277 : vector<2x16x64xf32>
    %279 = vector.extract_strided_slice %275 {offsets = [0, 0, 192], sizes = [2, 16, 64], strides = [1, 1, 1]} : vector<2x16x320xf32> to vector<2x16x64xf32>
    %280 = vector.broadcast %19 : vector<2x1x64xf32> to vector<2x16x64xf32>
    %281 = arith.mulf %279, %280 : vector<2x16x64xf32>
    %282 = arith.addf %278, %281 : vector<2x16x64xf32>
    %283 = vector.extract_strided_slice %275 {offsets = [0, 0, 64], sizes = [2, 16, 64], strides = [1, 1, 1]} : vector<2x16x320xf32> to vector<2x16x64xf32>
    %284 = vector.broadcast %18 : vector<2x1x64xf32> to vector<2x16x64xf32>
    %285 = arith.mulf %283, %284 : vector<2x16x64xf32>
    %286 = vector.extract_strided_slice %275 {offsets = [0, 0, 256], sizes = [2, 16, 64], strides = [1, 1, 1]} : vector<2x16x320xf32> to vector<2x16x64xf32>
    %287 = vector.broadcast %19 : vector<2x1x64xf32> to vector<2x16x64xf32>
    %288 = arith.mulf %286, %287 : vector<2x16x64xf32>
    %289 = arith.addf %285, %288 : vector<2x16x64xf32>
    %290 = vector.shape_cast %282 : vector<2x16x64xf32> to vector<32x64xf32>
    %291 = vector.shape_cast %289 : vector<2x16x64xf32> to vector<32x64xf32>
    %292 = vector.extract_strided_slice %275 {offsets = [0, 0, 128], sizes = [2, 16, 64], strides = [1, 1, 1]} : vector<2x16x320xf32> to vector<2x16x64xf32>
    %293 = vector.shape_cast %292 : vector<2x16x64xf32> to vector<32x64xf32>
    %294 = vector.extract_strided_slice %290 {offsets = [0, 0], sizes = [32, 16], strides = [1, 1]} : vector<32x64xf32> to vector<32x16xf32>
    %295 = arith.truncf %294 : vector<32x16xf32> to vector<32x16xbf16>
    %296 = vector.extract_strided_slice %291 {offsets = [0, 0], sizes = [32, 16], strides = [1, 1]} : vector<32x64xf32> to vector<32x16xf32>
    %297 = arith.truncf %296 : vector<32x16xf32> to vector<32x16xbf16>
    %298 = vector.extract_strided_slice %293 {offsets = [0, 0], sizes = [32, 16], strides = [1, 1]} : vector<32x64xf32> to vector<32x16xf32>
    %299 = arith.truncf %298 : vector<32x16xf32> to vector<32x16xbf16>
    "tpu.trace_start"() <{level = 10 : i32, message = "qd,kd->qk"}> : () -> ()
    %cst_102 = arith.constant dense<0.000000e+00> : vector<32x32xf32>
    %300 = tpu.matmul %295, %297, %cst_102 {dimension_numbers = #tpu.dot_dimension_numbers<[1], [1], [0], [0], [0, 0, 1, 0], [], []>} : vector<32x16xbf16>, vector<32x16xbf16>, vector<32x32xf32> -> vector<32x32xf32>
    "tpu.trace_stop"() : () -> ()
    %cst_103 = arith.constant 2.500000e-01 : f32
    %301 = vector.broadcast %cst_103 : f32 to vector<32x32xf32>
    %302 = arith.mulf %300, %301 : vector<32x32xf32>
    %303 = arith.addf %302, %243 : vector<32x32xf32>
    %cst_104 = arith.constant dense<0xFF800000> : vector<32xf32>
    %304 = vector.multi_reduction <maximumf>, %303, %cst_104 [1] : vector<32x32xf32> to vector<32xf32>
    %305 = vector.shape_cast %304 : vector<32xf32> to vector<32x1xf32>
    %306 = vector.broadcast %305 : vector<32x1xf32> to vector<32x32xf32>
    %307 = arith.subf %303, %306 : vector<32x32xf32>
    %308 = math.exp %307 : vector<32x32xf32>
    %cst_105 = arith.constant dense<0.000000e+00> : vector<32xf32>
    %309 = vector.multi_reduction <add>, %308, %cst_105 [1] : vector<32x32xf32> to vector<32xf32>
    %310 = vector.shape_cast %309 : vector<32xf32> to vector<32x1xf32>
    %311 = tpu.reciprocal %310 {approx = true} : vector<32x1xf32> -> vector<32x1xf32>
    %312 = vector.broadcast %311 : vector<32x1xf32> to vector<32x32xf32>
    %313 = arith.mulf %308, %312 : vector<32x32xf32>
    %314 = arith.truncf %313 : vector<32x32xf32> to vector<32x32xbf16>
    %cst_106 = arith.constant dense<0.000000e+00> : vector<32x16xf32>
    %315 = tpu.matmul %314, %299, %cst_106 {dimension_numbers = #tpu.dot_dimension_numbers<[1], [0], [0], [1], [0, 0, 1, 1], [], []>} : vector<32x32xbf16>, vector<32x16xbf16>, vector<32x16xf32> -> vector<32x16xf32>
    %316 = vector.extract_strided_slice %290 {offsets = [0, 16], sizes = [32, 16], strides = [1, 1]} : vector<32x64xf32> to vector<32x16xf32>
    %317 = arith.truncf %316 : vector<32x16xf32> to vector<32x16xbf16>
    %318 = vector.extract_strided_slice %291 {offsets = [0, 16], sizes = [32, 16], strides = [1, 1]} : vector<32x64xf32> to vector<32x16xf32>
    %319 = arith.truncf %318 : vector<32x16xf32> to vector<32x16xbf16>
    %320 = vector.extract_strided_slice %293 {offsets = [0, 16], sizes = [32, 16], strides = [1, 1]} : vector<32x64xf32> to vector<32x16xf32>
    %321 = arith.truncf %320 : vector<32x16xf32> to vector<32x16xbf16>
    "tpu.trace_start"() <{level = 10 : i32, message = "qd,kd->qk"}> : () -> ()
    %cst_107 = arith.constant dense<0.000000e+00> : vector<32x32xf32>
    %322 = tpu.matmul %317, %319, %cst_107 {dimension_numbers = #tpu.dot_dimension_numbers<[1], [1], [0], [0], [0, 0, 1, 0], [], []>} : vector<32x16xbf16>, vector<32x16xbf16>, vector<32x32xf32> -> vector<32x32xf32>
    "tpu.trace_stop"() : () -> ()
    %cst_108 = arith.constant 2.500000e-01 : f32
    %323 = vector.broadcast %cst_108 : f32 to vector<32x32xf32>
    %324 = arith.mulf %322, %323 : vector<32x32xf32>
    %325 = arith.addf %324, %243 : vector<32x32xf32>
    %cst_109 = arith.constant dense<0xFF800000> : vector<32xf32>
    %326 = vector.multi_reduction <maximumf>, %325, %cst_109 [1] : vector<32x32xf32> to vector<32xf32>
    %327 = vector.shape_cast %326 : vector<32xf32> to vector<32x1xf32>
    %328 = vector.broadcast %327 : vector<32x1xf32> to vector<32x32xf32>
    %329 = arith.subf %325, %328 : vector<32x32xf32>
    %330 = math.exp %329 : vector<32x32xf32>
    %cst_110 = arith.constant dense<0.000000e+00> : vector<32xf32>
    %331 = vector.multi_reduction <add>, %330, %cst_110 [1] : vector<32x32xf32> to vector<32xf32>
    %332 = vector.shape_cast %331 : vector<32xf32> to vector<32x1xf32>
    %333 = tpu.reciprocal %332 {approx = true} : vector<32x1xf32> -> vector<32x1xf32>
    %334 = vector.broadcast %333 : vector<32x1xf32> to vector<32x32xf32>
    %335 = arith.mulf %330, %334 : vector<32x32xf32>
    %336 = arith.truncf %335 : vector<32x32xf32> to vector<32x32xbf16>
    %cst_111 = arith.constant dense<0.000000e+00> : vector<32x16xf32>
    %337 = tpu.matmul %336, %321, %cst_111 {dimension_numbers = #tpu.dot_dimension_numbers<[1], [0], [0], [1], [0, 0, 1, 1], [], []>} : vector<32x32xbf16>, vector<32x16xbf16>, vector<32x16xf32> -> vector<32x16xf32>
    %338 = vector.extract_strided_slice %290 {offsets = [0, 32], sizes = [32, 16], strides = [1, 1]} : vector<32x64xf32> to vector<32x16xf32>
    %339 = arith.truncf %338 : vector<32x16xf32> to vector<32x16xbf16>
    %340 = vector.extract_strided_slice %291 {offsets = [0, 32], sizes = [32, 16], strides = [1, 1]} : vector<32x64xf32> to vector<32x16xf32>
    %341 = arith.truncf %340 : vector<32x16xf32> to vector<32x16xbf16>
    %342 = vector.extract_strided_slice %293 {offsets = [0, 32], sizes = [32, 16], strides = [1, 1]} : vector<32x64xf32> to vector<32x16xf32>
    %343 = arith.truncf %342 : vector<32x16xf32> to vector<32x16xbf16>
    "tpu.trace_start"() <{level = 10 : i32, message = "qd,kd->qk"}> : () -> ()
    %cst_112 = arith.constant dense<0.000000e+00> : vector<32x32xf32>
    %344 = tpu.matmul %339, %341, %cst_112 {dimension_numbers = #tpu.dot_dimension_numbers<[1], [1], [0], [0], [0, 0, 1, 0], [], []>} : vector<32x16xbf16>, vector<32x16xbf16>, vector<32x32xf32> -> vector<32x32xf32>
    "tpu.trace_stop"() : () -> ()
    %cst_113 = arith.constant 2.500000e-01 : f32
    %345 = vector.broadcast %cst_113 : f32 to vector<32x32xf32>
    %346 = arith.mulf %344, %345 : vector<32x32xf32>
    %347 = arith.addf %346, %243 : vector<32x32xf32>
    %cst_114 = arith.constant dense<0xFF800000> : vector<32xf32>
    %348 = vector.multi_reduction <maximumf>, %347, %cst_114 [1] : vector<32x32xf32> to vector<32xf32>
    %349 = vector.shape_cast %348 : vector<32xf32> to vector<32x1xf32>
    %350 = vector.broadcast %349 : vector<32x1xf32> to vector<32x32xf32>
    %351 = arith.subf %347, %350 : vector<32x32xf32>
    %352 = math.exp %351 : vector<32x32xf32>
    %cst_115 = arith.constant dense<0.000000e+00> : vector<32xf32>
    %353 = vector.multi_reduction <add>, %352, %cst_115 [1] : vector<32x32xf32> to vector<32xf32>
    %354 = vector.shape_cast %353 : vector<32xf32> to vector<32x1xf32>
    %355 = tpu.reciprocal %354 {approx = true} : vector<32x1xf32> -> vector<32x1xf32>
    %356 = vector.broadcast %355 : vector<32x1xf32> to vector<32x32xf32>
    %357 = arith.mulf %352, %356 : vector<32x32xf32>
    %358 = arith.truncf %357 : vector<32x32xf32> to vector<32x32xbf16>
    %cst_116 = arith.constant dense<0.000000e+00> : vector<32x16xf32>
    %359 = tpu.matmul %358, %343, %cst_116 {dimension_numbers = #tpu.dot_dimension_numbers<[1], [0], [0], [1], [0, 0, 1, 1], [], []>} : vector<32x32xbf16>, vector<32x16xbf16>, vector<32x16xf32> -> vector<32x16xf32>
    %360 = vector.extract_strided_slice %290 {offsets = [0, 48], sizes = [32, 16], strides = [1, 1]} : vector<32x64xf32> to vector<32x16xf32>
    %361 = arith.truncf %360 : vector<32x16xf32> to vector<32x16xbf16>
    %362 = vector.extract_strided_slice %291 {offsets = [0, 48], sizes = [32, 16], strides = [1, 1]} : vector<32x64xf32> to vector<32x16xf32>
    %363 = arith.truncf %362 : vector<32x16xf32> to vector<32x16xbf16>
    %364 = vector.extract_strided_slice %293 {offsets = [0, 48], sizes = [32, 16], strides = [1, 1]} : vector<32x64xf32> to vector<32x16xf32>
    %365 = arith.truncf %364 : vector<32x16xf32> to vector<32x16xbf16>
    "tpu.trace_start"() <{level = 10 : i32, message = "qd,kd->qk"}> : () -> ()
    %cst_117 = arith.constant dense<0.000000e+00> : vector<32x32xf32>
    %366 = tpu.matmul %361, %363, %cst_117 {dimension_numbers = #tpu.dot_dimension_numbers<[1], [1], [0], [0], [0, 0, 1, 0], [], []>} : vector<32x16xbf16>, vector<32x16xbf16>, vector<32x32xf32> -> vector<32x32xf32>
    "tpu.trace_stop"() : () -> ()
    %cst_118 = arith.constant 2.500000e-01 : f32
    %367 = vector.broadcast %cst_118 : f32 to vector<32x32xf32>
    %368 = arith.mulf %366, %367 : vector<32x32xf32>
    %369 = arith.addf %368, %243 : vector<32x32xf32>
    %cst_119 = arith.constant dense<0xFF800000> : vector<32xf32>
    %370 = vector.multi_reduction <maximumf>, %369, %cst_119 [1] : vector<32x32xf32> to vector<32xf32>
    %371 = vector.shape_cast %370 : vector<32xf32> to vector<32x1xf32>
    %372 = vector.broadcast %371 : vector<32x1xf32> to vector<32x32xf32>
    %373 = arith.subf %369, %372 : vector<32x32xf32>
    %374 = math.exp %373 : vector<32x32xf32>
    %cst_120 = arith.constant dense<0.000000e+00> : vector<32xf32>
    %375 = vector.multi_reduction <add>, %374, %cst_120 [1] : vector<32x32xf32> to vector<32xf32>
    %376 = vector.shape_cast %375 : vector<32xf32> to vector<32x1xf32>
    %377 = tpu.reciprocal %376 {approx = true} : vector<32x1xf32> -> vector<32x1xf32>
    %378 = vector.broadcast %377 : vector<32x1xf32> to vector<32x32xf32>
    %379 = arith.mulf %374, %378 : vector<32x32xf32>
    %380 = arith.truncf %379 : vector<32x32xf32> to vector<32x32xbf16>
    %cst_121 = arith.constant dense<0.000000e+00> : vector<32x16xf32>
    %381 = tpu.matmul %380, %365, %cst_121 {dimension_numbers = #tpu.dot_dimension_numbers<[1], [0], [0], [1], [0, 0, 1, 1], [], []>} : vector<32x32xbf16>, vector<32x16xbf16>, vector<32x16xf32> -> vector<32x16xf32>
    %382 = tpu.concatenate %315, %337, %359, %381 in 1 : vector<32x16xf32>, vector<32x16xf32>, vector<32x16xf32>, vector<32x16xf32> -> vector<32x64xf32>
    %383 = arith.truncf %382 : vector<32x64xf32> to vector<32x64xbf16>
    %c0_122 = arith.constant 0 : index
    %c1_123 = arith.constant 1 : index
    %c0_124 = arith.constant 0 : index
    %c0_125 = arith.constant 0 : index
    %384 = vector.load %arg12[%c0_122, %c1_123, %c0_124, %c0_125] : memref<1x2x64x64xbf16, #tpu.memory_space<vmem>>, vector<1x1x64x64xbf16>
    %385 = vector.shape_cast %384 : vector<1x1x64x64xbf16> to vector<64x64xbf16>
    %cst_126 = arith.constant dense<0.000000e+00> : vector<32x64xf32>
    %386 = tpu.matmul %383, %385, %cst_126 {dimension_numbers = #tpu.dot_dimension_numbers<[1], [0], [0], [1], [0, 0, 1, 1], [], []>} : vector<32x64xbf16>, vector<64x64xbf16>, vector<32x64xf32> -> vector<32x64xf32>
    %c0_127 = arith.constant 0 : index
    %c1_128 = arith.constant 1 : index
    %c0_129 = arith.constant 0 : index
    %c0_130 = arith.constant 0 : index
    %387 = vector.load %arg13[%c0_127, %c1_128, %c0_129, %c0_130] : memref<1x2x1x64xf32, #tpu.memory_space<vmem>>, vector<1x1x1x64xf32>
    %388 = vector.shape_cast %387 : vector<1x1x1x64xf32> to vector<1x64xf32>
    %389 = vector.broadcast %388 : vector<1x64xf32> to vector<32x64xf32>
    %390 = arith.addf %386, %389 : vector<32x64xf32>
    %391 = vector.shape_cast %242 : vector<2x64xf32> to vector<2x1x64xf32>
    %392 = vector.shape_cast %390 : vector<32x64xf32> to vector<2x16x64xf32>
    %393 = vector.broadcast %391 : vector<2x1x64xf32> to vector<2x16x64xf32>
    %394 = arith.mulf %393, %392 : vector<2x16x64xf32>
    %395 = arith.addf %239, %394 : vector<2x16x64xf32>
    %396 = vector.extract_strided_slice %11 {offsets = [0, 576], sizes = [2, 64], strides = [1, 1]} : vector<2x768xf32> to vector<2x64xf32>
    %397 = vector.extract_strided_slice %11 {offsets = [0, 640], sizes = [2, 64], strides = [1, 1]} : vector<2x768xf32> to vector<2x64xf32>
    %398 = vector.extract_strided_slice %11 {offsets = [0, 704], sizes = [2, 64], strides = [1, 1]} : vector<2x768xf32> to vector<2x64xf32>
    %cst_131 = arith.constant dense<0.000000e+00> : vector<2x16xf32>
    %399 = vector.multi_reduction <add>, %395, %cst_131 [2] : vector<2x16x64xf32> to vector<2x16xf32>
    %400 = vector.shape_cast %399 : vector<2x16xf32> to vector<2x16x1xf32>
    %cst_132 = arith.constant 6.400000e+01 : f32
    %401 = vector.broadcast %cst_132 : f32 to vector<2x16x1xf32>
    %402 = arith.divf %400, %401 : vector<2x16x1xf32>
    %403 = vector.broadcast %402 : vector<2x16x1xf32> to vector<2x16x64xf32>
    %404 = arith.subf %395, %403 : vector<2x16x64xf32>
    %405 = arith.mulf %404, %404 : vector<2x16x64xf32>
    %cst_133 = arith.constant dense<0.000000e+00> : vector<2x16xf32>
    %406 = vector.multi_reduction <add>, %405, %cst_133 [2] : vector<2x16x64xf32> to vector<2x16xf32>
    %407 = vector.shape_cast %406 : vector<2x16xf32> to vector<2x16x1xf32>
    %cst_134 = arith.constant 6.400000e+01 : f32
    %408 = vector.broadcast %cst_134 : f32 to vector<2x16x1xf32>
    %409 = arith.divf %407, %408 : vector<2x16x1xf32>
    %410 = vector.broadcast %402 : vector<2x16x1xf32> to vector<2x16x64xf32>
    %411 = arith.subf %395, %410 : vector<2x16x64xf32>
    %cst_135 = arith.constant 9.99999997E-7 : f32
    %412 = vector.broadcast %cst_135 : f32 to vector<2x16x1xf32>
    %413 = arith.addf %409, %412 : vector<2x16x1xf32>
    %414 = math.rsqrt %413 : vector<2x16x1xf32>
    %415 = vector.broadcast %414 : vector<2x16x1xf32> to vector<2x16x64xf32>
    %416 = arith.mulf %411, %415 : vector<2x16x64xf32>
    %417 = vector.shape_cast %397 : vector<2x64xf32> to vector<2x1x64xf32>
    %cst_136 = arith.constant 1.000000e+00 : f32
    %418 = vector.broadcast %cst_136 : f32 to vector<2x1x64xf32>
    %419 = arith.addf %418, %417 : vector<2x1x64xf32>
    %420 = vector.broadcast %419 : vector<2x1x64xf32> to vector<2x16x64xf32>
    %421 = arith.mulf %416, %420 : vector<2x16x64xf32>
    %422 = vector.shape_cast %396 : vector<2x64xf32> to vector<2x1x64xf32>
    %423 = vector.broadcast %422 : vector<2x1x64xf32> to vector<2x16x64xf32>
    %424 = arith.addf %421, %423 : vector<2x16x64xf32>
    %425 = vector.shape_cast %424 : vector<2x16x64xf32> to vector<32x64xf32>
    %426 = arith.truncf %425 : vector<32x64xf32> to vector<32x64xbf16>
    %c0_137 = arith.constant 0 : index
    %c1_138 = arith.constant 1 : index
    %c0_139 = arith.constant 0 : index
    %c0_140 = arith.constant 0 : index
    %427 = vector.load %arg14[%c0_137, %c1_138, %c0_139, %c0_140] : memref<1x2x64x256xbf16, #tpu.memory_space<vmem>>, vector<1x1x64x256xbf16>
    %428 = vector.shape_cast %427 : vector<1x1x64x256xbf16> to vector<64x256xbf16>
    %cst_141 = arith.constant dense<0.000000e+00> : vector<32x256xf32>
    %429 = tpu.matmul %426, %428, %cst_141 {dimension_numbers = #tpu.dot_dimension_numbers<[1], [0], [0], [1], [0, 0, 1, 1], [], []>} : vector<32x64xbf16>, vector<64x256xbf16>, vector<32x256xf32> -> vector<32x256xf32>
    %c0_142 = arith.constant 0 : index
    %c1_143 = arith.constant 1 : index
    %c0_144 = arith.constant 0 : index
    %c0_145 = arith.constant 0 : index
    %430 = vector.load %arg15[%c0_142, %c1_143, %c0_144, %c0_145] : memref<1x2x1x256xf32, #tpu.memory_space<vmem>>, vector<1x1x1x256xf32>
    %431 = vector.shape_cast %430 : vector<1x1x1x256xf32> to vector<1x256xf32>
    %432 = vector.broadcast %431 : vector<1x256xf32> to vector<32x256xf32>
    %433 = arith.addf %429, %432 : vector<32x256xf32>
    %434 = arith.mulf %433, %433 : vector<32x256xf32>
    %435 = arith.mulf %433, %434 : vector<32x256xf32>
    %cst_146 = arith.constant 4.471500e-02 : f32
    %436 = vector.broadcast %cst_146 : f32 to vector<32x256xf32>
    %437 = arith.mulf %436, %435 : vector<32x256xf32>
    %438 = arith.addf %433, %437 : vector<32x256xf32>
    %cst_147 = arith.constant 0.797884583 : f32
    %439 = vector.broadcast %cst_147 : f32 to vector<32x256xf32>
    %440 = arith.mulf %439, %438 : vector<32x256xf32>
    %441 = math.tanh %440 : vector<32x256xf32>
    %cst_148 = arith.constant 1.000000e+00 : f32
    %442 = vector.broadcast %cst_148 : f32 to vector<32x256xf32>
    %443 = arith.addf %442, %441 : vector<32x256xf32>
    %cst_149 = arith.constant 5.000000e-01 : f32
    %444 = vector.broadcast %cst_149 : f32 to vector<32x256xf32>
    %445 = arith.mulf %444, %443 : vector<32x256xf32>
    %446 = arith.mulf %433, %445 : vector<32x256xf32>
    %447 = arith.truncf %446 : vector<32x256xf32> to vector<32x256xbf16>
    %c0_150 = arith.constant 0 : index
    %c1_151 = arith.constant 1 : index
    %c0_152 = arith.constant 0 : index
    %c0_153 = arith.constant 0 : index
    %448 = vector.load %arg16[%c0_150, %c1_151, %c0_152, %c0_153] : memref<1x2x256x64xbf16, #tpu.memory_space<vmem>>, vector<1x1x256x64xbf16>
    %449 = vector.shape_cast %448 : vector<1x1x256x64xbf16> to vector<256x64xbf16>
    %cst_154 = arith.constant dense<0.000000e+00> : vector<32x64xf32>
    %450 = tpu.matmul %447, %449, %cst_154 {dimension_numbers = #tpu.dot_dimension_numbers<[1], [0], [0], [1], [0, 0, 1, 1], [], []>} : vector<32x256xbf16>, vector<256x64xbf16>, vector<32x64xf32> -> vector<32x64xf32>
    %c0_155 = arith.constant 0 : index
    %c1_156 = arith.constant 1 : index
    %c0_157 = arith.constant 0 : index
    %c0_158 = arith.constant 0 : index
    %451 = vector.load %arg17[%c0_155, %c1_156, %c0_157, %c0_158] : memref<1x2x1x64xf32, #tpu.memory_space<vmem>>, vector<1x1x1x64xf32>
    %452 = vector.shape_cast %451 : vector<1x1x1x64xf32> to vector<1x64xf32>
    %453 = vector.broadcast %452 : vector<1x64xf32> to vector<32x64xf32>
    %454 = arith.addf %450, %453 : vector<32x64xf32>
    %455 = vector.shape_cast %398 : vector<2x64xf32> to vector<2x1x64xf32>
    %456 = vector.shape_cast %454 : vector<32x64xf32> to vector<2x16x64xf32>
    %457 = vector.broadcast %455 : vector<2x1x64xf32> to vector<2x16x64xf32>
    %458 = arith.mulf %457, %456 : vector<2x16x64xf32>
    %459 = arith.addf %395, %458 : vector<2x16x64xf32>
    %460 = vector.shape_cast %459 : vector<2x16x64xf32> to vector<32x64xf32>
    %c0_159 = arith.constant 0 : index
    %c0_160 = arith.constant 0 : index
    %461 = vector.load %arg29[%c0_159, %c0_160] : memref<32x64xf32, #tpu.memory_space<vmem>>, vector<32x64xf32>
    tpu.vector_store %arg29[%c0_159, %c0_160], %460 {strides = array<i32>} : memref<32x64xf32, #tpu.memory_space<vmem>>, vector<32x64xf32>,
    %c1_i32 = arith.constant 1 : i32
    %462 = arith.cmpi eq, %arg0, %c1_i32 : i32
    %463 = arith.extui %462 : i1 to i32
    %c0_i32_161 = arith.constant 0 : i32
    %464 = arith.cmpi ne, %463, %c0_i32_161 : i32
    scf.if %464 {
      %465 = arith.truncf %3 : vector<2x64xf32> to vector<2x64xbf16>
      %c0_162 = arith.constant 0 : index
      %c0_163 = arith.constant 0 : index
      %466 = vector.load %arg24[%c0_162, %c0_163] : memref<64x128xbf16, #tpu.memory_space<vmem>>, vector<64x128xbf16>
      %cst_164 = arith.constant dense<0.000000e+00> : vector<2x128xf32>
      %467 = tpu.matmul %465, %466, %cst_164 {dimension_numbers = #tpu.dot_dimension_numbers<[1], [0], [0], [1], [0, 0, 1, 1], [], []>} : vector<2x64xbf16>, vector<64x128xbf16>, vector<2x128xf32> -> vector<2x128xf32>
      %c0_165 = arith.constant 0 : index
      %c0_166 = arith.constant 0 : index
      %468 = vector.load %arg25[%c0_165, %c0_166] : memref<1x128xf32, #tpu.memory_space<vmem>>, vector<1x128xf32>
      %469 = vector.broadcast %468 : vector<1x128xf32> to vector<2x128xf32>
      %470 = arith.addf %467, %469 : vector<2x128xf32>
      %471 = vector.extract_strided_slice %470 {offsets = [0, 0], sizes = [2, 64], strides = [1, 1]} : vector<2x128xf32> to vector<2x64xf32>
      %472 = vector.extract_strided_slice %470 {offsets = [0, 64], sizes = [2, 64], strides = [1, 1]} : vector<2x128xf32> to vector<2x64xf32>
      %cst_167 = arith.constant dense<0.000000e+00> : vector<2x16xf32>
      %473 = vector.multi_reduction <add>, %459, %cst_167 [2] : vector<2x16x64xf32> to vector<2x16xf32>
      %474 = vector.shape_cast %473 : vector<2x16xf32> to vector<2x16x1xf32>
      %cst_168 = arith.constant 6.400000e+01 : f32
      %475 = vector.broadcast %cst_168 : f32 to vector<2x16x1xf32>
      %476 = arith.divf %474, %475 : vector<2x16x1xf32>
      %477 = vector.broadcast %476 : vector<2x16x1xf32> to vector<2x16x64xf32>
      %478 = arith.subf %459, %477 : vector<2x16x64xf32>
      %479 = arith.mulf %478, %478 : vector<2x16x64xf32>
      %cst_169 = arith.constant dense<0.000000e+00> : vector<2x16xf32>
      %480 = vector.multi_reduction <add>, %479, %cst_169 [2] : vector<2x16x64xf32> to vector<2x16xf32>
      %481 = vector.shape_cast %480 : vector<2x16xf32> to vector<2x16x1xf32>
      %cst_170 = arith.constant 6.400000e+01 : f32
      %482 = vector.broadcast %cst_170 : f32 to vector<2x16x1xf32>
      %483 = arith.divf %481, %482 : vector<2x16x1xf32>
      %484 = vector.broadcast %476 : vector<2x16x1xf32> to vector<2x16x64xf32>
      %485 = arith.subf %459, %484 : vector<2x16x64xf32>
      %cst_171 = arith.constant 9.99999997E-7 : f32
      %486 = vector.broadcast %cst_171 : f32 to vector<2x16x1xf32>
      %487 = arith.addf %483, %486 : vector<2x16x1xf32>
      %488 = math.rsqrt %487 : vector<2x16x1xf32>
      %489 = vector.broadcast %488 : vector<2x16x1xf32> to vector<2x16x64xf32>
      %490 = arith.mulf %485, %489 : vector<2x16x64xf32>
      %491 = vector.shape_cast %472 : vector<2x64xf32> to vector<2x1x64xf32>
      %cst_172 = arith.constant 1.000000e+00 : f32
      %492 = vector.broadcast %cst_172 : f32 to vector<2x1x64xf32>
      %493 = arith.addf %492, %491 : vector<2x1x64xf32>
      %494 = vector.broadcast %493 : vector<2x1x64xf32> to vector<2x16x64xf32>
      %495 = arith.mulf %490, %494 : vector<2x16x64xf32>
      %496 = vector.shape_cast %471 : vector<2x64xf32> to vector<2x1x64xf32>
      %497 = vector.broadcast %496 : vector<2x1x64xf32> to vector<2x16x64xf32>
      %498 = arith.addf %495, %497 : vector<2x16x64xf32>
      %499 = vector.shape_cast %498 : vector<2x16x64xf32> to vector<32x64xf32>
      %500 = arith.truncf %499 : vector<32x64xf32> to vector<32x64xbf16>
      %c0_173 = arith.constant 0 : index
      %c0_174 = arith.constant 0 : index
      %501 = vector.load %arg26[%c0_173, %c0_174] : memref<64x16xbf16, #tpu.memory_space<vmem>>, vector<64x16xbf16>
      %cst_175 = arith.constant dense<0.000000e+00> : vector<32x16xf32>
      %502 = tpu.matmul %500, %501, %cst_175 {dimension_numbers = #tpu.dot_dimension_numbers<[1], [0], [0], [1], [0, 0, 1, 1], [], []>} : vector<32x64xbf16>, vector<64x16xbf16>, vector<32x16xf32> -> vector<32x16xf32>
      %c0_176 = arith.constant 0 : index
      %c0_177 = arith.constant 0 : index
      %503 = vector.load %arg27[%c0_176, %c0_177] : memref<1x16xf32, #tpu.memory_space<vmem>>, vector<1x16xf32>
      %504 = vector.broadcast %503 : vector<1x16xf32> to vector<32x16xf32>
      %505 = arith.addf %502, %504 : vector<32x16xf32>
      %c0_178 = arith.constant 0 : index
      %c0_179 = arith.constant 0 : index
      %506 = vector.load %arg28[%c0_178, %c0_179] : memref<32x16xf32, #tpu.memory_space<vmem>>, vector<32x16xf32>
      tpu.vector_store %arg28[%c0_178, %c0_179], %505 {strides = array<i32>} : memref<32x16xf32, #tpu.memory_space<vmem>>, vector<32x16xf32>,
    } else {
    }
    return
  }
  func.func @transform_0(%arg0: i32) -> (i32, i32) {
    %c0_i32 = arith.constant 0 : i32
    %c0_i32_0 = arith.constant 0 : i32
    %c0_i32_1 = arith.constant 0 : i32
    return %c0_i32, %c0_i32_0 : i32, i32
  }
  func.func @transform_1(%arg0: i32) -> (i32, i32) {
    %c0_i32 = arith.constant 0 : i32
    %c0_i32_0 = arith.constant 0 : i32
    %c0_i32_1 = arith.constant 0 : i32
    return %c0_i32, %c0_i32_0 : i32, i32
  }
  func.func @transform_2(%arg0: i32) -> (i32, i32) {
    %c0_i32 = arith.constant 0 : i32
    %c0_i32_0 = arith.constant 0 : i32
    %c0_i32_1 = arith.constant 0 : i32
    return %c0_i32, %c0_i32_0 : i32, i32
  }
  func.func @transform_3(%arg0: i32) -> (i32, i32) {
    %c0_i32 = arith.constant 0 : i32
    %c0_i32_0 = arith.constant 0 : i32
    %c0_i32_1 = arith.constant 0 : i32
    return %c0_i32, %c0_i32_0 : i32, i32
  }
  func.func @transform_4(%arg0: i32) -> (i32, i32) {
    %c0_i32 = arith.constant 0 : i32
    %c0_i32_0 = arith.constant 0 : i32
    %c0_i32_1 = arith.constant 0 : i32
    return %c0_i32, %c0_i32_0 : i32, i32
  }
  func.func @transform_5(%arg0: i32) -> (i32, i32) {
    %c0_i32 = arith.constant 0 : i32
    %c0_i32_0 = arith.constant 0 : i32
    %c0_i32_1 = arith.constant 0 : i32
    return %c0_i32, %c0_i32_0 : i32, i32
  }
  func.func @transform_6(%arg0: i32) -> (i32, i32) {
    %c0_i32 = arith.constant 0 : i32
    %c0_i32_0 = arith.constant 0 : i32
    %c0_i32_1 = arith.constant 0 : i32
    return %c0_i32, %c0_i32_0 : i32, i32
  }
  func.func @transform_7(%arg0: i32) -> (i32, i32) {
    %c0_i32 = arith.constant 0 : i32
    %c0_i32_0 = arith.constant 0 : i32
    %c0_i32_1 = arith.constant 0 : i32
    return %c0_i32, %c0_i32_0 : i32, i32
  }
  func.func @transform_8(%arg0: i32) -> (i32, i32, i32) {
    %c0_i32 = arith.constant 0 : i32
    %c0_i32_0 = arith.constant 0 : i32
    %c0_i32_1 = arith.constant 0 : i32
    return %arg0, %c0_i32, %c0_i32_0 : i32, i32, i32
  }
  func.func @transform_9(%arg0: i32) -> (i32, i32, i32) {
    %c0_i32 = arith.constant 0 : i32
    %c0_i32_0 = arith.constant 0 : i32
    %c0_i32_1 = arith.constant 0 : i32
    return %arg0, %c0_i32, %c0_i32_0 : i32, i32, i32
  }
  func.func @transform_10(%arg0: i32) -> (i32, i32, i32, i32) {
    %c0_i32 = arith.constant 0 : i32
    %c0_i32_0 = arith.constant 0 : i32
    %c0_i32_1 = arith.constant 0 : i32
    %c0_i32_2 = arith.constant 0 : i32
    return %arg0, %c0_i32, %c0_i32_0, %c0_i32_1 : i32, i32, i32, i32
  }
  func.func @transform_11(%arg0: i32) -> (i32, i32, i32, i32) {
    %c0_i32 = arith.constant 0 : i32
    %c0_i32_0 = arith.constant 0 : i32
    %c0_i32_1 = arith.constant 0 : i32
    %c0_i32_2 = arith.constant 0 : i32
    return %arg0, %c0_i32, %c0_i32_0, %c0_i32_1 : i32, i32, i32, i32
  }
  func.func @transform_12(%arg0: i32) -> (i32, i32, i32, i32) {
    %c0_i32 = arith.constant 0 : i32
    %c0_i32_0 = arith.constant 0 : i32
    %c0_i32_1 = arith.constant 0 : i32
    %c0_i32_2 = arith.constant 0 : i32
    return %arg0, %c0_i32, %c0_i32_0, %c0_i32_1 : i32, i32, i32, i32
  }
  func.func @transform_13(%arg0: i32) -> (i32, i32, i32, i32) {
    %c0_i32 = arith.constant 0 : i32
    %c0_i32_0 = arith.constant 0 : i32
    %c0_i32_1 = arith.constant 0 : i32
    %c0_i32_2 = arith.constant 0 : i32
    return %arg0, %c0_i32, %c0_i32_0, %c0_i32_1 : i32, i32, i32, i32
  }
  func.func @transform_14(%arg0: i32) -> (i32, i32, i32, i32) {
    %c0_i32 = arith.constant 0 : i32
    %c0_i32_0 = arith.constant 0 : i32
    %c0_i32_1 = arith.constant 0 : i32
    %c0_i32_2 = arith.constant 0 : i32
    return %arg0, %c0_i32, %c0_i32_0, %c0_i32_1 : i32, i32, i32, i32
  }
  func.func @transform_15(%arg0: i32) -> (i32, i32, i32, i32) {
    %c0_i32 = arith.constant 0 : i32
    %c0_i32_0 = arith.constant 0 : i32
    %c0_i32_1 = arith.constant 0 : i32
    %c0_i32_2 = arith.constant 0 : i32
    return %arg0, %c0_i32, %c0_i32_0, %c0_i32_1 : i32, i32, i32, i32
  }
  func.func @transform_16(%arg0: i32) -> (i32, i32, i32, i32) {
    %c0_i32 = arith.constant 0 : i32
    %c0_i32_0 = arith.constant 0 : i32
    %c0_i32_1 = arith.constant 0 : i32
    %c0_i32_2 = arith.constant 0 : i32
    return %arg0, %c0_i32, %c0_i32_0, %c0_i32_1 : i32, i32, i32, i32
  }
  func.func @transform_17(%arg0: i32) -> (i32, i32) {
    %c0_i32 = arith.constant 0 : i32
    %c0_i32_0 = arith.constant 0 : i32
    %c0_i32_1 = arith.constant 0 : i32
    return %c0_i32, %c0_i32_0 : i32, i32
  }
  func.func @transform_18(%arg0: i32) -> (i32, i32) {
    %c0_i32 = arith.constant 0 : i32
    %c0_i32_0 = arith.constant 0 : i32
    %c0_i32_1 = arith.constant 0 : i32
    return %c0_i32, %c0_i32_0 : i32, i32
  }
  func.func @transform_19(%arg0: i32) -> (i32, i32, i32) {
    %c0_i32 = arith.constant 0 : i32
    %c0_i32_0 = arith.constant 0 : i32
    %c0_i32_1 = arith.constant 0 : i32
    %c0_i32_2 = arith.constant 0 : i32
    return %c0_i32, %c0_i32_0, %c0_i32_1 : i32, i32, i32
  }
  func.func @transform_20(%arg0: i32) -> (i32, i32, i32) {
    %c0_i32 = arith.constant 0 : i32
    %c0_i32_0 = arith.constant 0 : i32
    %c0_i32_1 = arith.constant 0 : i32
    %c0_i32_2 = arith.constant 0 : i32
    return %c0_i32, %c0_i32_0, %c0_i32_1 : i32, i32, i32
  }
  func.func @transform_21(%arg0: i32) -> (i32, i32) {
    %c0_i32 = arith.constant 0 : i32
    %c0_i32_0 = arith.constant 0 : i32
    %c0_i32_1 = arith.constant 0 : i32
    return %c0_i32, %c0_i32_0 : i32, i32
  }
  func.func @transform_22(%arg0: i32) -> (i32, i32) {
    %c0_i32 = arith.constant 0 : i32
    %c0_i32_0 = arith.constant 0 : i32
    %c0_i32_1 = arith.constant 0 : i32
    return %c0_i32, %c0_i32_0 : i32, i32
  }
  func.func @transform_23(%arg0: i32) -> (i32, i32) {
    %c0_i32 = arith.constant 0 : i32
    %c0_i32_0 = arith.constant 0 : i32
    %c0_i32_1 = arith.constant 0 : i32
    return %c0_i32, %c0_i32_0 : i32, i32
  }
  func.func @transform_24(%arg0: i32) -> (i32, i32) {
    %c0_i32 = arith.constant 0 : i32
    %c0_i32_0 = arith.constant 0 : i32
    %c0_i32_1 = arith.constant 0 : i32
    return %c0_i32, %c0_i32_0 : i32, i32
  }
  func.func @transform_25(%arg0: i32) -> (i32, i32) {
    %c0_i32 = arith.constant 0 : i32
    %c0_i32_0 = arith.constant 0 : i32
    %c0_i32_1 = arith.constant 0 : i32
    return %c0_i32, %c0_i32_0 : i32, i32
  }
  func.func @transform_26(%arg0: i32) -> (i32, i32) {
    %c0_i32 = arith.constant 0 : i32
    %c0_i32_0 = arith.constant 0 : i32
    %c0_i32_1 = arith.constant 0 : i32
    return %c0_i32, %c0_i32_0 : i32, i32
  }
  func.func @transform_27(%arg0: i32) -> (i32, i32) {
    %c0_i32 = arith.constant 0 : i32
    %c0_i32_0 = arith.constant 0 : i32
    %c0_i32_1 = arith.constant 0 : i32
    return %c0_i32, %c0_i32_0 : i32, i32
  }
}

</mosaic_0001>

<bundles_post_ra>
// kernel: dit_forward.1
= control target key start
LH: loop header
LB: loop body
LE: loop exit
PB: predicated region body
PF: predicated region fallthrough
CT: control target
= control target key end

     0   :  { %s9471_s0 = inlined_call_operand.vmem [shape: f32[32,16], index: 0, kind: input, shape index: {}]   ;;  %s9472_s1 = inlined_call_operand.hbm [shape: bf16[16,64], index: 1, kind: input, shape index: {}]   ;;  %s9473_s2 = inlined_call_operand.vmem [shape: f32[1,64], index: 2, kind: input, shape index: {}]   ;;  %s9474_s3 = inlined_call_operand.vmem [shape: f32[2,256], index: 3, kind: input, shape index: {}]   ;;  %s9475_s4 = inlined_call_operand.vmem [shape: bf16[256,64], index: 4, kind: input, shape index: {}]   ;;  %s9476_s5 = inlined_call_operand.hbm [shape: f32[1,64], index: 5, kind: input, shape index: {}]   ;;  %s9477_s6 = inlined_call_operand.vmem [shape: bf16[64,64], index: 6, kind: input, shape index: {}]   ;;  %s9478_s7 = inlined_call_operand.hbm [shape: f32[1,64], index: 7, kind: input, shape index: {}]   ;;  %s9479_s8 = inlined_call_operand.vmem [shape: bf16[2,64,768], index: 8, kind: input, shape index: {}]   ;;  %s9480_s9 = inlined_call_operand.hbm [shape: f32[2,1,768], index: 9, kind: input, shape index: {}]   ;;  %s9481_s10 = inlined_call_operand.vmem [shape: bf16[2,2,64,320], index: 10, kind: input, shape index: {}]   ;;  %s9482_s11 = inlined_call_operand.vmem [shape: bf16[2,2,64,64], index: 11, kind: input, shape index: {}]   ;;  %s9483_s12 = inlined_call_operand.hbm [shape: f32[2,2,1,64], index: 12, kind: input, shape index: {}]   ;;  %s9484_s13 = inlined_call_operand.vmem [shape: bf16[2,2,64,256], index: 13, kind: input, shape index: {}]   ;;  %s9485_s14 = inlined_call_operand.hbm [shape: f32[2,2,1,256], index: 14, kind: input, shape index: {}]   ;;  %s9486_s15 = inlined_call_operand.vmem [shape: bf16[2,2,256,64], index: 15, kind: input, shape index: {}]   ;;  %s9487_s16 = inlined_call_operand.hbm [shape: f32[2,2,1,64], index: 16, kind: input, shape index: {}]   ;;  %s9488_s17 = inlined_call_operand.vmem [shape: f32[16,64], index: 17, kind: input, shape index: {}]   ;;  %s9489_s18 = inlined_call_operand.vmem [shape: f32[16,64], index: 18, kind: input, shape index: {}]   ;;  %s9490_s19 = inlined_call_operand.hbm [shape: f32[2,1,64], index: 19, kind: input, shape index: {}]   ;;  %s9491_s20 = inlined_call_operand.hbm [shape: f32[2,1,64], index: 20, kind: input, shape index: {}]   ;;  %s9492_s21 = inlined_call_operand.vmem [shape: f32[32,32], index: 21, kind: input, shape index: {}]   ;;  %s9493_s22 = inlined_call_operand.vmem [shape: f32[32,32], index: 22, kind: input, shape index: {}]   ;;  %s9494_s23 = inlined_call_operand.vmem [shape: bf16[64,128], index: 23, kind: input, shape index: {}]   ;;  %s9495_s24 = inlined_call_operand.hbm [shape: f32[1,128], index: 24, kind: input, shape index: {}]   ;;  %s9496_s25 = inlined_call_operand.vmem [shape: bf16[64,16], index: 25, kind: input, shape index: {}]   ;;  %s9497_s26 = inlined_call_operand.hbm [shape: f32[1,16], index: 26, kind: input, shape index: {}]   ;;  %s9498_s27 = inlined_call_operand.vmem [shape: f32[32,16], index: 27, kind: output, shape index: {}]  }
   0x1   :  { %9535 = sst [smem:[#allocation30_spill]] %s9471_s0 }
   0x2   :  { %9536 = sst [smem:[#allocation31_spill]] %s9472_s1 }
   0x3   :  { %9537 = sst [smem:[#allocation32_spill]] %s9473_s2 }
   0x4   :  { %9538 = sst [smem:[#allocation33_spill]] %s9474_s3 }
   0x5   :  { %9539 = sst [smem:[#allocation34_spill]] %s9475_s4 }
   0x6   :  { %9540 = sst [smem:[#allocation35_spill]] %s9476_s5 }
   0x7   :  { %9541 = sst [smem:[#allocation36_spill]] %s9477_s6 }
   0x8   :  { %9542 = sst [smem:[#allocation37_spill]] %s9478_s7 }
   0x9   :  { %9543 = sst [smem:[#allocation38_spill]] %s9479_s8 }
   0xa   :  { %9544 = sst [smem:[#allocation39_spill]] %s9480_s9 }
   0xb   :  { %9545 = sst [smem:[#allocation40_spill]] %s9481_s10 }
   0xc   :  { %9546 = sst [smem:[#allocation41_spill]] %s9482_s11 }
   0xd   :  { %9547 = sst [smem:[#allocation42_spill]] %s9483_s12 }
   0xe   :  { %9548 = sst [smem:[#allocation43_spill]] %s9485_s14 }
   0xf   :  { %9549 = sst [smem:[#allocation44_spill]] %s9488_s17 }
  0x10   :  { %9550 = sst [smem:[#allocation45_spill]] %s9489_s18 }
  0x11   :  { %9551 = sst [smem:[#allocation46_spill]] %s9490_s19 }
  0x12   :  { %9552 = sst [smem:[#allocation47_spill]] %s9492_s21 }
  0x13   :  { %9553 = sst [smem:[#allocation48_spill]] %s9493_s22 }
  0x14   :  { %9554 = sst [smem:[#allocation49_spill]] %s9494_s23 }
  0x15   :  { %9555 = sst [smem:[#allocation50_spill]] %s9495_s24 }
  0x16   :  { %9556 = sst [smem:[#allocation51_spill]] %s9496_s25 }
  0x17   :  { %9557 = sst [smem:[#allocation52_spill]] %s9498_s27 }
  0x18   :  { %32 = vsyncpa [#allocation5], 0 }
  0x19   :  { %33 = vsyncpa [#allocation7], 0 }
  0x1a   :  { %34 = vsyncpa [#allocation10], 0 }
  0x1b   :  { %36 = vsyncpa [#allocation10 + $0x1], 0 }
  0x1c   :  { %37 = vsyncpa [#allocation13], 0 }
  0x1d   :  { %39 = vsyncpa [#allocation13 + $0x1], 0 }
  0x1e   :  { %40 = vsyncpa [#allocation16], 0 }
  0x1f   :  { %41 = vsyncpa [#allocation19], 0  ;;  %s7930_s7 = smov 0   ;;  %s7932_s4 = smov 0  }
  0x20   :  { %s7934_s8 = smov 0   ;;  %s7936_s30 = smov 0  }
  0x21 LB: > { %9558 = sst [smem:[#allocation27_spill]] %s7753_s8  ;;  %s7759_s9 = smov [#allocation6]   ;;  %s7757_s30 = sphi %s7936_s30, %s9614_s30   ;;  %s7753_s8 = sphi %s7934_s8, %s9616_s8   ;;  %s7749_s4 = sphi %s7932_s4, %s9618_s4   ;;  %s7745_s7 = sphi %s7930_s7, %s9617_s7  }
  0x22   : > { %s723_s5 = sshll.u32 %s7759_s9, 4  ;;  %s7951_s28 = sadd.s32 4294967295, %s7757_s30   ;;  %s724_s5 = int_to_ptr.vmem [resolvable:$true] %s723_s5 }
  0x23   : > { %p6085_p0 = scmp.ge.s32.totalorder %s7757_s30, 1  ;;  %p9515_p1 = scmp.eq.s32.totalorder %s7951_s28, 0 }
  0x24   : > { %p685_p2 = scmp.lt.s32.totalorder %s7757_s30, 3  ;;  %s7760_s10 = smov [#allocation15]  }
  0x25   : > { %s753_s29 = sshll.u32 %s7760_s10, 4  ;;  %s7761_s6 = smov [#allocation18]   ;;  %s7963_s29 = int_to_ptr.vmem [resolvable:$true] %s753_s29 }
  0x26   : > { %p7957_p4 = pnand %p6085_p0, %p685_p2  ;;  %s789_s11 = sshll.u32 %s7761_s6, 4  ;;  %s7971_s11 = int_to_ptr.vmem [resolvable:$true] %s789_s11 }
  0x27   : > { %s7420_s3 = scalar_lea.vmem %s724_s5, 16  ;;  %s7427_s9 = scalar_lea.vmem %s724_s5, 32 }
  0x28   : > { %s9559_s0 = scalar_select %p7957_p4, 1, 0 }
  0x29   : > { %p6865_p5 = pneg %p7957_p4  ;;  %p7421_p8 = scmp.ne.s32.totalorder %s724_s5, %s7420_s3 }
  0x2a   : > { %p7428_p11 = scmp.lt.s32.totalorder %s724_s5, %s724_s5  ;;  %p7429_p12 = scmp.lt.s32.totalorder %s7427_s9, %s7420_s3 }
  0x2b   : > { %p7967_p6 = pnand %p6865_p5, %p9515_p1 }
  0x2c   : > { %p7430_p13 = por %p7429_p12, %p7428_p11 }
  0x2d   : > { %s9560_s1 = scalar_select %p7967_p6, 1, 0 }
  0x2e   : > { %p7975_p7 = pneg %p7967_p6 }
  0x30   : > { %s9561_s2 = scalar_select %p7975_p7, 1, 0 }
  0x31   : > { %p7423_p9 = pnand %p7421_p8, %p7975_p7 }
  0x33   : > { %p7424_p10 = pneg %p7423_p9 }
  0x35   : > { %p7431_p0 = pnand %p7430_p13, %p7424_p10 }
  0x37   : > { %7434 = shalt.err (!%p7431_p0)
}
  0x38   : > { %s9562_s27 = sld [smem:[#allocation35_spill]]  ;;  %s7446_s25 = scalar_lea.vmem %s7963_s29, 32 }
  0x39   : > { %p7447_p2 = scmp.ne.s32.totalorder %s7963_s29, %s7446_s25  ;;  %p7454_p9 = scmp.lt.s32.totalorder %s7963_s29, %s7963_s29 }
  0x3a   : > { %p7455_p11 = scmp.lt.s32.totalorder %s7446_s25, %s7446_s25 }
  0x3b   : > { %p7449_p5 = pnand %p7447_p2, %p7975_p7 }
  0x3c   : > { %p7456_p10 = por %p7455_p11, %p7454_p9 }
  0x3d   : > { %p7450_p8 = pneg %p7449_p5 }
  0x3e   : > { %6871 = dma.hbm_to_vmem [thread:$0]  (!%p7967_p6), %s9562_s27, 16, %s724_s5, [#allocation7]  }
  0x3f   : > { %p7457_p12 = pnand %p7456_p10, %p7450_p8 }
  0x41   : > { %7460 = shalt.err (!%p7457_p12)
}
  0x42   : > { %s9506_s3 = smov 16   ;;  %s9508_s27 = smov 1  }
  0x43   : > { %s9563_s19 = sld [smem:[#allocation46_spill]]  ;;  %s7472_s25 = scalar_lea.vmem %s7971_s11, 16 }
  0x44   : > { %p7473_p13 = scmp.ne.s32.totalorder %s7971_s11, %s7472_s25  ;;  %s7479_s10 = scalar_lea.vmem %s7971_s11, 32 }
  0x45   : > { %p7480_p5 = scmp.lt.s32.totalorder %s7971_s11, %s7971_s11  ;;  %p7481_p8 = scmp.lt.s32.totalorder %s7479_s10, %s7472_s25 }
  0x46   : > { %p7475_p0 = pnand %p7473_p13, %p7975_p7 }
  0x47   : > { %p7482_p9 = por %p7481_p8, %p7480_p5 }
  0x48   : > { %p7476_p2 = pneg %p7475_p0 }
  0x49   : > { %6877 = dma.hbm_to_vmem [thread:$0]  (!%p7967_p6), %s9563_s19, 32, %s7963_s29, [#allocation16], %s9506_s3, %s9506_s3, %s9508_s27  }
  0x4a   : > { %p7483_p11 = pnand %p7482_p9, %p7476_p2 }
  0x4c   : > { %7486 = shalt.err (!%p7483_p11)
}
  0x4d   : > { %s9564_s24 = sld [smem:[#allocation50_spill]]  ;;  %s8015_s29 = sadd.s32 1, %s7757_s30  }
  0x4e   : > { %9565 = sst [smem:[#allocation28_spill]] %s8015_s29  ;;  %s245_s5 = ssub.s32 %s7757_s30, %s8015_s29 }
  0x4f   : > { %s248_s23 = sadd.s32 1, %s7753_s8  ;;  %p246_p10 = scmp.eq.s32.totalorder %s245_s5, 0 }
  0x50   : > { %p255_p12 = scmp.ne.s32.totalorder %s7753_s8, %s7749_s4  ;;  %p256_p13 = scmp.eq.s32.totalorder %s7757_s30, 0 }
  0x51   : > { %p261_p0 = scmp.ne.s32.totalorder %s7749_s4, %s7745_s7  ;;  %p6907_p8 = scmp.lt.s32.totalorder %s7757_s30, 2 }
  0x52   : > { %s8026_s9 = scalar_select %p246_p10, %s7753_s8, %s248_s23  }
  0x53   : > { %6883 = dma.hbm_to_vmem [thread:$0]  (!%p7967_p6), %s9564_s24, 16, %s7971_s11, [#allocation19]  }
  0x54   : > { %9566 = sst [smem:[#allocation29_spill]] %s8026_s9  ;;  %p257_p2 = por %p256_p13, %p255_p12 }
  0x55   : > { %p8030_p5 = por %p9515_p1, %p261_p0  ;;  %s8037_s10 = sand.u32 1, %s7753_s8  }
  0x56   : > { %s6825_s6 = smul.u32 6, %s8037_s10  ;;  %p8040_p9 = pnand %p6907_p8, %p257_p2 }
  0x57   : > { %s9567_s25 = scalar_select %p8030_p5, 1, 0 }
  0x58   : > { %s9568_s5 = scalar_select %p8040_p9, 1, 0 }
  0x59   : > { %s6826_s7 = smul.u32 96, %s7757_s30  ;;  %s9569_s19 = sld [smem:[#allocation39_spill]] }
  0x5a   : > { %s826_s11 = scalar_lea.vmem [#allocation9], %s6825_s6  ;;  %s9570_s8 = sand.u32 1, %s7757_s30  }
  0x5b   : > { %s834_s9 = sshll.u32 %s826_s11, 4  ;;  %s8053_s29 = scalar_lea.sflag [#allocation10], %s9570_s8  ;;  %s835_s9 = int_to_ptr.vmem [resolvable:$true] %s834_s9 }
  0x5c   : > { %p8059_p10 = pneg %p8040_p9 }
  0x5e   : > { %s9571_s21 = scalar_select %p8059_p10, 1, 0 }
  0x5f   : > { %s8049_s24 = scalar_lea.hbm %s9569_s19, %s6826_s7  ;;  %s7492_s6 = scalar_lea.hbm %s9569_s19, 192 }
  0x60   : > { %s7487_s22 = scalar_lea.hbm %s8049_s24, 96  ;;  %p7493_p0 = scmp.lt.s32.totalorder %s8049_s24, %s9569_s19 }
  0x61   : > { %p7488_p11 = scmp.ne.s32.totalorder %s8049_s24, %s7487_s22  ;;  %p7494_p2 = scmp.lt.s32.totalorder %s7492_s6, %s7487_s22 }
  0x63   : > { %p7490_p12 = pnand %p8059_p10, %p7488_p11  ;;  %p7495_p8 = por %p7494_p2, %p7493_p0 }
  0x65   : > { %p7491_p13 = pneg %p7490_p12 }
  0x67   : > { %p7496_p3 = pnand %p7495_p8, %p7491_p13 }
  0x69   : > { %7499 = shalt.err (!%p7496_p3)
}
  0x6a   : > { %s7500_s8 = scalar_lea.vmem %s835_s9, 96  ;;  %s7764_s23 = smov [#allocation9]  }
  0x6b   : > { %p7501_p1 = scmp.ne.s32.totalorder %s835_s9, %s7500_s8  ;;  %s7505_s18 = sshll.u32 %s7764_s23, 4  ;;  %s7506_s18 = int_to_ptr.vmem [resolvable:$false] %s7505_s18 }
  0x6c   : > { %s7507_s17 = scalar_lea.vmem %s7506_s18, 192  ;;  %p7508_p11 = scmp.lt.s32.totalorder %s835_s9, %s7506_s18 }
  0x6d   : > { %p7503_p5 = pnand %p7501_p1, %p8059_p10  ;;  %p7509_p12 = scmp.lt.s32.totalorder %s7507_s17, %s7500_s8 }
  0x6f   : > { %p7504_p4 = pneg %p7503_p5  ;;  %p7510_p6 = por %p7509_p12, %p7508_p11 }
  0x71   : > { %p7511_p7 = pnand %p7510_p6, %p7504_p4 }
  0x73   : > { %7514 = shalt.err (!%p7511_p7)
}
  0x74   : > { %6890 = dma.hbm_to_vmem [thread:$0]  (!%p8040_p9), %s8049_s24, 96, %s835_s9, %s8053_s29  }
  0x75   : > { %s9572_s22 = sshll.u32 %s8037_s10, 1  ;;  %s6098_s17 = sshll.u32 %s8037_s10, 2 }
  0x76   : > { %s861_s23 = scalar_lea.vmem [#allocation11], %s9572_s22  ;;  %s9573_s18 = smov %s9572_s22 }
  0x77   : > { %s868_s3 = sshll.u32 %s861_s23, 4  ;;  %s919_s27 = scalar_lea.vmem [#allocation14], %s9573_s18  ;;  %s8080_s3 = int_to_ptr.vmem [resolvable:$true] %s868_s3 }
  0x78   : > { %s926_s6 = sshll.u32 %s919_s27, 4  ;;  %s6401_s11 = sshll.u32 %s7757_s30, 6  ;;  %s8086_s6 = int_to_ptr.vmem [resolvable:$true] %s926_s6 }
  0x79   : > { %s9574_s14 = sld [smem:[#allocation43_spill]]  ;;  %s890_s24 = scalar_lea.vmem [#allocation12], %s6098_s17 }
  0x7a   : > { %s897_s9 = sshll.u32 %s890_s24, 4  ;;  %s9575_s22 = sand.u32 1, %s7757_s30   ;;  %s8093_s9 = int_to_ptr.vmem [resolvable:$true] %s897_s9 }
  0x7b   : > { %s8097_s23 = scalar_lea.sflag [#allocation13], %s9575_s22 }
  0x7f   : > { %s8091_s19 = scalar_lea.hbm %s9574_s14, %s6401_s11  ;;  %s7520_s11 = scalar_lea.hbm %s9574_s14, 128 }
  0x80   : > { %s7515_s10 = scalar_lea.hbm %s8091_s19, 64  ;;  %p7521_p6 = scmp.lt.s32.totalorder %s8091_s19, %s9574_s14 }
  0x81   : > { %p7516_p1 = scmp.ne.s32.totalorder %s8091_s19, %s7515_s10  ;;  %p7522_p7 = scmp.lt.s32.totalorder %s7520_s11, %s7515_s10 }
  0x83   : > { %p7518_p3 = pnand %p7516_p1, %p8059_p10  ;;  %p7523_p5 = por %p7522_p7, %p7521_p6 }
  0x85   : > { %p7519_p4 = pneg %p7518_p3 }
  0x87   : > { %p7524_p13 = pnand %p7523_p5, %p7519_p4 }
  0x89   : > { %7527 = shalt.err (!%p7524_p13)
}
  0x8a   : > { %s7528_s17 = scalar_lea.vmem %s8093_s9, 64  ;;  %s7765_s24 = smov [#allocation12]  }
  0x8b   : > { %p7529_p0 = scmp.ne.s32.totalorder %s8093_s9, %s7528_s17  ;;  %s7533_s22 = sshll.u32 %s7765_s24, 4  ;;  %s7534_s22 = int_to_ptr.vmem [resolvable:$false] %s7533_s22 }
  0x8c   : > { %s7535_s18 = scalar_lea.vmem %s7534_s22, 128  ;;  %p7536_p11 = scmp.lt.s32.totalorder %s8093_s9, %s7534_s22 }
  0x8d   : > { %p7531_p2 = pnand %p7529_p0, %p8059_p10  ;;  %p7537_p12 = scmp.lt.s32.totalorder %s7535_s18, %s7528_s17 }
  0x8f   : > { %p7532_p8 = pneg %p7531_p2  ;;  %p7538_p1 = por %p7537_p12, %p7536_p11 }
  0x91   : > { %p7539_p3 = pnand %p7538_p1, %p7532_p8 }
  0x93   : > { %7542 = shalt.err (!%p7539_p3)
}
  0x94   : > { %s7766_s10 = smov 32   ;;  %s7767_s27 = smov 2  }
  0x95   : > { %6896 = dma.hbm_to_vmem [thread:$0]  (!%p8040_p9), %s8091_s19, 64, %s8093_s9, %s8097_s23, %s7766_s10, %s7766_s10, %s7767_s27  }
  0x96   : > { %s7768_s11 = smov [#allocation4]   ;;  %p9576_p6 = scmp.ne.s32.totalorder %s9561_s2, 0 }
  0x97   : > { %s700_s7 = sshll.u32 %s7768_s11, 4  ;;  %s701_s7 = int_to_ptr.vmem [resolvable:$true] %s700_s7 }
  0x98   : > { %s7554_s8 = scalar_lea.vmem %s701_s7, 128  ;;  %p7562_p13 = scmp.lt.s32.totalorder %s701_s7, %s701_s7 }
  0x99   : > { %p7555_p4 = scmp.ne.s32.totalorder %s701_s7, %s7554_s8  ;;  %p7563_p0 = scmp.lt.s32.totalorder %s7554_s8, %s7554_s8 }
  0x9b   : > { %p7557_p7 = pnand %p7555_p4, %p9576_p6  ;;  %p7564_p2 = por %p7563_p0, %p7562_p13 }
  0x9d   : > { %p7558_p5 = pneg %p7557_p7 }
  0x9f   : > { %p7565_p8 = pnand %p7564_p2, %p7558_p5 }
  0xa1   : > { %7568 = shalt.err (!%p7565_p8)
}
  0xa2   : > { %s7769_s17 = smov 64   ;;  %s7770_s24 = smov 4  }
  0xa3   : > { %p9577_p11 = scmp.ne.s32.totalorder %s9560_s1, 0  ;;  %s9578_s9 = sld [smem:[#allocation31_spill]] }
  0xa4   : > { %s7771_s18 = smov [#allocation8]   ;;  %s7772_s27 = smov [#allocation17]  }
  0xa5   : > { %s737_s10 = sshll.u32 %s7771_s18, 4  ;;  %s766_s11 = sshll.u32 %s7772_s27, 4  ;;  %s738_s10 = int_to_ptr.vmem [resolvable:$true] %s737_s10  ;;  %s767_s11 = int_to_ptr.vmem [resolvable:$true] %s766_s11 }
  0xa6   : > { %s7580_s14 = scalar_lea.vmem %s738_s10, 16  ;;  %s7587_s8 = scalar_lea.vmem %s738_s10, 32 }
  0xa7   : > { %p7581_p12 = scmp.ne.s32.totalorder %s738_s10, %s7580_s14  ;;  %p7588_p4 = scmp.lt.s32.totalorder %s738_s10, %s738_s10 }
  0xa8   : > { %p7589_p7 = scmp.lt.s32.totalorder %s7587_s8, %s7580_s14 }
  0xa9   : > { %6868 = dma.hbm_to_vmem [thread:$0]  (!%p9577_p11), %s9578_s9, 128, %s701_s7, [#allocation5], %s7769_s17, %s7769_s17, %s7770_s24  }
  0xaa   : > { %p7583_p1 = pnand %p7581_p12, %p9576_p6  ;;  %p7590_p5 = por %p7589_p7, %p7588_p4 }
  0xac   : > { %p7584_p3 = pneg %p7583_p1 }
  0xae   : > { %p7591_p13 = pnand %p7590_p5, %p7584_p3 }
  0xb0   : > { %7594 = shalt.err (!%p7591_p13)
}
  0xb1   : > { %s9579_s17 = sld [smem:[#allocation37_spill]]  ;;  %s7606_s24 = scalar_lea.vmem %s767_s11, 32 }
  0xb2   : > { %p7607_p0 = scmp.ne.s32.totalorder %s767_s11, %s7606_s24  ;;  %p7614_p12 = scmp.lt.s32.totalorder %s767_s11, %s767_s11 }
  0xb3   : > { %p7615_p1 = scmp.lt.s32.totalorder %s7606_s24, %s7606_s24 }
  0xb4   : > { %p7609_p2 = pnand %p7607_p0, %p9576_p6 }
  0xb5   : > { %p7616_p9 = por %p7615_p1, %p7614_p12 }
  0xb6   : > { %p7610_p8 = pneg %p7609_p2 }
  0xb7   : > { %6874 = dma.hbm_to_vmem [thread:$0]  (!%p9577_p11), %s9579_s17, 16, %s738_s10, [#allocation7]  }
  0xb8   : > { %p7617_p10 = pnand %p7616_p9, %p7610_p8 }
  0xba   : > { %7620 = shalt.err (!%p7617_p10)
}
  0xbb   : > { %s9580_s14 = smov 1   ;;  %s9581_s19 = smov 16  }
  0xbc   : > { %6880 = dma.hbm_to_vmem [thread:$0]  (!%p9577_p11), %s9491_s20, 32, %s767_s11, [#allocation16], %s9581_s19, %s9581_s19, %s9580_s14  }
  0xbd   : > { %s7773_s10 = smov [#allocation20]   ;;  %s6400_s8 = sshll.u32 %s7757_s30, 5 }
  0xbe   : > { %s803_s27 = sshll.u32 %s7773_s10, 4  ;;  %s9582_s12 = sld [smem:[#allocation42_spill]]  ;;  %s804_s27 = int_to_ptr.vmem [resolvable:$true] %s803_s27 }
  0xbf   : > { %s7632_s24 = scalar_lea.vmem %s804_s27, 16  ;;  %s7639_s9 = scalar_lea.vmem %s804_s27, 32 }
  0xc0   : > { %p7633_p9 = scmp.ne.s32.totalorder %s804_s27, %s7632_s24  ;;  %p7640_p4 = scmp.lt.s32.totalorder %s804_s27, %s804_s27 }
  0xc1   : > { %p7641_p7 = scmp.lt.s32.totalorder %s7639_s9, %s7632_s24 }
  0xc2   : > { %p7635_p10 = pnand %p7633_p9, %p9576_p6 }
  0xc3   : > { %p7642_p5 = por %p7641_p7, %p7640_p4 }
  0xc4   : > { %s8150_s17 = scalar_lea.hbm %s9582_s12, %s6400_s8  ;;  %p7636_p3 = pneg %p7635_p10 }
  0xc6   : > { %p7643_p13 = pnand %p7642_p5, %p7636_p3 }
  0xc8   : > { %7646 = shalt.err (!%p7643_p13)
}
  0xc9   : > { %6886 = dma.hbm_to_vmem [thread:$0]  (!%p9577_p11), %s9497_s26, 16, %s804_s27, [#allocation19]  }
  0xca   : > { %s7647_s10 = scalar_lea.hbm %s8150_s17, 32  ;;  %p9583_p6 = scmp.ne.s32.totalorder %s9571_s21, 0 }
  0xcb   : > { %p7648_p0 = scmp.ne.s32.totalorder %s8150_s17, %s7647_s10  ;;  %s7652_s7 = scalar_lea.hbm %s9582_s12, 64 }
  0xcc   : > { %p7653_p12 = scmp.lt.s32.totalorder %s8150_s17, %s9582_s12  ;;  %p7654_p1 = scmp.lt.s32.totalorder %s7652_s7, %s7647_s10 }
  0xcd   : > { %p7650_p2 = pnand %p7648_p0, %p9583_p6 }
  0xce   : > { %p7655_p9 = por %p7654_p1, %p7653_p12 }
  0xcf   : > { %p7651_p8 = pneg %p7650_p2 }
  0xd1   : > { %p7656_p10 = pnand %p7655_p9, %p7651_p8 }
  0xd3   : > { %7659 = shalt.err (!%p7656_p10)
}
  0xd4   : > { %s7660_s1 = scalar_lea.vmem %s8080_s3, 32  ;;  %s7774_s27 = smov [#allocation11]  }
  0xd5   : > { %p7661_p11 = scmp.ne.s32.totalorder %s8080_s3, %s7660_s1  ;;  %s7665_s11 = sshll.u32 %s7774_s27, 4  ;;  %s7666_s11 = int_to_ptr.vmem [resolvable:$false] %s7665_s11 }
  0xd6   : > { %s7667_s18 = scalar_lea.vmem %s7666_s11, 64  ;;  %p7668_p7 = scmp.lt.s32.totalorder %s8080_s3, %s7666_s11 }
  0xd7   : > { %p7663_p3 = pnand %p7661_p11, %p9583_p6  ;;  %p7669_p5 = scmp.lt.s32.totalorder %s7667_s18, %s7660_s1 }
  0xd9   : > { %p7664_p4 = pneg %p7663_p3  ;;  %p7670_p13 = por %p7669_p5, %p7668_p7 }
  0xdb   : > { %p7671_p0 = pnand %p7670_p13, %p7664_p4 }
  0xdd   : > { %7674 = shalt.err (!%p7671_p0)
}
  0xde   : > { %p9584_p2 = scmp.ne.s32.totalorder %s9568_s5, 0  ;;  %s925_s22 = scalar_lea.hbm %s9487_s16, %s6400_s8 }
  0xdf   : > { %s7675_s7 = scalar_lea.hbm %s925_s22, 32  ;;  %s7680_s1 = scalar_lea.hbm %s9487_s16, 64 }
  0xe0   : > { %6893 = dma.hbm_to_vmem [thread:$0]  (!%p9584_p2), %s8150_s17, 32, %s8080_s3, %s8053_s29, %s9581_s19, %s9581_s19, %s9580_s14  }
  0xe1   : > { %p7676_p8 = scmp.ne.s32.totalorder %s925_s22, %s7675_s7  ;;  %p7681_p9 = scmp.lt.s32.totalorder %s925_s22, %s9487_s16 }
  0xe2   : > { %p7682_p10 = scmp.lt.s32.totalorder %s7680_s1, %s7675_s7 }
  0xe3   : > { %p7678_p12 = pnand %p7676_p8, %p9583_p6 }
  0xe4   : > { %p7683_p11 = por %p7682_p10, %p7681_p9 }
  0xe5   : > { %p7679_p1 = pneg %p7678_p12 }
  0xe7   : > { %p7684_p3 = pnand %p7683_p11, %p7679_p1 }
  0xe9   : > { %7687 = shalt.err (!%p7684_p3)
}
  0xea   : > { %s7688_s30 = scalar_lea.vmem %s8086_s6, 32  ;;  %s7775_s29 = smov [#allocation14]  }
  0xeb   : > { %p7689_p4 = scmp.ne.s32.totalorder %s8086_s6, %s7688_s30  ;;  %s7693_s3 = sshll.u32 %s7775_s29, 4  ;;  %s7694_s3 = int_to_ptr.vmem [resolvable:$false] %s7693_s3 }
  0xec   : > { %s7695_s8 = scalar_lea.vmem %s7694_s3, 64  ;;  %p7696_p13 = scmp.lt.s32.totalorder %s8086_s6, %s7694_s3 }
  0xed   : > { %p7691_p7 = pnand %p7689_p4, %p9583_p6  ;;  %p7697_p0 = scmp.lt.s32.totalorder %s7695_s8, %s7688_s30 }
  0xef   : > { %p7692_p5 = pneg %p7691_p7  ;;  %p7698_p8 = por %p7697_p0, %p7696_p13 }
  0xf1   : > { %p7699_p12 = pnand %p7698_p8, %p7692_p5 }
  0xf3   : > { %7702 = shalt.err (!%p7699_p12)
}
  0xf4   : > { %6899 = dma.hbm_to_vmem [thread:$0]  (!%p9584_p2), %s925_s22, 32, %s8086_s6, %s8097_s23, %s9581_s19, %s9581_s19, %s9580_s14  }
  0xf5   : > { %p9585_p6 = scmp.ne.s32.totalorder %s9559_s0, 0 }
  0xf6   : > { %p9586_p1 = scmp.eq.s32.totalorder (!%p9585_p6), %s7951_s28, 0 }
  0xf7   : > { %938 = sbr.rel (%p9585_p6) target bundleno = 9739 (0x260b), region = 128 }
  0xfc   : > { %7720 = dma.done.wait (%p9586_p1), [#allocation5], 128   ;;  %p9587_p9 = pmov %p9586_p1 }
  0xfd   : > { %p9588_p10 = pmov %p9586_p1 }
  0xfe   : > { %7722 = vsyncadd (%p9587_p9), [#allocation5], 4294967168 }
  0xff   : > { %7724 = dma.done.wait (%p9588_p10), [#allocation7], 32   ;;  %p9589_p11 = pmov %p9586_p1 }
 0x100   : > { %s952_s21 = sand.u32 1, %s7951_s28   ;;  %s954_s5 = sand.u32 1, %s7749_s4  }
 0x101   : > { %7726 = vsyncadd (%p9589_p11), [#allocation7], 4294967264  ;;  %s6827_s6 = smul.u32 6, %s954_s5  ;;  %s953_s0 = scalar_lea.sflag [#allocation10], %s952_s21 }
 0x102   : > { %p9590_p2 = scmp.ne.s32.totalorder %s9567_s25, 0 }
 0x103   : > { %s8220_s23 = scalar_lea.vmem [#allocation9], %s6827_s6 }
 0x104   : > { %7728 = dma.done.wait (%p9590_p2), %s953_s0, 128  }
 0x105   : > { %7730 = vsyncadd (%p9590_p2), %s953_s0, 4294967168  ;;  %s6108_s14 = sshll.u32 %s954_s5, 1  ;;  %s6109_s19 = sshll.u32 %s954_s5, 2 }
 0x106   : > { %s8226_s17 = scalar_lea.vmem [#allocation11], %s6108_s14  ;;  %s971_s18 = scalar_lea.sflag [#allocation13], %s952_s21 }
 0x107   : > { %s8228_s10 = scalar_lea.vmem [#allocation12], %s6109_s19 }
 0x108   : > { %7732 = dma.done.wait (%p9590_p2), %s971_s18, 96  }
 0x109   : > { %7734 = vsyncadd (%p9590_p2), %s971_s18, 4294967200  ;;  %s8234_s2 = scalar_lea.vmem [#allocation14], %s6108_s14  ;;  %p9591_p3 = pmov %p9586_p1 }
 0x10a   : > { %p9592_p4 = pmov %p9586_p1 }
 0x10b   : > { %7736 = dma.done.wait (%p9591_p3), [#allocation16], 64  }
 0x10c   : > { %7738 = vsyncadd (%p9592_p4), [#allocation16], 4294967232  ;;  %p9593_p7 = pmov %p9586_p1 }
 0x10d   : > { %p9594_p5 = pmov %p9586_p1 }
 0x10e   : > { %7740 = dma.done.wait (%p9593_p7), [#allocation19], 32  }
 0x10f   : > { %7742 = vsyncadd (%p9594_p5), [#allocation19], 4294967264  ;;  %p1105_p13 = scmp.lt.s32.totalorder %s7951_s28, 1  ;;  %s9595_s1 = sld [smem:[#allocation41_spill]] }
 0x110   : > { %s9596_s3 = sld [smem:[#allocation38_spill]]  ;;  %p9598_p0 = scmp.ne.s32.totalorder %s7951_s28, 0 }
 0x111   : > { %s1106_s22 = scalar_select %p1105_p13, %s7951_s28, 1 }
 0x112   : > { %s9597_s6 = sld [smem:[#allocation40_spill]] }
 0x113   : > { %s6828_s25 = smul.u32 192, %s1106_s22  ;;  %s6403_s7 = sshll.u32 %s1106_s22, 6 }
 0x114   : > { %s6404_s11 = sshll.u32 %s1106_s22, 7  ;;  %s6405_s12 = sshll.u32 %s1106_s22, 8 }
 0x115   : > { %s8249_s27 = scalar_lea.vmem %s9595_s1, %s6403_s7  ;;  %s8264_s18 = scalar_lea.vmem %s9484_s13, %s6404_s11 }
 0x116   : > { %s8254_s8 = scalar_lea.vmem %s9596_s3, %s6828_s25  ;;  %s8269_s9 = scalar_lea.vmem %s9486_s15, %s6405_s12 }
 0x117   : > { %1134 = sbr.rel (%p9598_p0) target bundleno = 783 (0x30f), region = 176  ;;  %s9599_s29 = sld [smem:[#allocation34_spill]] (!%p9598_p0) }
 0x118   : > { %s8259_s0 = scalar_lea.vmem %s9597_s6, %s6828_s25  ;;  %s9600_s14 = sld [smem:[#allocation33_spill]] (!%p9598_p0) }
 0x119   : > { %s9601_s6 = sld [smem:[#allocation30_spill]] (!%p9598_p0) }
 0x11a   : > { %s9602_s11 = sld [smem:[#allocation36_spill]] (!%p9598_p0) }
 0x11b   : > { %s9603_s1 = sld [smem:[#allocation32_spill]] (!%p9598_p0) }
 0x11c   : > { %v6990_v20 = vld [vmem:[#allocation4] sm:$0xff]   ;;  %vm1156_vm0 = vcmask 130048   ;;  %v7776_v28 = vmov 0.0   ;;  %vm7777_vm1 = vmmov 0   ;;  %v6129_v33 = vld [vmem:[#allocation6] ss:$0 sm:$0xff] }
 0x11d   : > { %v6974_v0 = vld [vmem:[%s9599_s29 + $0x78] sm:$0xff]   ;;  %v6976_v2 = vld [vmem:[%s9599_s29 + $0x70] sm:$0xff]   ;;  %v6978_v4 = vld [vmem:[%s9599_s29 + $0x68] sm:$0xff]   ;;  %6591 = vmatprep.subr.bf16.mxu0 %v6990_v20  ;;  %vm1212_vm2 = vcmask 523264   ;;  %vm1503_vm3 = vcmask 517120  }
 0x11e   : > { %v6975_v1 = vld [vmem:[%s9599_s29 + $0x38] sm:$0xff]   ;;  %6409 = vmatprep.subr.bf16.mxu1 %v6974_v0  ;;  %v6977_v3 = vld [vmem:[%s9599_s29 + $0x30] sm:$0xff]   ;;  %v6979_v5 = vld [vmem:[%s9599_s29 + $0x28] sm:$0xff]   ;;  %6592 = vmatpush3.bf16.msra.mxu0 %v6990_v20 }
 0x11f   : > { %6410 = vmatpush3.bf16.msra.mxu1 %v6975_v1  ;;  %v6980_v6 = vld [vmem:[%s9599_s29 + $0x60] sm:$0xff]   ;;  %v6982_v8 = vld [vmem:[%s9599_s29 + $0x58] sm:$0xff]   ;;  %v6984_v10 = vld [vmem:[%s9599_s29 + $0x50] sm:$0xff]   ;;  %6597 = vmatprep.subr.bf16.mxu0 %v7776_v28 }
 0x120   : > { %6411 = vmatprep.subr.bf16.mxu1 %v6976_v2  ;;  %v6981_v7 = vld [vmem:[%s9599_s29 + $0x20] sm:$0xff]   ;;  %v6983_v9 = vld [vmem:[%s9599_s29 + $0x18] sm:$0xff]   ;;  %v6985_v12 = vld [vmem:[%s9599_s29 + $0x10] sm:$0xff]  }
 0x121   : > { %v6128_v11 = vld.sshfl [vmem:[%s9600_s14] sm:$0x33 pattern:$0x76325410]  ;;  %v6986_v15 = vld [vmem:[%s9599_s29 + $0x48] sm:$0xff]   ;;  %v1137_v24 = vld [vmem:[%s9601_s6 + $0x10] sm:$0xff] }
 0x122   : > { %v1226_v13 = vcombine.high %v6128_v11, %v6128_v11  ;;  %v6987_v16 = vld [vmem:[%s9599_s29 + $0x8] sm:$0xff]   ;;  %v6988_v17 = vld [vmem:[%s9599_s29 + $0x40] sm:$0xff]   ;;  %v1229_v19 = vpack.c.bf16 %v6128_v11, %v6128_v11  ;;  %v1138_v25 = vld [vmem:[%s9601_s6 + $0x18] sm:$0xff] }
 0x123   : > { %6412 = vmatpush3.bf16.msra.mxu1 %v6977_v3  ;;  %v6989_v18 = vld [vmem:[%s9599_s29] sm:$0xff]   ;;  %v1136_v22 = vld [vmem:[%s9601_s6 + $0x8] sm:$0xff]  ;;  %v1140_v26 = vpack.c.bf16 %v1138_v25, %v1137_v24  ;;  %v6991_v27 = vld [vmem:[%s9602_s11 + $0x18] sm:$0xff]  }
 0x124   : > { %6413 = vmatprep.subr.bf16.mxu1 %v6978_v4  ;;  %v1230_v14 = vpack.c.bf16 %v1226_v13, %v1226_v13  ;;  %v1135_v21 = vld [vmem:[%s9601_s6] sm:$0xff]  ;;  %v6992_v29 = vld [vmem:[%s9602_s11 + $0x10] sm:$0xff]   ;;  %v6993_v30 = vld [vmem:[%s9602_s11 + $0x8] sm:$0xff]  }
 0x125   : > { %v1139_v23 = vpack.c.bf16 %v1136_v22, %v1135_v21  ;;  %v6994_v31 = vld [vmem:[%s9602_s11] sm:$0xff]   ;;  %v6147_v54 = vld [vmem:[#allocation8] ss:$0 sm:$0xff] }
 0x126   : > { %1398 = vmatprep.mubr.bf16.mxu1 %v1230_v14  ;;  %v6124_v45 = vld [vmem:[%s9603_s1] ss:$0 sm:$0xff] }
 0x127   : > { %6414 = vmatpush3.bf16.msra.mxu1 %v6979_v5  ;;  %6593 = vmatprep.mubr.msk.bf16.mxu0 %vm1156_vm0, %v1139_v23 }
 0x128   : > { %6415 = vmatprep.subr.bf16.mxu1 %v6980_v6  ;;  %6594 = vmatmul.mubr.msk.bf16.vlgmr.msra.gmra.mxu0 %vm1156_vm0, %v1140_v26 }
 0x129   : > { %6598 = vmatpush3.bf16.msra.mxu0 %v6991_v27  ;;  %6605 = vmatprep.mubr.msk.bf16.mxu0 %vm7777_vm1, %v7776_v28 }
 0x12a   : > { %6599 = vmatprep.subr.bf16.mxu0 %v7776_v28 }
 0x12b   : > { %6416 = vmatpush3.bf16.msra.mxu1 %v6981_v7 }
 0x12c   : > { %6417 = vmatprep.subr.bf16.mxu1 %v6982_v8 }
 0x12d   : > { %6600 = vmatpush3.bf16.msra.mxu0 %v6992_v29 }
 0x12e   : > { %6601 = vmatprep.subr.bf16.mxu0 %v7776_v28 }
 0x12f   : > { %6418 = vmatpush3.bf16.msra.mxu1 %v6983_v9 }
 0x130   : > { %6419 = vmatprep.subr.bf16.mxu1 %v6984_v10 }
 0x131   : > { %6602 = vmatpush3.bf16.msra.mxu0 %v6993_v30 }
 0x132   : > { %6603 = vmatprep.subr.bf16.mxu0 %v7776_v28 }
 0x133   : > { %6420 = vmatpush3.bf16.msra.mxu1 %v6985_v12 }
 0x134   : > { %6421 = vmatprep.subr.bf16.mxu1 %v6986_v15 }
 0x135   : > { %6604 = vmatpush3.bf16.msra.mxu0 %v6994_v31 }
 0x137   : > { %6422 = vmatpush3.bf16.msra.mxu1 %v6987_v16 }
 0x138   : > { %6423 = vmatprep.subr.bf16.mxu1 %v6988_v17 }
 0x13b   : > { %6424 = vmatpush3.bf16.msra.mxu1 %v6989_v18 }
 0x13e   : > { %1399 = vmatmul.mubr.bf16.vlgmr.msra.gmra.mxu1 %v1229_v19 }
 0x1e8   : > { %v6595_v46 = vpop.f32.mrf.mxu0 }
 0x1e9   : > { %v1206_v47 = vadd.f32 %v6595_v46, %v6124_v45 }
 0x1ea   : > { %v1197_v48 = vpop.f32.mrf.mxu0 }
 0x1eb   : > { %1215 = vst.msk [vmem:[#allocation2 + $0x10] sm:$0xff] %vm1212_vm2, %v1206_v47  ;;  %v1198_v49 = vadd.f32 %v6124_v45, %v1197_v48 }
 0x1ec   : > { %v6596_v50 = vpop.f32.mrf.mxu0 }
 0x1ed   : > { %1213 = vst.msk [vmem:[#allocation2] sm:$0xff] %vm1212_vm2, %v1198_v49  ;;  %v1209_v51 = vadd.f32 %v6596_v50, %v6124_v45 }
 0x1ee   : > { %v1200_v52 = vpop.f32.mrf.mxu0 }
 0x1ef   : > { %1216 = vst.msk [vmem:[#allocation2 + $0x18] sm:$0xff] %vm1212_vm2, %v1209_v51  ;;  %v1201_v53 = vadd.f32 %v6124_v45, %v1200_v52 }
 0x1f1   : > { %1214 = vst.msk [vmem:[#allocation2 + $0x8] sm:$0xff] %vm1212_vm2, %v1201_v53 }
 0x1fe   : > { %v6425_v32 = vpop.f32.mrf.mxu1 }
 0x200   : > { %v6426_v34 = vpop.f32.mrf.mxu1 }
 0x201   : > { %v6427_v35 = vadd.f32 %v6426_v34, %v6425_v32 }
 0x202   : > { %v6428_v36 = vpop.f32.mrf.mxu1 }
 0x203   : > { %v1401_v37 = vadd.f32 %v6427_v35, %v6129_v33 }
 0x204   : > { %v6429_v38 = vpop.f32.mrf.mxu1 }
 0x205   : > { %v6146_v39 = vmul.f32 -1.442695, %v1401_v37 }
 0x207   : > { %6995 = vpow2.f32 %v6146_v39 }
 0x214   : > { %v6996_v40 = vpop.eup %6995 }
 0x215   : > { %v1409_v41 = vadd.f32 1.0, %v6996_v40 }
 0x217   : > { %6997 = vrcp.f32 %v1409_v41 }
 0x224   : > { %v6998_v42 = vpop.eup %6997 }
 0x225   : > { %v1412_v43 = vmul.f32 %v6998_v42, %v1401_v37 }
 0x227   : > { %v1413_v44 = vpack.c.bf16 %v1412_v43, %v1412_v43 }
 0x229   : > { %6606 = vmatmul.mubr.msk.bf16.vlgmr.msra.gmra.mxu0 %vm1212_vm2, %v1413_v44 }
 0x2e9   : > { %v1490_v55 = vpop.f32.mrf.mxu0 }
 0x2ea   : > { %v1491_v56 = vadd.f32 %v6147_v54, %v1490_v55 }
 0x2eb   : > { %v6607_v57 = vpop.f32.mrf.mxu0 }
 0x2ec   : > { %v6153_v58 = vmul.f32 -1.442695, %v1491_v56 }
 0x2ed   : > { %v1493_v59 = vpop.f32.mrf.mxu0 }
 0x2ee   : > { %6999 = vpow2.f32 %v6153_v58 }
 0x2ef   : > { %v6608_v60 = vpop.f32.mrf.mxu0 }
 0x2fb   : > { %v7000_v61 = vpop.eup %6999 }
 0x2fc   : > { %v1499_v62 = vadd.f32 1.0, %v7000_v61 }
 0x2fe   : > { %7001 = vrcp.f32 %v1499_v62 }
 0x30b   : > { %v7002_v63 = vpop.eup %7001 }
 0x30c   : > { %v1502_v0 = vmul.f32 %v7002_v63, %v1491_v56 }
 0x30e   : > { %1504 = vst.msk [vmem:[#allocation3] sm:$0x3] %vm1503_vm3, %v1502_v0 }
 0x30f PF: > { %vm1683_vm4 = vcmask 523264   ;;  %v1810_v1 = vld [vmem:[#allocation2] sm:$0xff]  ;;  %v7063_v3 = vld [vmem:[%s8254_s8 + $0x94] ss:$24 sps:$4 sm:$0xff]   ;;  %v7065_v4 = vld [vmem:[%s8254_s8 + $0x90] ss:$24 sps:$4 sm:$0xff]   ;;  %v1533_v0 = vlaneseq }
 0x310   : > { %v1826_v2 = vsel %vm1683_vm4, %v1810_v1, 0.0  ;;  %v1812_v5 = vld [vmem:[#allocation2 + $0x10] sm:$0xff]  ;;  %v7778_v6 = vmov 0   ;;  %v1811_v8 = vld [vmem:[#allocation2 + $0x8] sm:$0xff]  ;;  %1695 = vmatprep.subr.bf16.mxu1 %v7063_v3  ;;  %v7066_v10 = vld [vmem:[%s8254_s8 + $0x64] ss:$24 sps:$4 sm:$0xff]  }
 0x311   : > { %1719 = vmatprep.mubr.bf16.mxu1 %v7778_v6  ;;  %1801 = vmatprep.mubr.bf16.mxu0 %v7778_v6  ;;  %v1832_v7 = vsel %vm1683_vm4, %v1812_v5, 0.0  ;;  %v1829_v9 = vsel %vm1683_vm4, %v1811_v8, 0.0  ;;  %v1813_v11 = vld [vmem:[#allocation2 + $0x18] sm:$0xff]  ;;  %v7069_v14 = vld [vmem:[%s8254_s8 + $0x34] ss:$24 sps:$4 sm:$0xff]   ;;  %s9604_s3 = sld [smem:[#allocation44_spill]] }
 0x312   : > { %1827 = vadd.xlane.f32.xlu0 %v1826_v2  ;;  %1833 = vadd.xlane.f32.xlu1 %v1832_v7  ;;  %v7068_v12 = vld [vmem:[%s8254_s8 + $0x60] ss:$24 sps:$4 sm:$0xff]   ;;  %v1835_v13 = vsel %vm1683_vm4, %v1813_v11, 0.0  ;;  %v7071_v15 = vld [vmem:[%s8254_s8 + $0x30] ss:$24 sps:$4 sm:$0xff]   ;;  %s9605_s12 = sld [smem:[#allocation45_spill]] }
 0x313   : > { %1696 = vmatpush1.bf16.msra.mxu1 %v7065_v4  ;;  %v7072_v16 = vld [vmem:[%s8254_s8 + $0x4] ss:$24 sps:$4 sm:$0xff]   ;;  %v7074_v17 = vld [vmem:[%s8254_s8] ss:$24 sps:$4 sm:$0xff]   ;;  %v7081_v44 = vld [vmem:[%s8254_s8 + $0x74] ss:$24 sps:$4 sm:$0xff]  }
 0x314   : > { %1697 = vmatprep.subr.bf16.mxu1 %v7066_v10  ;;  %v7075_v40 = vld [vmem:[%s8254_s8 + $0xa4] ss:$24 sps:$4 sm:$0xff]   ;;  %v7077_v41 = vld [vmem:[%s8254_s8 + $0xa0] ss:$24 sps:$4 sm:$0xff]   ;;  %v7083_v46 = vld [vmem:[%s8254_s8 + $0x70] ss:$24 sps:$4 sm:$0xff]  }
 0x315   : > { %v1505_v18 = vld [vmem:[#allocation3] sm:$0x3]  ;;  %v7078_v42 = vld [vmem:[%s8254_s8 + $0x98] ss:$24 sps:$4 sm:$0xff]   ;;  %v7080_v43 = vld [vmem:[%s8254_s8 + $0x9c] ss:$24 sps:$4 sm:$0xff]   ;;  %1777 = vmatprep.subr.bf16.mxu0 %v7075_v40 }
 0x316   : > { %1830 = vadd.xlane.f32.xlu0 %v1829_v9  ;;  %1836 = vadd.xlane.f32.xlu1 %v1835_v13  ;;  %v8365_v19 = vpack.c.bf16 %v1505_v18, %v1505_v18  ;;  %v7086_v45 = vld [vmem:[%s8254_s8 + $0x6c] ss:$24 sps:$4 sm:$0xff]   ;;  %v7084_v47 = vld [vmem:[%s8254_s8 + $0x68] ss:$24 sps:$4 sm:$0xff]   ;;  %v7092_v49 = vld [vmem:[%s8254_s8 + $0x3c] ss:$24 sps:$4 sm:$0xff]  }
 0x317   : > { %1698 = vmatpush1.bf16.msra.mxu1 %v7068_v12  ;;  %1778 = vmatpush1.bf16.msra.mxu0 %v7077_v41  ;;  %v7087_v48 = vld [vmem:[%s8254_s8 + $0x44] ss:$24 sps:$4 sm:$0xff]   ;;  %v7089_v50 = vld [vmem:[%s8254_s8 + $0x40] ss:$24 sps:$4 sm:$0xff]   ;;  %v7093_v52 = vld [vmem:[%s8254_s8 + $0x14] ss:$24 sps:$4 sm:$0xff]  }
 0x318   : > { %1699 = vmatprep.subr.bf16.mxu1 %v7069_v14  ;;  %1779 = vmatprep.subr.bf16.mxu0 %v7081_v44  ;;  %v7090_v51 = vld [vmem:[%s8254_s8 + $0x38] ss:$24 sps:$4 sm:$0xff]   ;;  %v7098_v53 = vld [vmem:[%s8254_s8 + $0xc] ss:$24 sps:$4 sm:$0xff]   ;;  %v7096_v55 = vld [vmem:[%s8254_s8 + $0x8] ss:$24 sps:$4 sm:$0xff]  }
 0x319   : > { %v7095_v54 = vld [vmem:[%s8254_s8 + $0x10] ss:$24 sps:$4 sm:$0xff]   ;;  %v7101_v57 = vld [vmem:[%s8259_s0 + $0x4c] ss:$12 sps:$4 sm:$0xff]   ;;  %v7105_v60 = vld [vmem:[%s8259_s0 + $0x34] ss:$12 sps:$4 sm:$0xff]  }
 0x31a   : > { %v7102_v56 = vld [vmem:[%s8259_s0 + $0x50] ss:$12 sps:$4 sm:$0xff]   ;;  %v7099_v58 = vld [vmem:[%s8259_s0 + $0x48] ss:$12 sps:$4 sm:$0xff]   ;;  %v7106_v59 = vld [vmem:[%s8259_s0 + $0x38] ss:$12 sps:$4 sm:$0xff]  }
 0x31b   : > { %1700 = vmatpush1.bf16.msra.mxu1 %v7071_v15  ;;  %1780 = vmatpush1.bf16.msra.mxu0 %v7083_v46  ;;  %v7103_v61 = vld [vmem:[%s8259_s0 + $0x30] ss:$12 sps:$4 sm:$0xff]   ;;  %v7107_v63 = vld [vmem:[%s8259_s0 + $0x18] ss:$12 sps:$4 sm:$0xff]   ;;  %v7779_v2 = vmov 1966171168  }
 0x31c   : > { %1701 = vmatprep.subr.bf16.mxu1 %v7072_v16  ;;  %1781 = vmatprep.subr.bf16.mxu0 %v7087_v48  ;;  %v7109_v62 = vld [vmem:[%s8259_s0 + $0x1c] ss:$12 sps:$4 sm:$0xff]   ;;  %v1881_v3 = vunpack.c.l.s4 %v7779_v2  ;;  %v7110_v9 = vld [vmem:[%s8259_s0 + $0x20] ss:$12 sps:$4 sm:$0xff]   ;;  %s9529_s8 = smov 64   ;;  %s7781_s7 = smov 48  }
 0x31d   : > { %v7111_v13 = vld [vmem:[%s8259_s0] ss:$12 sps:$4 sm:$0xff]   ;;  %v7114_v15 = vld [vmem:[%s8259_s0 + $0x8] ss:$12 sps:$4 sm:$0xff]   ;;  %vm2214_vm5 = vcmask 130048   ;;  %s7782_s1 = smov 112  }
 0x31e   : > { %v1882_v7 = vunpack.c.0.s8 %v1881_v3  ;;  %s9606_s21 = sld [smem:[#allocation47_spill]]  ;;  %vm2284_vm6 = vcmask 261120   ;;  %s7783_s25 = smov 96   ;;  %vm2998_vm7 = vcmask 392192  }
 0x31f   : > { %1702 = vmatpush1.bf16.msra.mxu1 %v7074_v17  ;;  %1782 = vmatpush1.bf16.msra.mxu0 %v7089_v50  ;;  %s7784_s22 = smov 32   ;;  %s9533_s5 = smov 16  }
 0x320   : > { %1736 = vmatprep.subr.bf16.mxu1 %v7080_v43  ;;  %1783 = vmatprep.subr.bf16.mxu0 %v7093_v52  ;;  %s9531_s14 = smov 80   ;;  %s9607_s24 = sld [smem:[#allocation48_spill]] }
 0x321   : > { %p6384_p8 = scmp.ne.s32.totalorder %s7951_s28, 1 }
 0x322   : > { %6178 = vmatmul.mubr.msk.bf16.vlgmr.msra.gmra.mxu1 %vm1683_vm4, %v8365_v19 }
 0x323   : > { %1760 = vmatprep.mubr.bf16.mxu1 %v7778_v6  ;;  %1737 = vmatpush1.bf16.msra.mxu1 %v7078_v42 }
 0x324   : > { %1738 = vmatprep.subr.bf16.mxu1 %v7086_v45  ;;  %1784 = vmatpush1.bf16.msra.mxu0 %v7095_v54 }
 0x325   : > { %6609 = vmatprep.subr.bf16.mxu0 %v7102_v56 }
 0x327   : > { %1739 = vmatpush1.bf16.msra.mxu1 %v7084_v47  ;;  %6180 = vmatmul.mubr.msk.bf16.vlgmr.msra.gmra.mxu0 %vm1683_vm4, %v8365_v19 }
 0x328   : > { %1740 = vmatprep.subr.bf16.mxu1 %v7092_v49  ;;  %6610 = vmatpush3.bf16.msra.mxu0 %v7102_v56 }
 0x329   : > { %6611 = vmatprep.subr.bf16.mxu0 %v7106_v59 }
 0x32b   : > { %1741 = vmatpush1.bf16.msra.mxu1 %v7090_v51 }
 0x32c   : > { %1742 = vmatprep.subr.bf16.mxu1 %v7098_v53  ;;  %6612 = vmatpush3.bf16.msra.mxu0 %v7106_v59 }
 0x32d   : > { %6613 = vmatprep.subr.bf16.mxu0 %v7110_v9 }
 0x32f   : > { %1743 = vmatpush1.bf16.msra.mxu1 %v7096_v55 }
 0x330   : > { %2036 = vmatprep.subr.bf16.mxu1 %v7101_v57  ;;  %6614 = vmatpush3.bf16.msra.mxu0 %v7110_v9 }
 0x331   : > { %6615 = vmatprep.subr.bf16.mxu0 %v7114_v15 }
 0x332   : > { %6179 = vmatmul.mubr.msk.bf16.vlgmr.msra.gmra.mxu1 %vm1683_vm4, %v8365_v19 }
 0x333   : > { %2037 = vmatpush1.bf16.msra.mxu1 %v7099_v58  ;;  %2060 = vmatprep.mubr.bf16.mxu1 %v7778_v6 }
 0x334   : > { %2038 = vmatprep.subr.bf16.mxu1 %v7105_v60  ;;  %6616 = vmatpush3.bf16.msra.mxu0 %v7114_v15 }
 0x337   : > { %2039 = vmatpush1.bf16.msra.mxu1 %v7103_v61 }
 0x338   : > { %2040 = vmatprep.subr.bf16.mxu1 %v7109_v62 }
 0x33b   : > { %2041 = vmatpush1.bf16.msra.mxu1 %v7107_v63 }
 0x39b   : > { %v1828_v20 = vpop.xlane.xlu0 %1827  ;;  %v1834_v22 = vpop.xlane.xlu1 %1833 }
 0x39c   : > { %v1839_v21 = vmul.f32 0.015625, %v1828_v20  ;;  %v1841_v23 = vmul.f32 0.015625, %v1834_v22 }
 0x39e   : > { %v8370_v24 = vsub.f32 %v1810_v1, %v1839_v21  ;;  %v8372_v25 = vsub.f32 %v1812_v5, %v1841_v23  ;;  %v8419_v1 = vshrl.u32 %v1533_v0, 7  ;;  %v1531_v5 = vld [vmem:[%s8220_s23] sm:$0x3f] }
 0x39f   : > { %v1831_v26 = vpop.xlane.xlu0 %1830  ;;  %v1837_v28 = vpop.xlane.xlu1 %1836 }
 0x3a0   : > { %v1840_v27 = vmul.f32 0.015625, %v1831_v26  ;;  %v1847_v29 = vmul.f32 %v8370_v24, %v8370_v24  ;;  %v1842_v30 = vmul.f32 0.015625, %v1837_v28  ;;  %v1849_v31 = vmul.f32 %v8372_v25, %v8372_v25 }
 0x3a1   : > { %v8422_v4 = vsub.s32 0, %v8419_v1  ;;  %v8428_v10 = vsub.s32 %v1882_v7, %v8419_v1 }
 0x3a2   : > { %v8378_v32 = vsub.f32 %v1811_v8, %v1840_v27  ;;  %v1851_v33 = vsel %vm1683_vm4, %v1847_v29, 0.0  ;;  %v8381_v34 = vsub.f32 %v1813_v11, %v1842_v30  ;;  %v1857_v35 = vsel %vm1683_vm4, %v1849_v31, 0.0  ;;  %v7113_v11 = vld [vmem:[%s8259_s0 + $0x4] ss:$12 sps:$4 sm:$0xff]  }
 0x3a3   : > { %1852 = vadd.xlane.f32.xlu0 %v1851_v33  ;;  %v1536_v8 = vrot.slane %v1531_v5, %v8422_v4  ;;  %2042 = vmatprep.subr.bf16.mxu1 %v7113_v11  ;;  %v8445_v30 = vld [vmem:[%s9604_s3] sm:$0xff]  ;;  %v8459_v33 = vld [vmem:[%s9605_s12 + $0x8] sm:$0xff] }
 0x3a4   : > { %v1848_v36 = vmul.f32 %v8378_v32, %v8378_v32  ;;  %v1850_v37 = vmul.f32 %v8381_v34, %v8381_v34  ;;  %2043 = vmatpush1.bf16.msra.mxu1 %v7111_v13  ;;  %v8450_v31 = vld [vmem:[%s9605_s12] sm:$0xff] }
 0x3a6   : > { %v1854_v38 = vsel %vm1683_vm4, %v1848_v36, 0.0  ;;  %v1860_v39 = vsel %vm1683_vm4, %v1850_v37, 0.0 }
 0x3a7   : > { %1858 = vadd.xlane.f32.xlu0 %v1857_v35  ;;  %1855 = vadd.xlane.f32.xlu1 %v1854_v38  ;;  %v8466_v35 = vld [vmem:[%s9604_s3 + $0x8] sm:$0xff] }
 0x3ab   : > { %1861 = vadd.xlane.f32.xlu1 %v1860_v39 }
 0x3e2   : > { %v1721_v12 = vpop.f32.mrf.mxu1 }
 0x3e3   : > { %v1722_v14 = vadd.f32 %v1721_v12, %v1536_v8 }
 0x3e4   : > { %v8433_v16 = vpop.f32.mrf.mxu1 }
 0x3e5   : > { %v1886_v17 = vrot.slane %v1722_v14, %v8428_v10 }
 0x3e6   : > { %v1725_v18 = vpop.f32.mrf.mxu1 }
 0x3e7   : > { %v1887_v20 = vcombine.high %v1886_v17, %v1886_v17  ;;  %v1894_v21 = vrot.slane %v1886_v17, %v8428_v10 }
 0x3e8   : > { %v1726_v22 = vpop.f32.mrf.mxu1 }
 0x3e9   : > { %v1901_v23 = vrot.slane %v1887_v20, %v8428_v10  ;;  %v1904_v26 = vadd.f32 1.0, %v1894_v21  ;;  %v1929_v57 = vrot.slane %v1894_v21, %v8422_v4 }
 0x3eb   : > { %v1905_v27 = vadd.f32 1.0, %v1901_v23  ;;  %v1911_v28 = vrot.slane %v1904_v26, %v8422_v4  ;;  %v1933_v61 = vrot.slane %v1901_v23, %v8422_v4 }
 0x3ed   : > { %v1915_v29 = vrot.slane %v1905_v27, %v8422_v4  ;;  %1916 = vrot.lane.b32.xlu0 %v1911_v28, %s9529_s8 }
 0x3ef   : > { %1918 = vrot.lane.b32.xlu1 %v1915_v29, %s9529_s8 }
 0x3f1   : > { %2168 = vrot.lane.b32.xlu0 %v8445_v30, %s9529_s8 }
 0x3f3   : > { %2136 = vrot.lane.b32.xlu1 %v8450_v31, %s9529_s8 }
 0x3f7   : > { %2138 = vrot.lane.b32.xlu1 %v8459_v33, %s9529_s8 }
 0x3fb   : > { %2170 = vrot.lane.b32.xlu1 %v8466_v35, %s9529_s8 }
 0x42c   : > { %v1853_v36 = vpop.xlane.xlu0 %1852 }
 0x42d   : > { %v1863_v39 = vmul.f32 0.015625, %v1853_v36 }
 0x42f   : > { %v1867_v44 = vadd.f32 1e-06, %v1863_v39 }
 0x430   : > { %v1856_v37 = vpop.xlane.xlu1 %1855  ;;  %v1859_v38 = vpop.xlane.xlu0 %1858 }
 0x431   : > { %v1864_v41 = vmul.f32 0.015625, %v1856_v37  ;;  %v1865_v42 = vmul.f32 0.015625, %v1859_v38  ;;  %7195 = vrsqrt.f32 %v1867_v44 }
 0x433   : > { %v1868_v45 = vadd.f32 1e-06, %v1864_v41  ;;  %v1869_v46 = vadd.f32 1e-06, %v1865_v42 }
 0x434   : > { %v1862_v40 = vpop.xlane.xlu1 %1861 }
 0x435   : > { %v1866_v43 = vmul.f32 0.015625, %v1862_v40  ;;  %7197 = vrsqrt.f32 %v1868_v45 }
 0x436   : > { %7199 = vrsqrt.f32 %v1869_v46 }
 0x437   : > { %v1870_v47 = vadd.f32 1e-06, %v1866_v43 }
 0x439   : > { %7201 = vrsqrt.f32 %v1870_v47 }
 0x43e   : > { %v7196_v48 = vpop.eup %7195 }
 0x43f   : > { %v1875_v52 = vmul.f32 %v7196_v48, %v8370_v24 }
 0x442   : > { %v7198_v49 = vpop.eup %7197 }
 0x443   : > { %v7200_v50 = vpop.eup %7199  ;;  %v1876_v53 = vmul.f32 %v7198_v49, %v8378_v32 }
 0x444   : > { %v1877_v55 = vmul.f32 %v7200_v50, %v8372_v25  ;;  %v8481_v25 = vpop.f32.mrf.mxu0 }
 0x446   : > { %v7202_v51 = vpop.eup %7201  ;;  %v8485_v7 = vpop.f32.mrf.mxu0 }
 0x447   : > { %v1878_v56 = vmul.f32 %v7202_v51, %v8381_v34  ;;  %v8483_v34 = vpop.f32.mrf.mxu1 }
 0x448   : > { %v1807_v9 = vpop.f32.mrf.mxu0 }
 0x449   : > { %v8487_v8 = vpop.f32.mrf.mxu1 }
 0x44a   : > { %v1808_v12 = vpop.f32.mrf.mxu0 }
 0x44b   : > { %v1766_v11 = vpop.f32.mrf.mxu1 }
 0x44d   : > { %v1767_v13 = vpop.f32.mrf.mxu1 }
 0x45f   : > { %v1917_v54 = vpop.permute.xlu0 %1916 }
 0x460   : > { %v1922_v58 = vmul.f32 %v1917_v54, %v1875_v52  ;;  %v1923_v59 = vmul.f32 %v1917_v54, %v1876_v53 }
 0x461   : > { %v1919_v60 = vpop.permute.xlu1 %1918 }
 0x462   : > { %v1924_v62 = vmul.f32 %v1919_v60, %v1877_v55  ;;  %v1925_v63 = vmul.f32 %v1919_v60, %v1878_v56  ;;  %v1936_v0 = vadd.f32 %v1929_v57, %v1922_v58  ;;  %v1937_v2 = vadd.f32 %v1929_v57, %v1923_v59 }
 0x463   : > { %v2169_v46 = vpop.permute.xlu0 %2168 }
 0x464   : > { %v1938_v3 = vadd.f32 %v1933_v61, %v1924_v62  ;;  %v1939_v24 = vadd.f32 %v1933_v61, %v1925_v63  ;;  %v1940_v5 = vpack.c.bf16 %v1937_v2, %v1936_v0 }
 0x465   : > { %v2137_v28 = vpop.permute.xlu1 %2136 }
 0x466   : > { %v1941_v32 = vpack.c.bf16 %v1939_v24, %v1938_v3  ;;  %6193 = vmatmul.mubr.msk.bf16.vlgmr.msra.gmra.mxu1 %vm1683_vm4, %v1940_v5  ;;  %6617 = vmatprep.mubr.msk.bf16.mxu0 %vm1683_vm4, %v1940_v5 }
 0x467   : > { %2070 = vmatprep.mubr.bf16.mxu1 %v7778_v6 }
 0x468   : > { %6618 = vmatmul.mubr.msk.bf16.vlgmr.msra.gmra.mxu0 %vm1683_vm4, %v1941_v32 }
 0x46e   : > { %6194 = vmatmul.mubr.msk.bf16.gmra.mxu1 %vm1683_vm4, %v1941_v32 }
 0x526   : > { %v2062_v14 = vpop.f32.mrf.mxu1 }
 0x527   : > { %v2174_v55 = vmul.f32 %v2169_v46, %v2062_v14  ;;  %v2130_v62 = vmul.f32 %v2062_v14, %v8445_v30 }
 0x528   : > { %v6619_v15 = vpop.f32.mrf.mxu0  ;;  %v2064_v17 = vpop.f32.mrf.mxu1 }
 0x529   : > { %v2180_v18 = vmul.f32 %v6619_v15, %v8450_v31  ;;  %v2142_v37 = vmul.f32 %v2137_v28, %v2064_v17 }
 0x52a   : > { %v2115_v20 = vpop.f32.mrf.mxu0  ;;  %v2066_v21 = vpop.f32.mrf.mxu1 }
 0x52b   : > { %2190 = vrot.lane.b32.xlu0 %v2180_v18, %s9529_s8  ;;  %v2178_v23 = vmul.f32 %v2115_v20, %v8450_v31  ;;  %v2139_v31 = vpop.permute.xlu1 %2138  ;;  %v2131_v63 = vmul.f32 %v2066_v21, %v8466_v35 }
 0x52c   : > { %v6620_v22 = vpop.f32.mrf.mxu0  ;;  %v2068_v26 = vpop.f32.mrf.mxu1 }
 0x52d   : > { %v2181_v27 = vmul.f32 %v6620_v22, %v8459_v33  ;;  %v2143_v41 = vmul.f32 %v2139_v31, %v2068_v26  ;;  %v8502_v45 = vpack.c.bf16 %v2068_v26, %v2064_v17 }
 0x52e   : > { %v2118_v29 = vpop.f32.mrf.mxu0  ;;  %v2072_v36 = vpop.f32.mrf.mxu1 }
 0x52f   : > { %2186 = vrot.lane.b32.xlu0 %v2178_v23, %s9529_s8  ;;  %2192 = vrot.lane.b32.xlu1 %v2181_v27, %s9529_s8  ;;  %v2179_v38 = vmul.f32 %v2118_v29, %v8459_v33  ;;  %v2171_v47 = vpop.permute.xlu1 %2170  ;;  %v2176_v49 = vmul.f32 %v2169_v46, %v2072_v36  ;;  %v2132_v32 = vmul.f32 %v2072_v36, %v8445_v30  ;;  %v8550_v36 = vld [vmem:[%s9606_s21] sm:$0xff] }
 0x530   : > { %v2074_v39 = vpop.f32.mrf.mxu1  ;;  %v2175_v56 = vmul.f32 %v2171_v47, %v2066_v21 }
 0x531   : > { %v2144_v42 = vmul.f32 %v2137_v28, %v2074_v39 }
 0x532   : > { %v2076_v40 = vpop.f32.mrf.mxu1 }
 0x533   : > { %2188 = vrot.lane.b32.xlu1 %v2179_v38, %s9529_s8  ;;  %2150 = vrot.lane.b32.xlu0 %v2142_v37, %s9529_s8  ;;  %v2177_v50 = vmul.f32 %v2171_v47, %v2076_v40  ;;  %v2133_v9 = vmul.f32 %v2076_v40, %v8466_v35  ;;  %v8555_v40 = vld [vmem:[%s9606_s21 + $0x10] sm:$0xff] }
 0x534   : > { %v2078_v43 = vpop.f32.mrf.mxu1 }
 0x535   : > { %v8498_v44 = vpack.c.bf16 %v2078_v43, %v2074_v39  ;;  %v2145_v33 = vmul.f32 %v2139_v31, %v2078_v43 }
 0x537   : > { %2154 = vrot.lane.b32.xlu0 %v2144_v42, %s9529_s8  ;;  %2152 = vrot.lane.b32.xlu1 %v2143_v41, %s9529_s8  ;;  %v8561_v42 = vld [vmem:[%s9606_s21 + $0x8] sm:$0xff] }
 0x538   : > { %6629 = vmatprep.subr.bf16.mxu0 %v8498_v44 }
 0x539   : > { %6630 = vmatpush3.bf16.msra.mxu0 %v8498_v44 }
 0x53a   : > { %6631 = vmatprep.subr.bf16.mxu0 %v8502_v45 }
 0x53b   : > { %2156 = vrot.lane.b32.xlu1 %v2145_v33, %s9529_s8 }
 0x53d   : > { %6632 = vmatpush3.bf16.msra.mxu0 %v8502_v45 }
 0x59d   : > { %v2191_v48 = vpop.permute.xlu0 %2190 }
 0x59e   : > { %v2200_v53 = vadd.f32 %v2191_v48, %v2176_v49  ;;  %v8568_v48 = vld [vmem:[%s9606_s21 + $0x18] sm:$0xff] }
 0x5a1   : > { %v2187_v51 = vpop.permute.xlu0 %2186  ;;  %v2193_v52 = vpop.permute.xlu1 %2192 }
 0x5a2   : > { %v2201_v54 = vadd.f32 %v2193_v52, %v2177_v50  ;;  %v2198_v60 = vadd.f32 %v2187_v51, %v2174_v55 }
 0x5a4   : > { %v8509_v57 = vpack.c.bf16 %v2201_v54, %v2200_v53 }
 0x5a5   : > { %v2151_v58 = vpop.permute.xlu0 %2150  ;;  %v2189_v59 = vpop.permute.xlu1 %2188 }
 0x5a6   : > { %v2199_v61 = vadd.f32 %v2189_v59, %v2175_v56  ;;  %2212 = vrot.lane.b32.xlu0 %v8509_v57, %s9529_s8  ;;  %v2162_v3 = vadd.f32 %v2151_v58, %v2130_v62 }
 0x5a8   : > { %v8515_v0 = vpack.c.bf16 %v2199_v61, %v2198_v60 }
 0x5a9   : > { %v2153_v2 = vpop.permute.xlu1 %2152  ;;  %v2155_v5 = vpop.permute.xlu0 %2154 }
 0x5aa   : > { %v2163_v24 = vadd.f32 %v2153_v2, %v2131_v63  ;;  %2394 = vrot.lane.b32.xlu0 %v8509_v57, %s7781_s7  ;;  %2210 = vrot.lane.b32.xlu1 %v8515_v0, %s9529_s8  ;;  %v2164_v13 = vadd.f32 %v2155_v5, %v2132_v32 }
 0x5ac   : > { %v8523_v11 = vpack.c.bf16 %v2163_v24, %v2162_v3 }
 0x5ad   : > { %v2157_v12 = vpop.permute.xlu1 %2156 }
 0x5ae   : > { %v2165_v14 = vadd.f32 %v2157_v12, %v2133_v9  ;;  %2392 = vrot.lane.b32.xlu1 %v8515_v0, %s7781_s7  ;;  %2388 = vrot.lane.b32.xlu0 %v8523_v11, %s7782_s1 }
 0x5af   : > { %6625 = vmatprep.mubr.msk.bf16.mxu1 %vm2214_vm5, %v8523_v11 }
 0x5b0   : > { %v8531_v15 = vpack.c.bf16 %v2165_v14, %v2164_v13 }
 0x5b2   : > { %2390 = vrot.lane.b32.xlu1 %v8531_v15, %s7782_s1 }
 0x618   : > { %v2213_v30 = vpop.permute.xlu0 %2212 }
 0x619   : > { %6809 = vmatprep.subr.msk.bf16.mxu1 %vm2214_vm5, %v2213_v30  ;;  %v2225_v35 = vsel %vm2214_vm5, %v2213_v30, 0 }
 0x61a   : > { %6622 = vmatpush3.bf16.xpose.msra.mxu1 %v2225_v35 }
 0x61c   : > { %v2211_v17 = vpop.permute.xlu1 %2210  ;;  %v2395_v20 = vpop.permute.xlu0 %2394 }
 0x61d   : > { %6810 = vmatprep.subr.msk.bf16.mxu1 %vm2214_vm5, %v2211_v17  ;;  %v2222_v18 = vsel %vm2214_vm5, %v2211_v17, 0  ;;  %v2406_v22 = vsel %vm2214_vm5, %v2395_v20, 0 }
 0x620   : > { %v2389_v21 = vpop.permute.xlu0 %2388  ;;  %v2393_v23 = vpop.permute.xlu1 %2392 }
 0x621   : > { %v2403_v26 = vsel %vm2214_vm5, %v2393_v23, 0 }
 0x622   : > { %6624 = vmatpush3.bf16.xpose.msra.mxu1 %v2222_v18 }
 0x623   : > { %6811 = vmatprep.subr.msk.bf16.mxu1 %vm2214_vm5, %v2395_v20 }
 0x624   : > { %v2391_v27 = vpop.permute.xlu1 %2390 }
 0x629   : > { %6626 = vmatmul.mubr.msk.bf16.vlgmr.msra.gmra.mxu1 %vm2214_vm5, %v8531_v15 }
 0x62a   : > { %6638 = vmatpush3.bf16.xpose.msra.mxu1 %v2406_v22  ;;  %6641 = vmatprep.mubr.msk.bf16.mxu1 %vm2214_vm5, %v2389_v21 }
 0x62b   : > { %6812 = vmatprep.subr.msk.bf16.mxu1 %vm2214_vm5, %v2393_v23 }
 0x632   : > { %6640 = vmatpush3.bf16.xpose.msra.mxu1 %v2403_v26 }
 0x639   : > { %6642 = vmatmul.mubr.msk.bf16.vlgmr.msra.gmra.mxu1 %vm2214_vm5, %v2391_v27 }
 0x6e9   : > { %v6627_v28 = vpop.f32.mrf.mxu1 }
 0x6ea   : > { %v2278_v37 = vmul.f32 0.25, %v6627_v28 }
 0x6eb   : > { %v2261_v29 = vpop.f32.mrf.mxu1 }
 0x6ec   : > { %v2276_v38 = vmul.f32 0.25, %v2261_v29  ;;  %v2282_v47 = vadd.f32 %v2278_v37, %v8555_v40 }
 0x6ed   : > { %v6628_v39 = vpop.f32.mrf.mxu1 }
 0x6ee   : > { %v2280_v31 = vadd.f32 %v2276_v38, %v8550_v36  ;;  %v2279_v43 = vmul.f32 0.25, %v6628_v39  ;;  %v2291_v50 = vsel %vm2284_vm6, %v2282_v47, -inf }
 0x6ef   : > { %v2264_v41 = vpop.f32.mrf.mxu1 }
 0x6f0   : > { %v2277_v33 = vmul.f32 0.25, %v2264_v41  ;;  %v2285_v46 = vsel %vm2284_vm6, %v2280_v31, -inf  ;;  %v2283_v52 = vadd.f32 %v2279_v43, %v8568_v48 }
 0x6f1   : > { %2286 = vmax.xlane.f32.xlu0 %v2285_v46 }
 0x6f2   : > { %v2281_v49 = vadd.f32 %v2277_v33, %v8561_v42  ;;  %v2294_v53 = vsel %vm2284_vm6, %v2283_v52, -inf }
 0x6f4   : > { %v2288_v51 = vsel %vm2284_vm6, %v2281_v49, -inf }
 0x6f5   : > { %2292 = vmax.xlane.f32.xlu0 %v2291_v50  ;;  %2289 = vmax.xlane.f32.xlu1 %v2288_v51 }
 0x6f9   : > { %2295 = vmax.xlane.f32.xlu0 %v2294_v53  ;;  %v6643_v54 = vpop.f32.mrf.mxu1 }
 0x6fa   : > { %v2459_v56 = vmul.f32 0.25, %v6643_v54 }
 0x6fb   : > { %v2442_v55 = vpop.f32.mrf.mxu1 }
 0x6fc   : > { %v2457_v58 = vmul.f32 0.25, %v2442_v55  ;;  %v2463_v3 = vadd.f32 %v2459_v56, %v8555_v40 }
 0x6fd   : > { %v6644_v59 = vpop.f32.mrf.mxu1 }
 0x6fe   : > { %v2461_v60 = vadd.f32 %v2457_v58, %v8550_v36  ;;  %v2460_v62 = vmul.f32 0.25, %v6644_v59  ;;  %v2471_v5 = vsel %vm2284_vm6, %v2463_v3, -inf }
 0x6ff   : > { %v2445_v61 = vpop.f32.mrf.mxu1 }
 0x700   : > { %v2458_v63 = vmul.f32 0.25, %v2445_v61  ;;  %v2465_v2 = vsel %vm2284_vm6, %v2461_v60, -inf  ;;  %v2464_v9 = vadd.f32 %v2460_v62, %v8568_v48 }
 0x701   : > { %2466 = vmax.xlane.f32.xlu0 %v2465_v2 }
 0x702   : > { %v2462_v24 = vadd.f32 %v2458_v63, %v8561_v42  ;;  %v2474_v12 = vsel %vm2284_vm6, %v2464_v9, -inf }
 0x704   : > { %v2468_v32 = vsel %vm2284_vm6, %v2462_v24, -inf }
 0x705   : > { %2472 = vmax.xlane.f32.xlu0 %v2471_v5  ;;  %2469 = vmax.xlane.f32.xlu1 %v2468_v32 }
 0x709   : > { %2475 = vmax.xlane.f32.xlu1 %v2474_v12 }
 0x77a   : > { %v2287_v13 = vpop.xlane.xlu0 %2286 }
 0x77b   : > { %v2297_v14 = vsub.f32 %v2280_v31, %v2287_v13 }
 0x77d   : > { %v2301_v18 = vmul.f32 1.442695, %v2297_v14 }
 0x77e   : > { %v2293_v30 = vpop.xlane.xlu0 %2292  ;;  %v2290_v35 = vpop.xlane.xlu1 %2289 }
 0x77f   : > { %v2299_v17 = vsub.f32 %v2282_v47, %v2293_v30  ;;  %v2298_v21 = vsub.f32 %v2281_v49, %v2290_v35 }
 0x781   : > { %v2305_v20 = vmul.f32 1.442695, %v2299_v17  ;;  %v2303_v26 = vmul.f32 1.442695, %v2298_v21 }
 0x782   : > { %v2296_v22 = vpop.xlane.xlu0 %2295 }
 0x783   : > { %7203 = vpow2.f32 %v2305_v20  ;;  %v2300_v23 = vsub.f32 %v2283_v52, %v2296_v22 }
 0x784   : > { %7205 = vpow2.f32 %v2301_v18 }
 0x785   : > { %v2307_v27 = vmul.f32 1.442695, %v2300_v23 }
 0x787   : > { %7207 = vpow2.f32 %v2307_v27 }
 0x788   : > { %7209 = vpow2.f32 %v2303_v26 }
 0x78a   : > { %v2467_v28 = vpop.xlane.xlu0 %2466 }
 0x78b   : > { %v2477_v29 = vsub.f32 %v2461_v60, %v2467_v28 }
 0x78d   : > { %v2481_v31 = vmul.f32 1.442695, %v2477_v29 }
 0x78e   : > { %v2473_v37 = vpop.xlane.xlu0 %2472  ;;  %v2470_v56 = vpop.xlane.xlu1 %2469 }
 0x78f   : > { %v2479_v38 = vsub.f32 %v2463_v3, %v2473_v37  ;;  %v2478_v60 = vsub.f32 %v2462_v24, %v2470_v56 }
 0x790   : > { %v7204_v39 = vpop.eup %7203 }
 0x791   : > { %v2485_v41 = vmul.f32 1.442695, %v2479_v38  ;;  %v2315_v43 = vsel %vm2284_vm6, %v7204_v39, 0.0  ;;  %v7206_v33 = vpop.eup %7205  ;;  %v2483_v62 = vmul.f32 1.442695, %v2478_v60 }
 0x792   : > { %2316 = vadd.xlane.f32.xlu0 %v2315_v43  ;;  %v2309_v47 = vsel %vm2284_vm6, %v7206_v33, 0.0  ;;  %v2476_v58 = vpop.xlane.xlu1 %2475 }
 0x793   : > { %7211 = vpow2.f32 %v2485_v41  ;;  %v2480_v59 = vsub.f32 %v2464_v9, %v2476_v58 }
 0x794   : > { %v7208_v46 = vpop.eup %7207  ;;  %7213 = vpow2.f32 %v2481_v31 }
 0x795   : > { %v2318_v49 = vsel %vm2284_vm6, %v7208_v46, 0.0  ;;  %v7210_v50 = vpop.eup %7209  ;;  %v2487_v61 = vmul.f32 1.442695, %v2480_v59 }
 0x796   : > { %2310 = vadd.xlane.f32.xlu0 %v2309_v47  ;;  %2319 = vadd.xlane.f32.xlu1 %v2318_v49  ;;  %v2312_v51 = vsel %vm2284_vm6, %v7210_v50, 0.0 }
 0x797   : > { %7215 = vpow2.f32 %v2487_v61 }
 0x798   : > { %7217 = vpow2.f32 %v2483_v62 }
 0x79a   : > { %2313 = vadd.xlane.f32.xlu1 %v2312_v51 }
 0x7a0   : > { %v8587_v52 = vpop.eup %7211 }
 0x7a1   : > { %v2495_v53 = vsel %vm2284_vm6, %v8587_v52, 0.0  ;;  %v8591_v54 = vpop.eup %7213 }
 0x7a2   : > { %2496 = vadd.xlane.f32.xlu0 %v2495_v53  ;;  %v2489_v55 = vsel %vm2284_vm6, %v8591_v54, 0.0 }
 0x7a4   : > { %v7216_v63 = vpop.eup %7215 }
 0x7a5   : > { %v2498_v2 = vsel %vm2284_vm6, %v7216_v63, 0.0  ;;  %v7218_v3 = vpop.eup %7217 }
 0x7a6   : > { %2490 = vadd.xlane.f32.xlu0 %v2489_v55  ;;  %v2492_v5 = vsel %vm2284_vm6, %v7218_v3, 0.0 }
 0x7ab   : > { %2513 = vrot.lane.b32.xlu1 %v8502_v45, %s7782_s1 }
 0x7bc   : > { %2515 = vrot.lane.b32.xlu0 %v8498_v44, %s7782_s1 }
 0x7c0   : > { %2574 = vrot.lane.b32.xlu0 %v8523_v11, %s7783_s25 }
 0x7cf   : > { %2499 = vadd.xlane.f32.xlu1 %v2498_v2 }
 0x7d3   : > { %2493 = vadd.xlane.f32.xlu1 %v2492_v5 }
 0x7e4   : > { %2580 = vrot.lane.b32.xlu1 %v8509_v57, %s7784_s22 }
 0x7e8   : > { %2578 = vrot.lane.b32.xlu1 %v8515_v0, %s7784_s22 }
 0x7ec   : > { %2576 = vrot.lane.b32.xlu1 %v8531_v15, %s7783_s25 }
 0x81b   : > { %v2317_v24 = vpop.xlane.xlu0 %2316 }
 0x81f   : > { %v2311_v32 = vpop.xlane.xlu0 %2310  ;;  %v2320_v9 = vpop.xlane.xlu1 %2319 }
 0x820   : > { %7219 = vrcp.f32 %v2320_v9 }
 0x821   : > { %7221 = vrcp.f32 %v2311_v32 }
 0x822   : > { %7223 = vrcp.f32 %v2317_v24 }
 0x823   : > { %v2314_v12 = vpop.xlane.xlu1 %2313 }
 0x824   : > { %7225 = vrcp.f32 %v2314_v12 }
 0x827   : > { %v2514_v29 = vpop.permute.xlu1 %2513 }
 0x82b   : > { %v2497_v13 = vpop.xlane.xlu0 %2496 }
 0x82d   : > { %v7220_v14 = vpop.eup %7219 }
 0x82e   : > { %v7222_v30 = vpop.eup %7221  ;;  %v2328_v20 = vmul.f32 %v7220_v14, %v7208_v46 }
 0x82f   : > { %v2491_v35 = vpop.xlane.xlu0 %2490  ;;  %v7224_v17 = vpop.eup %7223  ;;  %v2325_v21 = vmul.f32 %v7222_v30, %v7206_v33 }
 0x830   : > { %v2327_v26 = vmul.f32 %v7224_v17, %v7204_v39 }
 0x831   : > { %v7226_v18 = vpop.eup %7225 }
 0x832   : > { %v2326_v22 = vmul.f32 %v7226_v18, %v7210_v50  ;;  %v2330_v28 = vpack.c.bf16 %v2328_v20, %v2327_v26 }
 0x833   : > { %v2516_v23 = vpop.permute.xlu0 %2515 }
 0x834   : > { %6645 = vmatprep.subr.bf16.mxu0 %v2516_v23  ;;  %v2329_v27 = vpack.c.bf16 %v2326_v22, %v2325_v21 }
 0x836   : > { %6633 = vmatprep.mubr.msk.bf16.mxu0 %vm2284_vm6, %v2329_v27 }
 0x837   : > { %6634 = vmatmul.mubr.msk.bf16.vlgmr.msra.gmra.mxu0 %vm2284_vm6, %v2330_v28  ;;  %v2575_v55 = vpop.permute.xlu0 %2574 }
 0x838   : > { %6646 = vmatpush3.bf16.msra.mxu0 %v2516_v23 }
 0x839   : > { %6647 = vmatprep.subr.bf16.mxu0 %v2514_v29 }
 0x83c   : > { %6648 = vmatpush3.bf16.msra.mxu0 %v2514_v29 }
 0x858   : > { %v2500_v37 = vpop.xlane.xlu1 %2499 }
 0x859   : > { %7227 = vrcp.f32 %v2500_v37 }
 0x85a   : > { %7229 = vrcp.f32 %v2491_v35 }
 0x85b   : > { %7231 = vrcp.f32 %v2497_v13 }
 0x85c   : > { %v2494_v38 = vpop.xlane.xlu1 %2493 }
 0x85d   : > { %7233 = vrcp.f32 %v2494_v38 }
 0x860   : > { %v2581_v31 = vpop.permute.xlu1 %2580 }
 0x861   : > { %6813 = vmatprep.subr.msk.bf16.mxu0 %vm2214_vm5, %v2581_v31  ;;  %v2592_v56 = vsel %vm2214_vm5, %v2581_v31, 0 }
 0x864   : > { %v2579_v58 = vpop.permute.xlu1 %2578 }
 0x866   : > { %v7228_v39 = vpop.eup %7227 }
 0x867   : > { %v7230_v41 = vpop.eup %7229  ;;  %v2508_v46 = vmul.f32 %v7228_v39, %v7216_v63 }
 0x868   : > { %v7232_v43 = vpop.eup %7231  ;;  %v2505_v47 = vmul.f32 %v7230_v41, %v8591_v54  ;;  %v2589_v54 = vsel %vm2214_vm5, %v2579_v58, 0  ;;  %v2577_v59 = vpop.permute.xlu1 %2576 }
 0x869   : > { %v2507_v50 = vmul.f32 %v7232_v43, %v8587_v52 }
 0x86a   : > { %v7234_v33 = vpop.eup %7233 }
 0x86b   : > { %v2506_v49 = vmul.f32 %v7234_v33, %v7218_v3  ;;  %v2510_v53 = vpack.c.bf16 %v2508_v46, %v2507_v50 }
 0x86d   : > { %v2509_v51 = vpack.c.bf16 %v2506_v49, %v2505_v47 }
 0x86f   : > { %6649 = vmatprep.mubr.msk.bf16.mxu0 %vm2284_vm6, %v2509_v51 }
 0x870   : > { %6650 = vmatmul.mubr.msk.bf16.vlgmr.msra.gmra.mxu0 %vm2284_vm6, %v2510_v53 }
 0x871   : > { %6654 = vmatpush3.bf16.xpose.msra.mxu0 %v2592_v56  ;;  %6657 = vmatprep.mubr.msk.bf16.mxu0 %vm2214_vm5, %v2575_v55 }
 0x872   : > { %6814 = vmatprep.subr.msk.bf16.mxu0 %vm2214_vm5, %v2579_v58 }
 0x879   : > { %6656 = vmatpush3.bf16.xpose.msra.mxu0 %v2589_v54 }
 0x880   : > { %6658 = vmatmul.mubr.msk.bf16.vlgmr.msra.gmra.mxu0 %vm2214_vm5, %v2577_v59 }
 0x8f7   : > { %v8621_v52 = vpop.f32.mrf.mxu0 }
 0x8f9   : > { %v8623_v60 = vpop.f32.mrf.mxu0 }
 0x8fb   : > { %v8625_v61 = vpop.f32.mrf.mxu0 }
 0x8fd   : > { %v8627_v62 = vpop.f32.mrf.mxu0 }
 0x930   : > { %v8629_v63 = vpop.f32.mrf.mxu0 }
 0x932   : > { %v8631_v2 = vpop.f32.mrf.mxu0 }
 0x934   : > { %v8633_v3 = vpop.f32.mrf.mxu0 }
 0x935   : > { %v7008_v5 = vpack.i.bf16 %v8633_v3, %v8629_v63 }
 0x936   : > { %v8637_v24 = vpop.f32.mrf.mxu0 }
 0x937   : > { %v7003_v32 = vpack.i.bf16 %v8637_v24, %v8631_v2 }
 0x940   : > { %v6659_v9 = vpop.f32.mrf.mxu0 }
 0x941   : > { %v2645_v13 = vmul.f32 0.25, %v6659_v9 }
 0x942   : > { %v2628_v12 = vpop.f32.mrf.mxu0 }
 0x943   : > { %v2643_v14 = vmul.f32 0.25, %v2628_v12  ;;  %v2649_v22 = vadd.f32 %v2645_v13, %v8555_v40 }
 0x944   : > { %v6660_v30 = vpop.f32.mrf.mxu0 }
 0x945   : > { %v2647_v35 = vadd.f32 %v2643_v14, %v8550_v36  ;;  %v2646_v18 = vmul.f32 0.25, %v6660_v30  ;;  %v2657_v26 = vsel %vm2284_vm6, %v2649_v22, -inf }
 0x946   : > { %v2631_v17 = vpop.f32.mrf.mxu0 }
 0x947   : > { %v2644_v20 = vmul.f32 0.25, %v2631_v17  ;;  %v2651_v21 = vsel %vm2284_vm6, %v2647_v35, -inf  ;;  %v2650_v28 = vadd.f32 %v2646_v18, %v8568_v48 }
 0x948   : > { %2652 = vmax.xlane.f32.xlu0 %v2651_v21 }
 0x949   : > { %v2648_v23 = vadd.f32 %v2644_v20, %v8561_v42  ;;  %v2660_v29 = vsel %vm2284_vm6, %v2650_v28, -inf }
 0x94b   : > { %v2654_v27 = vsel %vm2284_vm6, %v2648_v23, -inf }
 0x94c   : > { %2658 = vmax.xlane.f32.xlu0 %v2657_v26  ;;  %2655 = vmax.xlane.f32.xlu1 %v2654_v27 }
 0x950   : > { %2661 = vmax.xlane.f32.xlu0 %v2660_v29 }
 0x95d   : > { %2697 = vrot.lane.b32.xlu1 %v8502_v45, %s7783_s25 }
 0x9d1   : > { %v2653_v37 = vpop.xlane.xlu0 %2652 }
 0x9d2   : > { %v2663_v38 = vsub.f32 %v2647_v35, %v2653_v37 }
 0x9d4   : > { %v2667_v43 = vmul.f32 1.442695, %v2663_v38 }
 0x9d5   : > { %v2659_v31 = vpop.xlane.xlu0 %2658  ;;  %v2656_v39 = vpop.xlane.xlu1 %2655 }
 0x9d6   : > { %v2665_v41 = vsub.f32 %v2649_v22, %v2659_v31  ;;  %v2664_v46 = vsub.f32 %v2648_v23, %v2656_v39 }
 0x9d8   : > { %v2671_v33 = vmul.f32 1.442695, %v2665_v41  ;;  %v2669_v50 = vmul.f32 1.442695, %v2664_v46 }
 0x9d9   : > { %v2662_v47 = vpop.xlane.xlu0 %2661  ;;  %v2698_v13 = vpop.permute.xlu1 %2697 }
 0x9da   : > { %7235 = vpow2.f32 %v2671_v33  ;;  %v2666_v49 = vsub.f32 %v2650_v28, %v2662_v47 }
 0x9db   : > { %7237 = vpow2.f32 %v2667_v43 }
 0x9dc   : > { %v2673_v51 = vmul.f32 1.442695, %v2666_v49 }
 0x9de   : > { %7239 = vpow2.f32 %v2673_v51 }
 0x9df   : > { %7241 = vpow2.f32 %v2669_v50 }
 0x9e7   : > { %v7236_v53 = vpop.eup %7235 }
 0x9e8   : > { %v2681_v55 = vsel %vm2284_vm6, %v7236_v53, 0.0  ;;  %v7238_v56 = vpop.eup %7237 }
 0x9e9   : > { %2682 = vadd.xlane.f32.xlu0 %v2681_v55  ;;  %v2675_v54 = vsel %vm2284_vm6, %v7238_v56, 0.0 }
 0x9eb   : > { %v7240_v58 = vpop.eup %7239 }
 0x9ec   : > { %v2684_v59 = vsel %vm2284_vm6, %v7240_v58, 0.0  ;;  %v7242_v9 = vpop.eup %7241 }
 0x9ed   : > { %2676 = vadd.xlane.f32.xlu0 %v2675_v54  ;;  %2685 = vadd.xlane.f32.xlu1 %v2684_v59  ;;  %v2678_v12 = vsel %vm2284_vm6, %v7242_v9, 0.0 }
 0x9f1   : > { %2679 = vadd.xlane.f32.xlu1 %v2678_v12 }
 0xa02   : > { %2764 = vrot.lane.b32.xlu1 %v8509_v57, %s9533_s5 }
 0xa03   : > { %2699 = vrot.lane.b32.xlu0 %v8498_v44, %s7783_s25 }
 0xa06   : > { %2762 = vrot.lane.b32.xlu1 %v8515_v0, %s9533_s5 }
 0xa07   : > { %2758 = vrot.lane.b32.xlu0 %v8523_v11, %s9531_s14 }
 0xa0a   : > { %2760 = vrot.lane.b32.xlu1 %v8531_v15, %s9531_s14 }
 0xa72   : > { %v2683_v14 = vpop.xlane.xlu0 %2682 }
 0xa76   : > { %v2677_v30 = vpop.xlane.xlu0 %2676  ;;  %v2686_v35 = vpop.xlane.xlu1 %2685 }
 0xa77   : > { %7243 = vrcp.f32 %v2686_v35 }
 0xa78   : > { %7245 = vrcp.f32 %v2677_v30 }
 0xa79   : > { %7247 = vrcp.f32 %v2683_v14 }
 0xa7a   : > { %v2700_v57 = vpop.permute.xlu0 %2699  ;;  %v2680_v17 = vpop.xlane.xlu1 %2679 }
 0xa7b   : > { %7249 = vrcp.f32 %v2680_v17  ;;  %6661 = vmatprep.subr.bf16.mxu1 %v2700_v57 }
 0xa7c   : > { %6662 = vmatpush3.bf16.msra.mxu1 %v2700_v57 }
 0xa7d   : > { %6663 = vmatprep.subr.bf16.mxu1 %v2698_v13 }
 0xa7e   : > { %v2765_v0 = vpop.permute.xlu1 %2764  ;;  %v2759_v29 = vpop.permute.xlu0 %2758 }
 0xa7f   : > { %v2776_v37 = vsel %vm2214_vm5, %v2765_v0, 0 }
 0xa80   : > { %6664 = vmatpush3.bf16.msra.mxu1 %v2698_v13 }
 0xa81   : > { %6815 = vmatprep.subr.msk.bf16.mxu1 %vm2214_vm5, %v2765_v0 }
 0xa82   : > { %v2763_v38 = vpop.permute.xlu1 %2762 }
 0xa83   : > { %v2773_v31 = vsel %vm2214_vm5, %v2763_v38, 0 }
 0xa84   : > { %v7244_v11 = vpop.eup %7243 }
 0xa85   : > { %v7246_v18 = vpop.eup %7245  ;;  %v2694_v21 = vmul.f32 %v7244_v11, %v7240_v58 }
 0xa86   : > { %v7248_v15 = vpop.eup %7247  ;;  %v2691_v22 = vmul.f32 %v7246_v18, %v7238_v56  ;;  %v2761_v39 = vpop.permute.xlu1 %2760 }
 0xa87   : > { %v2693_v26 = vmul.f32 %v7248_v15, %v7236_v53 }
 0xa88   : > { %v7250_v20 = vpop.eup %7249 }
 0xa89   : > { %v2692_v23 = vmul.f32 %v7250_v20, %v7242_v9  ;;  %v2696_v28 = vpack.c.bf16 %v2694_v21, %v2693_v26 }
 0xa8b   : > { %v2695_v27 = vpack.c.bf16 %v2692_v23, %v2691_v22 }
 0xa8d   : > { %6665 = vmatprep.mubr.msk.bf16.mxu1 %vm2284_vm6, %v2695_v27 }
 0xa8e   : > { %6666 = vmatmul.mubr.msk.bf16.vlgmr.msra.gmra.mxu1 %vm2284_vm6, %v2696_v28 }
 0xa8f   : > { %6670 = vmatpush3.bf16.xpose.msra.mxu1 %v2776_v37  ;;  %6673 = vmatprep.mubr.msk.bf16.mxu1 %vm2214_vm5, %v2759_v29 }
 0xa90   : > { %6816 = vmatprep.subr.msk.bf16.mxu1 %vm2214_vm5, %v2763_v38 }
 0xa97   : > { %6672 = vmatpush3.bf16.xpose.msra.mxu1 %v2773_v31 }
 0xa9e   : > { %6674 = vmatmul.mubr.msk.bf16.vlgmr.msra.gmra.mxu1 %vm2214_vm5, %v2761_v39 }
 0xa9f   : > { %3345 = vmatprep.mubr.bf16.mxu1 %v7778_v6 }
 0xb4e   : > { %v6667_v41 = vpop.f32.mrf.mxu1 }
 0xb50   : > { %v2743_v43 = vpop.f32.mrf.mxu1 }
 0xb52   : > { %v6668_v33 = vpop.f32.mrf.mxu1 }
 0xb53   : > { %v7018_v46 = vpack.i.bf16 %v6668_v33, %v6667_v41 }
 0xb54   : > { %v2746_v47 = vpop.f32.mrf.mxu1 }
 0xb55   : > { %v7013_v49 = vpack.i.bf16 %v2746_v47, %v2743_v43 }
 0xb5e   : > { %v6675_v50 = vpop.f32.mrf.mxu1 }
 0xb5f   : > { %v2829_v53 = vmul.f32 0.25, %v6675_v50 }
 0xb60   : > { %v2812_v51 = vpop.f32.mrf.mxu1 }
 0xb61   : > { %v2827_v55 = vmul.f32 0.25, %v2812_v51  ;;  %v2833_v13 = vadd.f32 %v2829_v53, %v8555_v40  ;;  %v7115_v53 = vld [vmem:[%s8249_s27 + $0x18] sm:$0xff]  }
 0xb62   : > { %v6676_v56 = vpop.f32.mrf.mxu1 }
 0xb63   : > { %v2831_v58 = vadd.f32 %v2827_v55, %v8550_v36  ;;  %v2830_v59 = vmul.f32 0.25, %v6676_v56  ;;  %v2841_v30 = vsel %vm2284_vm6, %v2833_v13, -inf  ;;  %v7116_v55 = vld [vmem:[%s8249_s27 + $0x10] sm:$0xff]   ;;  %v7117_v56 = vld [vmem:[%s8249_s27 + $0x8] sm:$0xff]  }
 0xb64   : > { %v2815_v54 = vpop.f32.mrf.mxu1 }
 0xb65   : > { %v2828_v9 = vmul.f32 0.25, %v2815_v54  ;;  %v2835_v12 = vsel %vm2284_vm6, %v2831_v58, -inf  ;;  %v2834_v57 = vadd.f32 %v2830_v59, %v8568_v48 }
 0xb66   : > { %2836 = vmax.xlane.f32.xlu0 %v2835_v12 }
 0xb67   : > { %v2832_v14 = vadd.f32 %v2828_v9, %v8561_v42  ;;  %v2844_v36 = vsel %vm2284_vm6, %v2834_v57, -inf }
 0xb69   : > { %v2838_v35 = vsel %vm2284_vm6, %v2832_v14, -inf }
 0xb6a   : > { %2842 = vmax.xlane.f32.xlu0 %v2841_v30  ;;  %2839 = vmax.xlane.f32.xlu1 %v2838_v35 }
 0xb6e   : > { %2845 = vmax.xlane.f32.xlu0 %v2844_v36 }
 0xbef   : > { %v2837_v17 = vpop.xlane.xlu0 %2836 }
 0xbf0   : > { %v2847_v0 = vsub.f32 %v2831_v58, %v2837_v17  ;;  %v7118_v58 = vld [vmem:[%s8249_s27] sm:$0xff]  }
 0xbf2   : > { %v2851_v40 = vmul.f32 1.442695, %v2847_v0 }
 0xbf3   : > { %v2843_v11 = vpop.xlane.xlu0 %2842  ;;  %v2840_v18 = vpop.xlane.xlu1 %2839 }
 0xbf4   : > { %v2849_v15 = vsub.f32 %v2833_v13, %v2843_v11  ;;  %v2848_v21 = vsub.f32 %v2832_v14, %v2840_v18 }
 0xbf6   : > { %v2855_v20 = vmul.f32 1.442695, %v2849_v15  ;;  %v2853_v23 = vmul.f32 1.442695, %v2848_v21 }
 0xbf7   : > { %v2846_v42 = vpop.xlane.xlu0 %2845 }
 0xbf8   : > { %7251 = vpow2.f32 %v2855_v20  ;;  %v2850_v22 = vsub.f32 %v2834_v57, %v2846_v42 }
 0xbf9   : > { %7253 = vpow2.f32 %v2851_v40 }
 0xbfa   : > { %v2857_v26 = vmul.f32 1.442695, %v2850_v22 }
 0xbfc   : > { %7255 = vpow2.f32 %v2857_v26 }
 0xbfd   : > { %7257 = vpow2.f32 %v2853_v23 }
 0xc05   : > { %v7252_v48 = vpop.eup %7251 }
 0xc06   : > { %v2865_v27 = vsel %vm2284_vm6, %v7252_v48, 0.0  ;;  %v7254_v28 = vpop.eup %7253 }
 0xc07   : > { %2866 = vadd.xlane.f32.xlu0 %v2865_v27  ;;  %v2859_v37 = vsel %vm2284_vm6, %v7254_v28, 0.0 }
 0xc09   : > { %v7256_v29 = vpop.eup %7255 }
 0xc0a   : > { %v2868_v38 = vsel %vm2284_vm6, %v7256_v29, 0.0  ;;  %v7258_v31 = vpop.eup %7257 }
 0xc0b   : > { %2860 = vadd.xlane.f32.xlu0 %v2859_v37  ;;  %2869 = vadd.xlane.f32.xlu1 %v2868_v38  ;;  %v2862_v39 = vsel %vm2284_vm6, %v7258_v31, 0.0 }
 0xc0f   : > { %2863 = vadd.xlane.f32.xlu1 %v2862_v39 }
 0xc20   : > { %2881 = vrot.lane.b32.xlu1 %v8502_v45, %s9531_s14 }
 0xc21   : > { %2883 = vrot.lane.b32.xlu0 %v8498_v44, %s9531_s14  ;;  %s9612_s14 = sld [smem:[#allocation51_spill]] (!%p6384_p8) }
 0xc24   : > { %7004 = vrot.lane.b32.xlu1 %v7003_v32, %s9533_s5 }
 0xc25   : > { %7014 = vrot.lane.b32.xlu0 %v7013_v49, %s7784_s22 }
 0xc28   : > { %7009 = vrot.lane.b32.xlu1 %v7008_v5, %s9533_s5 }
 0xc2c   : > { %7019 = vrot.lane.b32.xlu1 %v7018_v46, %s7784_s22 }
 0xc90   : > { %v2867_v41 = vpop.xlane.xlu0 %2866 }
 0xc94   : > { %v2861_v43 = vpop.xlane.xlu0 %2860  ;;  %v2870_v45 = vpop.xlane.xlu1 %2869 }
 0xc95   : > { %7259 = vrcp.f32 %v2870_v45 }
 0xc96   : > { %7261 = vrcp.f32 %v2861_v43 }
 0xc97   : > { %7263 = vrcp.f32 %v2867_v41 }
 0xc98   : > { %v2884_v44 = vpop.permute.xlu0 %2883  ;;  %v2864_v33 = vpop.xlane.xlu1 %2863 }
 0xc99   : > { %7265 = vrcp.f32 %v2864_v33  ;;  %6677 = vmatprep.subr.bf16.mxu0 %v2884_v44  ;;  %v8727_v33 = vsub.s32 1, %v8419_v1 }
 0xc9a   : > { %6678 = vmatpush3.bf16.msra.mxu0 %v2884_v44 }
 0xc9c   : > { %v2882_v2 = vpop.permute.xlu1 %2881  ;;  %v7015_v0 = vpop.permute.xlu0 %7014 }
 0xc9d   : > { %6679 = vmatprep.subr.bf16.mxu0 %v2882_v2  ;;  %v7017_v26 = vunpack.i.h.bf16 %v7015_v0 }
 0xc9e   : > { %6680 = vmatpush3.bf16.msra.mxu0 %v2882_v2  ;;  %v8730_v2 = vld [vmem:[%s8220_s23] sm:$0x3f] }
 0xc9f   : > { %6685 = vmatprep.subr.bf16.mxu0 %v7115_v53 }
 0xca0   : > { %v7005_v30 = vpop.permute.xlu1 %7004 }
 0xca1   : > { %v7007_v57 = vunpack.i.h.bf16 %v7005_v30  ;;  %v7006_v17 = vunpack.i.l.bf16 %v7005_v30  ;;  %v7389_v30 = vld [vmem:[#allocation2 + $0x10] sm:$0xff] }
 0xca2   : > { %v7260_v63 = vpop.eup %7259 }
 0xca3   : > { %v7262_v3 = vpop.eup %7261  ;;  %v2878_v32 = vmul.f32 %v7260_v63, %v7256_v29  ;;  %v2991_v20 = vsel %vm2214_vm5, %v8627_v62, %v7007_v57  ;;  %v2990_v42 = vsel %vm2214_vm5, %v8623_v60, %v7006_v17  ;;  %v1540_v63 = vrot.slane %v8730_v2, %v8727_v33 }
 0xca4   : > { %v7264_v5 = vpop.eup %7263  ;;  %v2875_v46 = vmul.f32 %v7262_v3, %v7254_v28  ;;  %v7010_v35 = vpop.permute.xlu1 %7009 }
 0xca5   : > { %v2877_v49 = vmul.f32 %v7264_v5, %v7252_v48  ;;  %v7012_v11 = vunpack.i.h.bf16 %v7010_v35  ;;  %v7011_v18 = vunpack.i.l.bf16 %v7010_v35  ;;  %v7016_v48 = vunpack.i.l.bf16 %v7015_v0  ;;  %v7390_v0 = vld [vmem:[#allocation2 + $0x8] sm:$0xff] }
 0xca6   : > { %v7266_v24 = vpop.eup %7265  ;;  %v1724_v3 = vadd.f32 %v8433_v16, %v1540_v63  ;;  %v7121_v63 = vld [vmem:[%s8264_s18 + $0x34] ss:$8 sps:$4 sm:$0xff]  }
 0xca7   : > { %v2876_v47 = vmul.f32 %v7266_v24, %v7258_v31  ;;  %v2880_v51 = vpack.c.bf16 %v2878_v32, %v2877_v49  ;;  %v2993_v27 = vsel %vm2214_vm5, %v8625_v61, %v7012_v11  ;;  %v2992_v28 = vsel %vm2214_vm5, %v8621_v52, %v7011_v18  ;;  %v6213_v32 = vld [vmem:[%s8226_s17] ss:$0 sm:$0xff]  ;;  %3321 = vmatprep.subr.bf16.mxu1 %v7121_v63 }
 0xca8   : > { %v7020_v36 = vpop.permute.xlu1 %7019  ;;  %v2994_v41 = vsel %vm2284_vm6, %v2990_v42, %v7016_v48  ;;  %v2995_v61 = vsel %vm2284_vm6, %v2991_v20, %v7017_v26  ;;  %v3106_v5 = vrot.slane %v1724_v3, %v8428_v10  ;;  %v7391_v18 = vld [vmem:[#allocation2 + $0x18] sm:$0xff] }
 0xca9   : > { %v2879_v50 = vpack.c.bf16 %v2876_v47, %v2875_v46  ;;  %v7022_v15 = vunpack.i.h.bf16 %v7020_v36  ;;  %v7021_v40 = vunpack.i.l.bf16 %v7020_v36  ;;  %v7119_v3 = vld [vmem:[%s8264_s18 + $0x30] ss:$8 sps:$4 sm:$0xff]  }
 0xcaa   : > { %v3107_v24 = vcombine.high %v3106_v5, %v3106_v5  ;;  %v3114_v46 = vrot.slane %v3106_v5, %v8428_v10  ;;  %3322 = vmatpush1.bf16.msra.mxu1 %v7119_v3  ;;  %v7124_v5 = vld [vmem:[%s8264_s18 + $0x24] ss:$8 sps:$4 sm:$0xff]  }
 0xcab   : > { %6681 = vmatprep.mubr.msk.bf16.mxu0 %vm2284_vm6, %v2879_v50  ;;  %v2996_v37 = vsel %vm2284_vm6, %v2992_v28, %v7021_v40  ;;  %v2997_v62 = vsel %vm2284_vm6, %v2993_v27, %v7022_v15  ;;  %3323 = vmatprep.subr.bf16.mxu1 %v7124_v5 }
 0xcac   : > { %6682 = vmatmul.mubr.msk.bf16.vlgmr.msra.gmra.mxu0 %vm2284_vm6, %v2880_v51  ;;  %v3121_v47 = vrot.slane %v3107_v24, %v8428_v10  ;;  %v7122_v24 = vld [vmem:[%s8264_s18 + $0x20] ss:$8 sps:$4 sm:$0xff]  }
 0xcad   : > { %6686 = vmatpush3.bf16.msra.mxu0 %v7115_v53  ;;  %v3125_v53 = vrot.slane %v3114_v46, %v8422_v4  ;;  %v7125_v46 = vld [vmem:[%s8264_s18 + $0x10] ss:$8 sps:$4 sm:$0xff]  }
 0xcae   : > { %6687 = vmatprep.subr.bf16.mxu0 %v7116_v55  ;;  %3324 = vmatpush1.bf16.msra.mxu1 %v7122_v24  ;;  %v7133_v24 = vld [vmem:[%s8269_s9 + $0x70] sm:$0xff]  }
 0xcb1   : > { %6688 = vmatpush3.bf16.msra.mxu0 %v7116_v55  ;;  %v3129_v55 = vrot.slane %v3121_v47, %v8422_v4  ;;  %v7130_v47 = vld [vmem:[%s8264_s18 + $0x4] ss:$8 sps:$4 sm:$0xff]  }
 0xcb2   : > { %6689 = vmatprep.subr.bf16.mxu0 %v7117_v56 }
 0xcb5   : > { %6690 = vmatpush3.bf16.msra.mxu0 %v7117_v56 }
 0xcb6   : > { %6691 = vmatprep.subr.bf16.mxu0 %v7118_v58 }
 0xcb9   : > { %6692 = vmatpush3.bf16.msra.mxu0 %v7118_v58 }
 0xd6c   : > { %v6683_v54 = vpop.f32.mrf.mxu0 }
 0xd6e   : > { %v2927_v59 = vpop.f32.mrf.mxu0 }
 0xd70   : > { %v6684_v9 = vpop.f32.mrf.mxu0 }
 0xd71   : > { %v7028_v12 = vpack.i.bf16 %v6684_v9, %v6683_v54 }
 0xd72   : > { %v2930_v13 = vpop.f32.mrf.mxu0 }
 0xd73   : > { %v7023_v14 = vpack.i.bf16 %v2930_v13, %v2927_v59  ;;  %7029 = vrot.lane.b32.xlu1 %v7028_v12, %s7781_s7  ;;  %v7388_v12 = vld [vmem:[#allocation2] sm:$0xff] }
 0xd75   : > { %7024 = vrot.lane.b32.xlu0 %v7023_v14, %s7781_s7 }
 0xde5   : > { %v7030_v21 = vpop.permute.xlu1 %7029 }
 0xde6   : > { %v7032_v22 = vunpack.i.h.bf16 %v7030_v21  ;;  %v7031_v23 = vunpack.i.l.bf16 %v7030_v21 }
 0xde7   : > { %v7025_v29 = vpop.permute.xlu0 %7024 }
 0xde8   : > { %v7027_v38 = vunpack.i.h.bf16 %v7025_v29  ;;  %v7026_v31 = vunpack.i.l.bf16 %v7025_v29  ;;  %v3001_v60 = vsel %vm2998_vm7, %v2996_v37, %v7031_v23  ;;  %v3002_v39 = vsel %vm2998_vm7, %v2997_v62, %v7032_v22 }
 0xde9   : > { %v3004_v44 = vpack.c.bf16 %v3002_v39, %v3001_v60 }
 0xdea   : > { %v2999_v43 = vsel %vm2998_vm7, %v2994_v41, %v7026_v31  ;;  %v3000_v52 = vsel %vm2998_vm7, %v2995_v61, %v7027_v38 }
 0xdeb   : > { %v3003_v45 = vpack.c.bf16 %v3000_v52, %v2999_v43 }
 0xded   : > { %6693 = vmatprep.mubr.msk.bf16.mxu0 %vm1683_vm4, %v3003_v45 }
 0xdee   : > { %6694 = vmatmul.mubr.msk.bf16.vlgmr.msra.gmra.mxu0 %vm1683_vm4, %v3004_v44 }
 0xeae   : > { %v6695_v49 = vpop.f32.mrf.mxu0 }
 0xeaf   : > { %v3093_v50 = vadd.f32 %v6695_v49, %v6213_v32  ;;  %v7128_v49 = vld [vmem:[%s8264_s18] ss:$8 sps:$4 sm:$0xff]  }
 0xeb0   : > { %v3084_v51 = vpop.f32.mrf.mxu0 }
 0xeb1   : > { %v3085_v56 = vadd.f32 %v6213_v32, %v3084_v51  ;;  %v3134_v54 = vmul.f32 %v3129_v55, %v3093_v50  ;;  %v1543_v50 = vsub.s32 2, %v8419_v1 }
 0xeb2   : > { %v6696_v58 = vpop.f32.mrf.mxu0 }
 0xeb3   : > { %v3132_v59 = vmul.f32 %v3125_v53, %v3085_v56  ;;  %v3096_v16 = vadd.f32 %v6696_v58, %v6213_v32  ;;  %v8743_v35 = vadd.f32 %v7389_v30, %v3134_v54 }
 0xeb4   : > { %v3087_v9 = vpop.f32.mrf.mxu0 }
 0xeb5   : > { %v8741_v13 = vadd.f32 %v7388_v12, %v3132_v59  ;;  %v3088_v14 = vadd.f32 %v6213_v32, %v3087_v9  ;;  %v3135_v57 = vmul.f32 %v3129_v55, %v3096_v16  ;;  %v3146_v20 = vsel %vm1683_vm4, %v8743_v35, 0.0  ;;  %v7127_v32 = vld [vmem:[%s8264_s18 + $0x14] ss:$8 sps:$4 sm:$0xff]  }
 0xeb6   : > { %3325 = vmatprep.subr.bf16.mxu1 %v7127_v32  ;;  %v7134_v32 = vld [vmem:[%s8269_s9 + $0x30] sm:$0xff]  }
 0xeb7   : > { %v3133_v36 = vmul.f32 %v3125_v53, %v3088_v14  ;;  %v3140_v17 = vsel %vm1683_vm4, %v8741_v13, 0.0  ;;  %v8749_v15 = vadd.f32 %v7391_v18, %v3135_v57  ;;  %3326 = vmatpush1.bf16.msra.mxu1 %v7125_v46  ;;  %v7135_v46 = vld [vmem:[%s8269_s9 + $0x68] sm:$0xff]  }
 0xeb8   : > { %3141 = vadd.xlane.f32.xlu0 %v3140_v17  ;;  %3327 = vmatprep.subr.bf16.mxu1 %v7130_v47  ;;  %v7136_v47 = vld [vmem:[%s8269_s9 + $0x28] sm:$0xff]  }
 0xeb9   : > { %v8747_v11 = vadd.f32 %v7390_v0, %v3133_v36  ;;  %v3149_v21 = vsel %vm1683_vm4, %v8749_v15, 0.0 }
 0xebb   : > { %v3143_v40 = vsel %vm1683_vm4, %v8747_v11, 0.0  ;;  %3328 = vmatpush1.bf16.msra.mxu1 %v7128_v49  ;;  %v7137_v49 = vld [vmem:[%s8269_s9 + $0x60] sm:$0xff]  }
 0xebc   : > { %3144 = vadd.xlane.f32.xlu1 %v3143_v40  ;;  %3147 = vadd.xlane.f32.xlu0 %v3146_v20 }
 0xec0   : > { %3150 = vadd.xlane.f32.xlu0 %v3149_v21 }
 0xf41   : > { %v3142_v42 = vpop.xlane.xlu0 %3141 }
 0xf42   : > { %v3152_v22 = vmul.f32 0.015625, %v3142_v42 }
 0xf44   : > { %v8758_v23 = vsub.f32 %v8741_v13, %v3152_v22 }
 0xf45   : > { %v3145_v26 = vpop.xlane.xlu1 %3144  ;;  %v3148_v48 = vpop.xlane.xlu0 %3147 }
 0xf46   : > { %v3153_v27 = vmul.f32 0.015625, %v3145_v26  ;;  %v3154_v28 = vmul.f32 0.015625, %v3148_v48  ;;  %v3160_v29 = vmul.f32 %v8758_v23, %v8758_v23 }
 0xf48   : > { %v8763_v37 = vsub.f32 %v8747_v11, %v3153_v27  ;;  %v8766_v62 = vsub.f32 %v8743_v35, %v3154_v28  ;;  %v3164_v38 = vsel %vm1683_vm4, %v3160_v29, 0.0 }
 0xf49   : > { %3165 = vadd.xlane.f32.xlu0 %v3164_v38  ;;  %v3151_v31 = vpop.xlane.xlu0 %3150 }
 0xf4a   : > { %v3155_v60 = vmul.f32 0.015625, %v3151_v31  ;;  %v3161_v39 = vmul.f32 %v8763_v37, %v8763_v37  ;;  %v3162_v41 = vmul.f32 %v8766_v62, %v8766_v62 }
 0xf4c   : > { %v8774_v61 = vsub.f32 %v8749_v15, %v3155_v60  ;;  %v3167_v43 = vsel %vm1683_vm4, %v3161_v39, 0.0  ;;  %v3170_v52 = vsel %vm1683_vm4, %v3162_v41, 0.0 }
 0xf4d   : > { %3168 = vadd.xlane.f32.xlu1 %v3167_v43  ;;  %3171 = vadd.xlane.f32.xlu0 %v3170_v52 }
 0xf4e   : > { %v3163_v45 = vmul.f32 %v8774_v61, %v8774_v61 }
 0xf50   : > { %v3173_v44 = vsel %vm1683_vm4, %v3163_v45, 0.0 }
 0xf51   : > { %3174 = vadd.xlane.f32.xlu1 %v3173_v44 }
 0xf62   : > { %3237 = vrot.lane.b32.xlu1 %v3129_v55, %s9529_s8  ;;  %v1544_v55 = vrot.slane %v8730_v2, %v1543_v50  ;;  %v7138_v50 = vld [vmem:[%s8269_s9 + $0x20] sm:$0xff]  }
 0xf63   : > { %3235 = vrot.lane.b32.xlu0 %v3125_v53, %s9529_s8 }
 0xf64   : > { %v1763_v59 = vadd.f32 %v8483_v34, %v1544_v55  ;;  %v7140_v55 = vld [vmem:[%s8269_s9 + $0x18] sm:$0xff]  }
 0xf66   : > { %v3199_v57 = vrot.slane %v1763_v59, %v8428_v10  ;;  %v7145_v59 = vld [vmem:[%s8269_s9 + $0x40] sm:$0xff]  }
 0xf68   : > { %v8796_v0 = vrot.slane %v3199_v57, %v8428_v10  ;;  %v3200_v18 = vcombine.high %v3199_v57, %v3199_v57 }
 0xf6a   : > { %v3217_v40 = vadd.f32 1.0, %v8796_v0  ;;  %v8800_v20 = vrot.slane %v3200_v18, %v8428_v10 }
 0xf6c   : > { %v3224_v42 = vrot.slane %v3217_v40, %v8422_v4  ;;  %v3218_v26 = vadd.f32 1.0, %v8800_v20 }
 0xf6e   : > { %v3228_v60 = vrot.slane %v3218_v26, %v8422_v4 }
 0xfd2   : > { %v3166_v51 = vpop.xlane.xlu0 %3165 }
 0xfd3   : > { %v3176_v56 = vmul.f32 0.015625, %v3166_v51  ;;  %v7139_v51 = vld [vmem:[%s8269_s9 + $0x58] sm:$0xff]  }
 0xfd5   : > { %v3180_v53 = vadd.f32 1e-06, %v3176_v56  ;;  %v7141_v56 = vld [vmem:[%s8269_s9 + $0x50] sm:$0xff]  }
 0xfd6   : > { %v3169_v58 = vpop.xlane.xlu1 %3168  ;;  %v3172_v54 = vpop.xlane.xlu0 %3171 }
 0xfd7   : > { %7267 = vrsqrt.f32 %v3180_v53  ;;  %v3177_v16 = vmul.f32 0.015625, %v3169_v58  ;;  %v3178_v9 = vmul.f32 0.015625, %v3172_v54  ;;  %v7142_v53 = vld [vmem:[%s8269_s9 + $0x10] sm:$0xff]   ;;  %v7143_v58 = vld [vmem:[%s8269_s9 + $0x48] sm:$0xff]  }
 0xfd8   : > { %v7144_v54 = vld [vmem:[%s8269_s9 + $0x8] sm:$0xff]  }
 0xfd9   : > { %v3181_v12 = vadd.f32 1e-06, %v3177_v16  ;;  %v3182_v14 = vadd.f32 1e-06, %v3178_v9  ;;  %v7146_v16 = vld [vmem:[%s8269_s9] sm:$0xff]  }
 0xfda   : > { %v3175_v30 = vpop.xlane.xlu1 %3174  ;;  %v3236_v31 = vpop.permute.xlu0 %3235  ;;  %v3255_v9 = vld [vmem:[%s8228_s10] sm:$0x3] }
 0xfdb   : > { %7269 = vrsqrt.f32 %v3181_v12  ;;  %v3179_v36 = vmul.f32 0.015625, %v3175_v30  ;;  %v3260_v12 = vrot.slane %v3255_v9, %v8422_v4 }
 0xfdc   : > { %7271 = vrsqrt.f32 %v3182_v14  ;;  %v3264_v14 = vrot.slane %v3255_v9, %v8727_v33 }
 0xfdd   : > { %v3183_v17 = vadd.f32 1e-06, %v3179_v36 }
 0xfde   : > { %v3238_v44 = vpop.permute.xlu1 %3237 }
 0xfdf   : > { %7273 = vrsqrt.f32 %v3183_v17 }
 0xfe4   : > { %v7268_v34 = vpop.eup %7267 }
 0xfe5   : > { %v3188_v21 = vmul.f32 %v7268_v34, %v8758_v23 }
 0xfe7   : > { %v3231_v27 = vmul.f32 %v3224_v42, %v3188_v21 }
 0xfe8   : > { %v7270_v22 = vpop.eup %7269 }
 0xfe9   : > { %v3189_v48 = vmul.f32 %v7270_v22, %v8763_v37  ;;  %v7272_v28 = vpop.eup %7271  ;;  %v3241_v39 = vadd.f32 %v3236_v31, %v3231_v27 }
 0xfea   : > { %v3190_v43 = vmul.f32 %v7272_v28, %v8766_v62  ;;  %v7131_v62 = vld [vmem:[%s8269_s9 + $0x78] sm:$0xff]  }
 0xfeb   : > { %v3232_v29 = vmul.f32 %v3224_v42, %v3189_v48  ;;  %6480 = vmatprep.subr.bf16.mxu0 %v7131_v62 }
 0xfec   : > { %v7274_v38 = vpop.eup %7273  ;;  %v3233_v37 = vmul.f32 %v3228_v60, %v3190_v43 }
 0xfed   : > { %v3242_v41 = vadd.f32 %v3236_v31, %v3232_v29  ;;  %v3191_v23 = vmul.f32 %v7274_v38, %v8774_v61  ;;  %v7132_v61 = vld [vmem:[%s8269_s9 + $0x38] sm:$0xff]  }
 0xfee   : > { %v3243_v3 = vadd.f32 %v3238_v44, %v3233_v37  ;;  %6481 = vmatpush3.bf16.msra.mxu0 %v7132_v61 }
 0xfef   : > { %v3245_v52 = vpack.c.bf16 %v3242_v41, %v3241_v39  ;;  %v3234_v45 = vmul.f32 %v3228_v60, %v3191_v23  ;;  %6482 = vmatprep.subr.bf16.mxu0 %v7133_v24 }
 0xff1   : > { %6228 = vmatmul.mubr.msk.bf16.vlgmr.msra.gmra.mxu1 %vm1683_vm4, %v3245_v52  ;;  %v3244_v63 = vadd.f32 %v3238_v44, %v3234_v45 }
 0xff2   : > { %3355 = vmatprep.mubr.bf16.mxu1 %v7778_v6  ;;  %6483 = vmatpush3.bf16.msra.mxu0 %v7134_v32 }
 0xff3   : > { %v3246_v5 = vpack.c.bf16 %v3244_v63, %v3243_v3  ;;  %6484 = vmatprep.subr.bf16.mxu0 %v7135_v46 }
 0xff6   : > { %6485 = vmatpush3.bf16.msra.mxu0 %v7136_v47 }
 0xff7   : > { %6486 = vmatprep.subr.bf16.mxu0 %v7137_v49 }
 0xff9   : > { %6229 = vmatmul.mubr.msk.bf16.gmra.mxu1 %vm1683_vm4, %v3246_v5 }
 0xffa   : > { %3914 = vmatprep.mubr.bf16.mxu1 %v7778_v6  ;;  %6487 = vmatpush3.bf16.msra.mxu0 %v7138_v50 }
 0xffb   : > { %6488 = vmatprep.subr.bf16.mxu0 %v7139_v51 }
 0xffe   : > { %6489 = vmatpush3.bf16.msra.mxu0 %v7140_v55 }
 0xfff   : > { %6490 = vmatprep.subr.bf16.mxu0 %v7141_v56 }
0x1002   : > { %6491 = vmatpush3.bf16.msra.mxu0 %v7142_v53 }
0x1003   : > { %6492 = vmatprep.subr.bf16.mxu0 %v7143_v58 }
0x1006   : > { %6493 = vmatpush3.bf16.msra.mxu0 %v7144_v54 }
0x1007   : > { %6494 = vmatprep.subr.bf16.mxu0 %v7145_v59 }
0x100a   : > { %6495 = vmatpush3.bf16.msra.mxu0 %v7146_v16 }
0x10b1   : > { %v3347_v30 = vpop.f32.mrf.mxu1 }
0x10b2   : > { %v8832_v57 = vadd.f32 %v3347_v30, %v3260_v12 }
0x10b3   : > { %v3349_v36 = vpop.f32.mrf.mxu1 }
0x10b4   : > { %v3366_v17 = vmul.f32 %v8832_v57, %v8832_v57  ;;  %v8836_v18 = vadd.f32 %v3349_v36, %v3264_v14 }
0x10b5   : > { %v3351_v40 = vpop.f32.mrf.mxu1 }
0x10b6   : > { %v3374_v34 = vmul.f32 %v3366_v17, %v8832_v57  ;;  %v3367_v21 = vmul.f32 %v8836_v18, %v8836_v18  ;;  %v8841_v42 = vadd.f32 %v3351_v40, %v3260_v12 }
0x10b7   : > { %v3353_v22 = vpop.f32.mrf.mxu1 }
0x10b8   : > { %v3382_v26 = vmul.f32 0.044715, %v3374_v34  ;;  %v3375_v48 = vmul.f32 %v3367_v21, %v8836_v18  ;;  %v3368_v27 = vmul.f32 %v8841_v42, %v8841_v42  ;;  %v8846_v28 = vadd.f32 %v3353_v22, %v3264_v14 }
0x10b9   : > { %v3357_v29 = vpop.f32.mrf.mxu1 }
0x10ba   : > { %v3390_v38 = vadd.f32 %v3382_v26, %v8832_v57  ;;  %v3383_v31 = vmul.f32 0.044715, %v3375_v48  ;;  %v3376_v60 = vmul.f32 %v3368_v27, %v8841_v42  ;;  %v3369_v39 = vmul.f32 %v8846_v28, %v8846_v28 }
0x10bb   : > { %v8852_v41 = vadd.f32 %v3357_v29, %v3260_v12  ;;  %v3359_v23 = vpop.f32.mrf.mxu1 }
0x10bc   : > { %v3398_v43 = vmul.f32 0.7978846, %v3390_v38  ;;  %v3391_v52 = vadd.f32 %v3383_v31, %v8836_v18  ;;  %v3384_v45 = vmul.f32 0.044715, %v3376_v60  ;;  %v3377_v37 = vmul.f32 %v3369_v39, %v8846_v28 }
0x10bd   : > { %v3370_v44 = vmul.f32 %v8852_v41, %v8852_v41  ;;  %v8858_v63 = vadd.f32 %v3359_v23, %v3264_v14  ;;  %v3361_v3 = vpop.f32.mrf.mxu1 }
0x10be   : > { %v3399_v5 = vmul.f32 0.7978846, %v3391_v52  ;;  %v3392_v62 = vadd.f32 %v3384_v45, %v8841_v42  ;;  %v3385_v61 = vmul.f32 0.044715, %v3377_v37  ;;  %7275 = vtanh.f32 %v3398_v43 }
0x10bf   : > { %v3378_v24 = vmul.f32 %v3370_v44, %v8852_v41  ;;  %v3371_v32 = vmul.f32 %v8858_v63, %v8858_v63  ;;  %v3362_v46 = vadd.f32 %v3361_v3, %v3260_v12  ;;  %v3363_v47 = vpop.f32.mrf.mxu1 }
0x10c0   : > { %7277 = vtanh.f32 %v3399_v5  ;;  %v3400_v49 = vmul.f32 0.7978846, %v3392_v62  ;;  %v3393_v50 = vadd.f32 %v3385_v61, %v8846_v28  ;;  %v3364_v51 = vadd.f32 %v3363_v47, %v3264_v14 }
0x10c1   : > { %v3386_v55 = vmul.f32 0.044715, %v3378_v24  ;;  %v3379_v56 = vmul.f32 %v3371_v32, %v8858_v63  ;;  %v3372_v53 = vmul.f32 %v3362_v46, %v3362_v46 }
0x10c2   : > { %7279 = vtanh.f32 %v3400_v49  ;;  %v3401_v58 = vmul.f32 0.7978846, %v3393_v50  ;;  %v3373_v54 = vmul.f32 %v3364_v51, %v3364_v51 }
0x10c3   : > { %v3394_v59 = vadd.f32 %v3386_v55, %v8852_v41  ;;  %v3387_v16 = vmul.f32 0.044715, %v3379_v56  ;;  %v3380_v9 = vmul.f32 %v3372_v53, %v3362_v46 }
0x10c4   : > { %7281 = vtanh.f32 %v3401_v58  ;;  %v3381_v30 = vmul.f32 %v3373_v54, %v3364_v51 }
0x10c5   : > { %v3402_v12 = vmul.f32 0.7978846, %v3394_v59  ;;  %v3395_v36 = vadd.f32 %v3387_v16, %v8858_v63  ;;  %v3388_v17 = vmul.f32 0.044715, %v3380_v9 }
0x10c6   : > { %v3389_v40 = vmul.f32 0.044715, %v3381_v30 }
0x10c7   : > { %7283 = vtanh.f32 %v3402_v12  ;;  %v3403_v14 = vmul.f32 0.7978846, %v3395_v36  ;;  %v3396_v34 = vadd.f32 %v3388_v17, %v3362_v46  ;;  %v6230_v17 = vld [vmem:[%s8234_s2] ss:$0 sm:$0xff] }
0x10c8   : > { %v3397_v21 = vadd.f32 %v3389_v40, %v3364_v51 }
0x10c9   : > { %7285 = vtanh.f32 %v3403_v14  ;;  %v3404_v22 = vmul.f32 0.7978846, %v3396_v34 }
0x10ca   : > { %v3405_v26 = vmul.f32 0.7978846, %v3397_v21 }
0x10cb   : > { %7287 = vtanh.f32 %v3404_v22  ;;  %v7276_v48 = vpop.eup %7275 }
0x10cc   : > { %7289 = vtanh.f32 %v3405_v26  ;;  %v3414_v31 = vadd.f32 1.0, %v7276_v48 }
0x10cd   : > { %v7278_v27 = vpop.eup %7277 }
0x10ce   : > { %v3415_v29 = vadd.f32 1.0, %v7278_v27  ;;  %v3422_v45 = vmul.f32 0.5, %v3414_v31 }
0x10cf   : > { %v7280_v38 = vpop.eup %7279 }
0x10d0   : > { %v3416_v60 = vadd.f32 1.0, %v7280_v38  ;;  %v3423_v52 = vmul.f32 0.5, %v3415_v29  ;;  %v3430_v24 = vmul.f32 %v3422_v45, %v8832_v57  ;;  %v3633_v45 = vrot.slane %v8800_v20, %v8422_v4 }
0x10d1   : > { %v7282_v39 = vpop.eup %7281 }
0x10d2   : > { %v3424_v23 = vmul.f32 0.5, %v3416_v60  ;;  %v3417_v43 = vadd.f32 1.0, %v7282_v39  ;;  %v3431_v62 = vmul.f32 %v3423_v52, %v8836_v18  ;;  %v3629_v60 = vrot.slane %v8796_v0, %v8422_v4 }
0x10d4   : > { %v7284_v37 = vpop.eup %7283  ;;  %v3425_v44 = vmul.f32 0.5, %v3417_v43  ;;  %v3432_v3 = vmul.f32 %v3424_v23, %v8841_v42 }
0x10d5   : > { %v3418_v47 = vadd.f32 1.0, %v7284_v37 }
0x10d6   : > { %v7286_v5 = vpop.eup %7285  ;;  %v3433_v61 = vmul.f32 %v3425_v44, %v8846_v28  ;;  %v3438_v56 = vpack.c.bf16 %v3432_v3, %v3430_v24 }
0x10d7   : > { %v3419_v32 = vadd.f32 1.0, %v7286_v5  ;;  %v3426_v42 = vmul.f32 0.5, %v3418_v47 }
0x10d8   : > { %v7288_v49 = vpop.eup %7287  ;;  %v3439_v50 = vpack.c.bf16 %v3433_v61, %v3431_v62 }
0x10d9   : > { %v7290_v55 = vpop.eup %7289  ;;  %v3420_v53 = vadd.f32 1.0, %v7288_v49  ;;  %v3427_v54 = vmul.f32 0.5, %v3419_v32  ;;  %v3434_v57 = vmul.f32 %v3426_v42, %v8852_v41 }
0x10da   : > { %3609 = vmatprep.mubr.bf16.mxu0 %v3439_v50  ;;  %v3421_v58 = vadd.f32 1.0, %v7290_v55 }
0x10db   : > { %3610 = vmatmul.mubr.bf16.vlgmr.msra.gmra.mxu0 %v3438_v56  ;;  %v3428_v59 = vmul.f32 0.5, %v3420_v53  ;;  %v3435_v28 = vmul.f32 %v3427_v54, %v8858_v63 }
0x10dc   : > { %v3429_v16 = vmul.f32 0.5, %v3421_v58 }
0x10dd   : > { %v3436_v18 = vmul.f32 %v3428_v59, %v3362_v46  ;;  %v1547_v59 = vsub.s32 3, %v8419_v1 }
0x10de   : > { %v3437_v9 = vmul.f32 %v3429_v16, %v3364_v51 }
0x10df   : > { %v3440_v12 = vpack.c.bf16 %v3436_v18, %v3434_v57  ;;  %v1548_v57 = vrot.slane %v8730_v2, %v1547_v59 }
0x10e0   : > { %v3441_v30 = vpack.c.bf16 %v3437_v9, %v3435_v28 }
0x10e2   : > { %3617 = vmatprep.mubr.bf16.mxu0 %v3441_v30 }
0x10e3   : > { %3618 = vmatmul.mubr.bf16.gmra.mxu0 %v3440_v12 }
0x119b   : > { %v6496_v36 = vpop.f32.mrf.mxu0 }
0x119d   : > { %v6497_v40 = vpop.f32.mrf.mxu0 }
0x119e   : > { %v6498_v14 = vadd.f32 %v6497_v40, %v6496_v36 }
0x119f   : > { %v6499_v34 = vpop.f32.mrf.mxu0 }
0x11a0   : > { %v3612_v21 = vadd.f32 %v6498_v14, %v6230_v17  ;;  %v1765_v14 = vadd.f32 %v8487_v8, %v1548_v57 }
0x11a1   : > { %v6500_v22 = vpop.f32.mrf.mxu0 }
0x11a2   : > { %v6501_v26 = vadd.f32 %v6500_v22, %v6499_v34  ;;  %3640 = vrot.lane.b32.xlu1 %v3612_v21, %s9529_s8  ;;  %v3739_v22 = vrot.slane %v1765_v14, %v8428_v10 }
0x11a3   : > { %v6502_v46 = vpop.f32.mrf.mxu0 }
0x11a4   : > { %v3615_v48 = vadd.f32 %v6501_v26, %v6230_v17  ;;  %v3747_v8 = vrot.slane %v3739_v22, %v8428_v10 }
0x11a5   : > { %v6503_v63 = vpop.f32.mrf.mxu0 }
0x11a6   : > { %v6504_v51 = vadd.f32 %v6503_v63, %v6502_v46  ;;  %3642 = vrot.lane.b32.xlu1 %v3615_v48, %s9529_s8  ;;  %v3740_v46 = vcombine.high %v3739_v22, %v3739_v22 }
0x11a7   : > { %v6505_v41 = vpop.f32.mrf.mxu0 }
0x11a8   : > { %v3620_v27 = vadd.f32 %v6504_v51, %v6230_v17  ;;  %v8936_v48 = vrot.slane %v3740_v46, %v8428_v10  ;;  %v7149_v51 = vld [vmem:[%s8259_s0 + $0xac] ss:$12 sps:$4 sm:$0xff]  }
0x11a9   : > { %v6506_v29 = vpop.f32.mrf.mxu0  ;;  %3890 = vmatprep.subr.bf16.mxu1 %v7149_v51 }
0x11aa   : > { %v6507_v38 = vadd.f32 %v6506_v29, %v6505_v41  ;;  %3644 = vrot.lane.b32.xlu0 %v3620_v27, %s9529_s8  ;;  %v3758_v63 = vadd.f32 1.0, %v8936_v48  ;;  %v3757_v41 = vadd.f32 1.0, %v3747_v8  ;;  %v7147_v27 = vld [vmem:[%s8259_s0 + $0xa8] ss:$12 sps:$4 sm:$0xff]  }
0x11ab   : > { %3891 = vmatpush1.bf16.msra.mxu1 %v7147_v27 }
0x11ac   : > { %v3623_v31 = vadd.f32 %v6507_v38, %v6230_v17  ;;  %v3768_v29 = vrot.slane %v3758_v63, %v8422_v4  ;;  %v7152_v38 = vld [vmem:[%s8259_s0 + $0x94] ss:$12 sps:$4 sm:$0xff]  }
0x11ad   : > { %3892 = vmatprep.subr.bf16.mxu1 %v7152_v38  ;;  %v7162_v63 = vld [vmem:[%s8259_s0 + $0x68] ss:$12 sps:$4 sm:$0xff]  }
0x11ae   : > { %3646 = vrot.lane.b32.xlu1 %v3623_v31, %s9529_s8  ;;  %v3764_v31 = vrot.slane %v3757_v41, %v8422_v4 }
0x1214   : > { %v3641_v39 = vpop.permute.xlu1 %3640 }
0x1215   : > { %v3652_v23 = vmul.f32 %v3641_v39, %v3629_v60  ;;  %v7155_v39 = vld [vmem:[%s8259_s0 + $0x7c] ss:$12 sps:$4 sm:$0xff]  }
0x1217   : > { %3660 = vrot.lane.b32.xlu0 %v3652_v23, %s9529_s8  ;;  %v7153_v23 = vld [vmem:[%s8259_s0 + $0x78] ss:$12 sps:$4 sm:$0xff]  }
0x1218   : > { %v3643_v43 = vpop.permute.xlu1 %3642 }
0x1219   : > { %v3653_v52 = vmul.f32 %v3643_v43, %v3629_v60  ;;  %v7150_v60 = vld [vmem:[%s8259_s0 + $0x90] ss:$12 sps:$4 sm:$0xff]  }
0x121a   : > { %3893 = vmatpush1.bf16.msra.mxu1 %v7150_v60  ;;  %v7158_v43 = vld [vmem:[%s8259_s0 + $0x64] ss:$12 sps:$4 sm:$0xff]   ;;  %v6282_v60 = vld [vmem:[#allocation17 + $0x1] ss:$0 sm:$0xff] }
0x121b   : > { %3662 = vrot.lane.b32.xlu1 %v3653_v52, %s9529_s8  ;;  %3894 = vmatprep.subr.bf16.mxu1 %v7155_v39  ;;  %v7156_v52 = vld [vmem:[%s8259_s0 + $0x60] ss:$12 sps:$4 sm:$0xff]  }
0x121c   : > { %v3645_v37 = vpop.permute.xlu0 %3644 }
0x121d   : > { %v3654_v44 = vmul.f32 %v3645_v37, %v3633_v45  ;;  %v8953_v37 = vld [vmem:[#allocation15 + $0x1] ss:$0 sm:$0xff] }
0x121e   : > { %3895 = vmatpush1.bf16.msra.mxu1 %v7153_v23 }
0x121f   : > { %3664 = vrot.lane.b32.xlu0 %v3654_v44, %s9529_s8  ;;  %3896 = vmatprep.subr.bf16.mxu1 %v7158_v43 }
0x1220   : > { %v3647_v3 = vpop.permute.xlu1 %3646 }
0x1221   : > { %v3655_v5 = vmul.f32 %v3647_v3, %v3633_v45  ;;  %v7159_v45 = vld [vmem:[%s8259_s0 + $0xb0] ss:$12 sps:$4 sm:$0xff]  }
0x1222   : > { %3897 = vmatpush1.bf16.msra.mxu1 %v7156_v52 }
0x1223   : > { %3666 = vrot.lane.b32.xlu1 %v3655_v5, %s9529_s8  ;;  %6697 = vmatprep.subr.bf16.mxu1 %v7159_v45 }
0x1289   : > { %v3661_v0 = vpop.permute.xlu0 %3660 }
0x128a   : > { %v8888_v62 = vadd.f32 %v3661_v0, %v8741_v13 }
0x128c   : > { %v3680_v61 = vsel %vm1683_vm4, %v8888_v62, 0.0 }
0x128d   : > { %3681 = vadd.xlane.f32.xlu0 %v3680_v61  ;;  %v3663_v24 = vpop.permute.xlu1 %3662 }
0x128e   : > { %v8893_v32 = vadd.f32 %v3663_v24, %v8747_v11 }
0x1290   : > { %v3683_v20 = vsel %vm1683_vm4, %v8893_v32, 0.0 }
0x1291   : > { %v3665_v47 = vpop.permute.xlu0 %3664  ;;  %3684 = vadd.xlane.f32.xlu1 %v3683_v20 }
0x1292   : > { %v8898_v49 = vadd.f32 %v3665_v47, %v8743_v35 }
0x1294   : > { %v3686_v13 = vsel %vm1683_vm4, %v8898_v49, 0.0 }
0x1295   : > { %3687 = vadd.xlane.f32.xlu0 %v3686_v13  ;;  %v3667_v50 = vpop.permute.xlu1 %3666 }
0x1296   : > { %v8903_v55 = vadd.f32 %v3667_v50, %v8749_v15 }
0x1298   : > { %v3689_v11 = vsel %vm1683_vm4, %v8903_v55, 0.0 }
0x1299   : > { %3690 = vadd.xlane.f32.xlu0 %v3689_v11 }
0x1316   : > { %v3682_v56 = vpop.xlane.xlu0 %3681 }
0x1317   : > { %v3692_v53 = vmul.f32 0.015625, %v3682_v56 }
0x1319   : > { %v8908_v58 = vsub.f32 %v8888_v62, %v3692_v53 }
0x131a   : > { %v3685_v54 = vpop.xlane.xlu1 %3684 }
0x131b   : > { %v3693_v35 = vmul.f32 0.015625, %v3685_v54  ;;  %v3700_v42 = vmul.f32 %v8908_v58, %v8908_v58 }
0x131d   : > { %v8914_v16 = vsub.f32 %v8893_v32, %v3693_v35  ;;  %v3704_v15 = vsel %vm1683_vm4, %v3700_v42, 0.0 }
0x131e   : > { %v3688_v18 = vpop.xlane.xlu0 %3687  ;;  %3705 = vadd.xlane.f32.xlu0 %v3704_v15 }
0x131f   : > { %v3694_v28 = vmul.f32 0.015625, %v3688_v18  ;;  %v3701_v9 = vmul.f32 %v8914_v16, %v8914_v16  ;;  %v3782_v18 = vrot.slane %v3747_v8, %v8422_v4 }
0x1321   : > { %v8921_v30 = vsub.f32 %v8898_v49, %v3694_v28  ;;  %v3707_v12 = vsel %vm1683_vm4, %v3701_v9, 0.0 }
0x1322   : > { %v3691_v36 = vpop.xlane.xlu0 %3690  ;;  %3708 = vadd.xlane.f32.xlu1 %v3707_v12 }
0x1323   : > { %v3695_v17 = vmul.f32 0.015625, %v3691_v36  ;;  %v3702_v40 = vmul.f32 %v8921_v30, %v8921_v30 }
0x1325   : > { %v8928_v34 = vsub.f32 %v8903_v55, %v3695_v17  ;;  %v3710_v2 = vsel %vm1683_vm4, %v3702_v40, 0.0  ;;  %v7160_v40 = vld [vmem:[%s8259_s0 + $0x98] ss:$12 sps:$4 sm:$0xff]  }
0x1326   : > { %3711 = vadd.xlane.f32.xlu0 %v3710_v2 }
0x1327   : > { %v3703_v21 = vmul.f32 %v8928_v34, %v8928_v34 }
0x1329   : > { %v3713_v26 = vsel %vm1683_vm4, %v3703_v21, 0.0 }
0x132a   : > { %3714 = vadd.xlane.f32.xlu1 %v3713_v26  ;;  %v7161_v26 = vld [vmem:[%s8259_s0 + $0x80] ss:$12 sps:$4 sm:$0xff]  }
0x133b   : > { %3771 = vrot.lane.b32.xlu1 %v3768_v29, %s9529_s8 }
0x133c   : > { %3769 = vrot.lane.b32.xlu0 %v3764_v31, %s9529_s8 }
0x133f   : > { %4044 = vrot.lane.b32.xlu1 %v8953_v37, %s9529_s8 }
0x13a7   : > { %v3706_v44 = vpop.xlane.xlu0 %3705 }
0x13a8   : > { %v3716_v3 = vmul.f32 0.015625, %v3706_v44 }
0x13aa   : > { %v3720_v5 = vadd.f32 1e-06, %v3716_v3 }
0x13ab   : > { %v3709_v0 = vpop.xlane.xlu1 %3708 }
0x13ac   : > { %7291 = vrsqrt.f32 %v3720_v5  ;;  %v3717_v61 = vmul.f32 0.015625, %v3709_v0  ;;  %v6279_v5 = vld [vmem:[#allocation15] ss:$0 sm:$0xff]  ;;  %v6281_v0 = vld [vmem:[#allocation17] ss:$0 sm:$0xff] }
0x13ae   : > { %v3721_v24 = vadd.f32 1e-06, %v3717_v61 }
0x13af   : > { %v3712_v20 = vpop.xlane.xlu0 %3711 }
0x13b0   : > { %7293 = vrsqrt.f32 %v3721_v24  ;;  %v3718_v47 = vmul.f32 0.015625, %v3712_v20 }
0x13b2   : > { %v3722_v13 = vadd.f32 1e-06, %v3718_v47 }
0x13b3   : > { %v3715_v50 = vpop.xlane.xlu1 %3714  ;;  %v3770_v42 = vpop.permute.xlu0 %3769 }
0x13b4   : > { %7295 = vrsqrt.f32 %v3722_v13  ;;  %v3719_v11 = vmul.f32 0.015625, %v3715_v50 }
0x13b6   : > { %v3723_v56 = vadd.f32 1e-06, %v3719_v11 }
0x13b7   : > { %v3772_v2 = vpop.permute.xlu1 %3771 }
0x13b8   : > { %7297 = vrsqrt.f32 %v3723_v56 }
0x13b9   : > { %v7292_v53 = vpop.eup %7291 }
0x13ba   : > { %v3728_v54 = vmul.f32 %v7292_v53, %v8908_v58 }
0x13bb   : > { %v4045_v47 = vpop.permute.xlu1 %4044 }
0x13bc   : > { %v3775_v15 = vmul.f32 %v3770_v42, %v3728_v54 }
0x13bd   : > { %v7294_v35 = vpop.eup %7293 }
0x13be   : > { %v3729_v59 = vmul.f32 %v7294_v35, %v8914_v16  ;;  %v3789_v57 = vadd.f32 %v3782_v18, %v3775_v15  ;;  %v3786_v16 = vrot.slane %v8936_v48, %v8422_v4 }
0x13c0   : > { %v3776_v28 = vmul.f32 %v3770_v42, %v3729_v59 }
0x13c1   : > { %v7296_v9 = vpop.eup %7295 }
0x13c2   : > { %v3790_v12 = vadd.f32 %v3782_v18, %v3776_v28  ;;  %v3730_v36 = vmul.f32 %v7296_v9, %v8921_v30 }
0x13c4   : > { %v3793_v17 = vpack.c.bf16 %v3790_v12, %v3789_v57  ;;  %v3777_v21 = vmul.f32 %v3772_v2, %v3730_v36 }
0x13c5   : > { %v7298_v14 = vpop.eup %7297 }
0x13c6   : > { %v3731_v58 = vmul.f32 %v7298_v14, %v8928_v34  ;;  %6275 = vmatmul.mubr.msk.bf16.vlgmr.msra.gmra.mxu1 %vm1683_vm4, %v3793_v17  ;;  %v3791_v30 = vadd.f32 %v3786_v16, %v3777_v21 }
0x13c7   : > { %6698 = vmatpush3.bf16.msra.mxu1 %v7159_v45  ;;  %3924 = vmatprep.mubr.bf16.mxu1 %v7778_v6 }
0x13c8   : > { %v3778_v22 = vmul.f32 %v3772_v2, %v3731_v58  ;;  %6699 = vmatprep.subr.bf16.mxu1 %v7160_v40 }
0x13ca   : > { %v3792_v46 = vadd.f32 %v3786_v16, %v3778_v22 }
0x13cb   : > { %6700 = vmatpush3.bf16.msra.mxu1 %v7160_v40 }
0x13cc   : > { %v3794_v8 = vpack.c.bf16 %v3792_v46, %v3791_v30  ;;  %6701 = vmatprep.subr.bf16.mxu1 %v7161_v26 }
0x13ce   : > { %6276 = vmatmul.mubr.msk.bf16.gmra.mxu1 %vm1683_vm4, %v3794_v8 }
0x13cf   : > { %6702 = vmatpush3.bf16.msra.mxu1 %v7161_v26  ;;  %6705 = vmatprep.mubr.msk.bf16.mxu1 %vm1683_vm4, %v3793_v17 }
0x13d0   : > { %6703 = vmatprep.subr.bf16.mxu1 %v7162_v63 }
0x13d3   : > { %6704 = vmatpush3.bf16.msra.mxu1 %v7162_v63 }
0x13d6   : > { %6706 = vmatmul.mubr.msk.bf16.vlgmr.msra.gmra.mxu1 %vm1683_vm4, %v3794_v8 }
0x1486   : > { %v8972_v34 = vpop.f32.mrf.mxu1 }
0x1487   : > { %v3996_v22 = vmul.f32 %v6279_v5, %v8972_v34 }
0x1488   : > { %v3918_v48 = vpop.f32.mrf.mxu1 }
0x148a   : > { %v8974_v51 = vpop.f32.mrf.mxu1 }
0x148b   : > { %v3997_v26 = vmul.f32 %v6279_v5, %v8974_v51 }
0x148c   : > { %v3922_v41 = vpop.f32.mrf.mxu1 }
0x148d   : > { %v8982_v43 = vpack.c.bf16 %v3922_v41, %v3918_v48 }
0x148e   : > { %v8976_v27 = vpop.f32.mrf.mxu1 }
0x148f   : > { %v4050_v50 = vmul.f32 %v4045_v47, %v8976_v27 }
0x1490   : > { %v3928_v29 = vpop.f32.mrf.mxu1 }
0x1492   : > { %v8978_v38 = vpop.f32.mrf.mxu1 }
0x1493   : > { %v4051_v11 = vmul.f32 %v4045_v47, %v8978_v38 }
0x1494   : > { %v3932_v31 = vpop.f32.mrf.mxu1 }
0x1495   : > { %v8980_v39 = vpack.c.bf16 %v3932_v31, %v3928_v29 }
0x1496   : > { %v6707_v23 = vpop.f32.mrf.mxu1 }
0x1497   : > { %v4054_v52 = vmul.f32 %v6707_v23, %v6282_v60  ;;  %6717 = vmatprep.subr.bf16.mxu1 %v8980_v39 }
0x1498   : > { %v3969_v45 = vpop.f32.mrf.mxu1  ;;  %6718 = vmatpush3.bf16.msra.mxu1 %v8980_v39 }
0x1499   : > { %6719 = vmatprep.subr.bf16.mxu1 %v8982_v43  ;;  %4064 = vrot.lane.b32.xlu1 %v4054_v52, %s9529_s8  ;;  %v4052_v24 = vmul.f32 %v6281_v0, %v3969_v45 }
0x149a   : > { %v6708_v44 = vpop.f32.mrf.mxu1 }
0x149b   : > { %v4055_v3 = vmul.f32 %v6708_v44, %v6282_v60 }
0x149c   : > { %v3972_v61 = vpop.f32.mrf.mxu1  ;;  %6720 = vmatpush3.bf16.msra.mxu1 %v8982_v43 }
0x149d   : > { %4042 = vrot.lane.b32.xlu1 %v6279_v5, %s9529_s8  ;;  %4066 = vrot.lane.b32.xlu0 %v4055_v3, %s9529_s8  ;;  %v4053_v20 = vmul.f32 %v6281_v0, %v3972_v61  ;;  %v9032_v3 = vld [vmem:[%s9607_s24] sm:$0xff] }
0x14a1   : > { %4060 = vrot.lane.b32.xlu0 %v4052_v24, %s9529_s8  ;;  %4062 = vrot.lane.b32.xlu1 %v4053_v20, %s9529_s8  ;;  %v9043_v24 = vld [vmem:[%s9607_s24 + $0x8] sm:$0xff] }
0x14a5   : > { %4012 = vrot.lane.b32.xlu0 %v6281_v0, %s9529_s8  ;;  %4014 = vrot.lane.b32.xlu1 %v6282_v60, %s9529_s8 }
0x150b   : > { %v4065_v13 = vpop.permute.xlu1 %4064 }
0x150c   : > { %v4074_v54 = vadd.f32 %v4065_v13, %v4050_v50 }
0x150f   : > { %v4067_v56 = vpop.permute.xlu0 %4066  ;;  %v4043_v53 = vpop.permute.xlu1 %4042 }
0x1510   : > { %v4075_v35 = vadd.f32 %v4067_v56, %v4051_v11  ;;  %v4048_v18 = vmul.f32 %v4043_v53, %v8972_v34  ;;  %v4049_v28 = vmul.f32 %v4043_v53, %v8974_v51  ;;  %v3998_v34 = vmul.f32 %v8953_v37, %v8976_v27  ;;  %v9050_v56 = vld [vmem:[%s9607_s24 + $0x18] sm:$0xff] }
0x1511   : > { %v3999_v51 = vmul.f32 %v8953_v37, %v8978_v38  ;;  %v9037_v37 = vld [vmem:[%s9607_s24 + $0x10] sm:$0xff] }
0x1512   : > { %v8997_v42 = vpack.c.bf16 %v4075_v35, %v4074_v54 }
0x1513   : > { %v4061_v59 = vpop.permute.xlu0 %4060  ;;  %v4063_v15 = vpop.permute.xlu1 %4062 }
0x1514   : > { %4086 = vrot.lane.b32.xlu0 %v8997_v42, %s9529_s8  ;;  %v4072_v57 = vadd.f32 %v4061_v59, %v4048_v18  ;;  %v4073_v12 = vadd.f32 %v4063_v15, %v4049_v28 }
0x1516   : > { %v9005_v14 = vpack.c.bf16 %v4073_v12, %v4072_v57 }
0x1517   : > { %v4013_v9 = vpop.permute.xlu0 %4012  ;;  %v4015_v40 = vpop.permute.xlu1 %4014 }
0x1518   : > { %v4018_v36 = vmul.f32 %v4013_v9, %v3918_v48  ;;  %v4019_v17 = vmul.f32 %v4013_v9, %v3922_v41  ;;  %v4020_v2 = vmul.f32 %v4015_v40, %v3928_v29  ;;  %v4021_v58 = vmul.f32 %v4015_v40, %v3932_v31 }
0x151a   : > { %4028 = vrot.lane.b32.xlu1 %v4019_v17, %s9529_s8  ;;  %4026 = vrot.lane.b32.xlu0 %v4018_v36, %s9529_s8 }
0x151e   : > { %4084 = vrot.lane.b32.xlu1 %v9005_v14, %s9529_s8  ;;  %4030 = vrot.lane.b32.xlu0 %v4020_v2, %s9529_s8 }
0x1522   : > { %4032 = vrot.lane.b32.xlu1 %v4021_v58, %s9529_s8  ;;  %s9608_s8 = smov 16  }
0x1586   : > { %v4087_v21 = vpop.permute.xlu0 %4086 }
0x1587   : > { %v4098_v16 = vsel %vm2214_vm5, %v4087_v21, 0  ;;  %6817 = vmatprep.subr.msk.bf16.mxu0 %vm2214_vm5, %v4087_v21 }
0x1588   : > { %6710 = vmatpush3.bf16.xpose.msra.mxu0 %v4098_v16 }
0x158c   : > { %v4027_v30 = vpop.permute.xlu0 %4026  ;;  %v4029_v46 = vpop.permute.xlu1 %4028 }
0x158d   : > { %v4038_v8 = vadd.f32 %v4027_v30, %v3996_v22  ;;  %v4039_v63 = vadd.f32 %v4029_v46, %v3997_v26 }
0x158f   : > { %v9015_v48 = vpack.c.bf16 %v4039_v63, %v4038_v8 }
0x1590   : > { %v4085_v41 = vpop.permute.xlu1 %4084  ;;  %v4031_v31 = vpop.permute.xlu0 %4030 }
0x1591   : > { %v4095_v29 = vsel %vm2214_vm5, %v4085_v41, 0  ;;  %6818 = vmatprep.subr.msk.bf16.mxu0 %vm2214_vm5, %v4085_v41  ;;  %6713 = vmatprep.mubr.msk.bf16.mxu0 %vm2214_vm5, %v9015_v48  ;;  %v4040_v23 = vadd.f32 %v4031_v31, %v3998_v34 }
0x1592   : > { %6712 = vmatpush3.bf16.xpose.msra.mxu0 %v4095_v29 }
0x1594   : > { %v4033_v60 = vpop.permute.xlu1 %4032 }
0x1595   : > { %v4041_v52 = vadd.f32 %v4033_v60, %v3999_v51 }
0x1597   : > { %v9025_v45 = vpack.c.bf16 %v4041_v52, %v4040_v23 }
0x1599   : > { %6714 = vmatmul.mubr.msk.bf16.vlgmr.msra.gmra.mxu0 %vm2214_vm5, %v9025_v45 }
0x1659   : > { %v6715_v44 = vpop.f32.mrf.mxu0 }
0x165a   : > { %v4151_v0 = vmul.f32 0.25, %v6715_v44 }
0x165b   : > { %v4134_v5 = vpop.f32.mrf.mxu0 }
0x165c   : > { %v4149_v27 = vmul.f32 0.25, %v4134_v5  ;;  %v4155_v47 = vadd.f32 %v4151_v0, %v9037_v37 }
0x165d   : > { %v6716_v38 = vpop.f32.mrf.mxu0 }
0x165e   : > { %v4153_v61 = vadd.f32 %v4149_v27, %v9032_v3  ;;  %v4152_v13 = vmul.f32 0.25, %v6716_v38  ;;  %v4163_v35 = vsel %vm2284_vm6, %v4155_v47, -inf }
0x165f   : > { %v4137_v20 = vpop.f32.mrf.mxu0 }
0x1660   : > { %v4150_v50 = vmul.f32 0.25, %v4137_v20  ;;  %v4157_v11 = vsel %vm2284_vm6, %v4153_v61, -inf  ;;  %v4156_v54 = vadd.f32 %v4152_v13, %v9050_v56 }
0x1661   : > { %4158 = vmax.xlane.f32.xlu0 %v4157_v11 }
0x1662   : > { %v4154_v53 = vadd.f32 %v4150_v50, %v9043_v24  ;;  %v4166_v15 = vsel %vm2284_vm6, %v4156_v54, -inf }
0x1664   : > { %v4160_v59 = vsel %vm2284_vm6, %v4154_v53, -inf }
0x1665   : > { %4164 = vmax.xlane.f32.xlu0 %v4163_v35  ;;  %4161 = vmax.xlane.f32.xlu1 %v4160_v59 }
0x1669   : > { %4167 = vmax.xlane.f32.xlu0 %v4166_v15 }
0x16ea   : > { %v4159_v18 = vpop.xlane.xlu0 %4158 }
0x16eb   : > { %v4169_v28 = vsub.f32 %v4153_v61, %v4159_v18 }
0x16ed   : > { %v4173_v17 = vmul.f32 1.442695, %v4169_v28 }
0x16ee   : > { %v4165_v9 = vpop.xlane.xlu0 %4164  ;;  %v4162_v57 = vpop.xlane.xlu1 %4161 }
0x16ef   : > { %v4171_v12 = vsub.f32 %v4155_v47, %v4165_v9  ;;  %v4170_v36 = vsub.f32 %v4154_v53, %v4162_v57 }
0x16f1   : > { %v4177_v40 = vmul.f32 1.442695, %v4171_v12  ;;  %v4175_v2 = vmul.f32 1.442695, %v4170_v36 }
0x16f2   : > { %v4168_v58 = vpop.xlane.xlu0 %4167 }
0x16f3   : > { %7299 = vpow2.f32 %v4177_v40  ;;  %v4172_v21 = vsub.f32 %v4156_v54, %v4168_v58 }
0x16f4   : > { %7301 = vpow2.f32 %v4175_v2 }
0x16f5   : > { %7303 = vpow2.f32 %v4173_v17  ;;  %v4179_v16 = vmul.f32 1.442695, %v4172_v21 }
0x16f7   : > { %7305 = vpow2.f32 %v4179_v16 }
0x1700   : > { %v7300_v22 = vpop.eup %7299 }
0x1701   : > { %v7302_v26 = vpop.eup %7301  ;;  %v4187_v30 = vsel %vm2284_vm6, %v7300_v22, 0.0 }
0x1702   : > { %v7304_v46 = vpop.eup %7303  ;;  %4188 = vadd.xlane.f32.xlu0 %v4187_v30  ;;  %v4184_v8 = vsel %vm2284_vm6, %v7302_v26, 0.0 }
0x1703   : > { %4185 = vadd.xlane.f32.xlu1 %v4184_v8  ;;  %v4181_v41 = vsel %vm2284_vm6, %v7304_v46, 0.0 }
0x1704   : > { %v7306_v63 = vpop.eup %7305 }
0x1705   : > { %v4190_v29 = vsel %vm2284_vm6, %v7306_v63, 0.0 }
0x1706   : > { %4182 = vadd.xlane.f32.xlu0 %v4181_v41 }
0x1707   : > { %4191 = vadd.xlane.f32.xlu1 %v4190_v29 }
0x1718   : > { %4264 = vrot.lane.b32.xlu1 %v9005_v14, %s7781_s7 }
0x171c   : > { %4260 = vrot.lane.b32.xlu1 %v9015_v48, %s7782_s1  ;;  %4266 = vrot.lane.b32.xlu0 %v8997_v42, %s7781_s7 }
0x1720   : > { %4262 = vrot.lane.b32.xlu1 %v9025_v45, %s7782_s1 }
0x178b   : > { %v4189_v31 = vpop.xlane.xlu0 %4188 }
0x178c   : > { %v4186_v34 = vpop.xlane.xlu1 %4185 }
0x178d   : > { %7307 = vrcp.f32 %v4186_v34 }
0x178e   : > { %7309 = vrcp.f32 %v4189_v31 }
0x178f   : > { %v4183_v51 = vpop.xlane.xlu0 %4182 }
0x1790   : > { %7311 = vrcp.f32 %v4183_v51  ;;  %v4192_v60 = vpop.xlane.xlu1 %4191 }
0x1791   : > { %7313 = vrcp.f32 %v4192_v60 }
0x1793   : > { %v4267_v23 = vpop.permute.xlu0 %4266 }
0x1794   : > { %6819 = vmatprep.subr.msk.bf16.mxu1 %vm2214_vm5, %v4267_v23  ;;  %v4265_v0 = vpop.permute.xlu1 %4264  ;;  %v4278_v11 = vsel %vm2214_vm5, %v4267_v23, 0 }
0x1795   : > { %v4275_v54 = vsel %vm2214_vm5, %v4265_v0, 0 }
0x1798   : > { %v4261_v53 = vpop.permute.xlu1 %4260 }
0x179a   : > { %v7308_v52 = vpop.eup %7307 }
0x179b   : > { %v7310_v44 = vpop.eup %7309  ;;  %v4198_v61 = vmul.f32 %v7308_v52, %v7302_v26 }
0x179c   : > { %v4199_v20 = vmul.f32 %v7310_v44, %v7300_v22  ;;  %v4263_v35 = vpop.permute.xlu1 %4262 }
0x179d   : > { %v7312_v5 = vpop.eup %7311 }
0x179e   : > { %v7314_v27 = vpop.eup %7313  ;;  %v4197_v38 = vmul.f32 %v7312_v5, %v7304_v46 }
0x179f   : > { %v4200_v47 = vmul.f32 %v7314_v27, %v7306_v63 }
0x17a0   : > { %v4201_v13 = vpack.c.bf16 %v4198_v61, %v4197_v38 }
0x17a1   : > { %v4202_v50 = vpack.c.bf16 %v4200_v47, %v4199_v20 }
0x17a2   : > { %6721 = vmatprep.mubr.msk.bf16.mxu1 %vm2284_vm6, %v4201_v13 }
0x17a3   : > { %6722 = vmatmul.mubr.msk.bf16.vlgmr.msra.gmra.mxu1 %vm2284_vm6, %v4202_v50 }
0x17a4   : > { %6726 = vmatpush3.bf16.xpose.msra.mxu1 %v4278_v11  ;;  %6729 = vmatprep.mubr.msk.bf16.mxu1 %vm2214_vm5, %v4261_v53 }
0x17a5   : > { %6820 = vmatprep.subr.msk.bf16.mxu1 %vm2214_vm5, %v4265_v0 }
0x17ac   : > { %6728 = vmatpush3.bf16.xpose.msra.mxu1 %v4275_v54 }
0x17b3   : > { %6730 = vmatmul.mubr.msk.bf16.vlgmr.msra.gmra.mxu1 %vm2214_vm5, %v4263_v35 }
0x1863   : > { %v9077_v59 = vpop.f32.mrf.mxu1 }
0x1865   : > { %v9079_v15 = vpop.f32.mrf.mxu1 }
0x1867   : > { %v9081_v18 = vpop.f32.mrf.mxu1 }
0x1869   : > { %v9083_v28 = vpop.f32.mrf.mxu1 }
0x1873   : > { %v6731_v9 = vpop.f32.mrf.mxu1 }
0x1874   : > { %v4331_v12 = vmul.f32 0.25, %v6731_v9 }
0x1875   : > { %v4314_v57 = vpop.f32.mrf.mxu1 }
0x1876   : > { %v4329_v36 = vmul.f32 0.25, %v4314_v57  ;;  %v4335_v58 = vadd.f32 %v4331_v12, %v9037_v37 }
0x1877   : > { %v6732_v17 = vpop.f32.mrf.mxu1 }
0x1878   : > { %v4333_v40 = vadd.f32 %v4329_v36, %v9032_v3  ;;  %v4332_v21 = vmul.f32 0.25, %v6732_v17  ;;  %v4343_v46 = vsel %vm2284_vm6, %v4335_v58, -inf }
0x1879   : > { %v4317_v2 = vpop.f32.mrf.mxu1 }
0x187a   : > { %v4330_v16 = vmul.f32 0.25, %v4317_v2  ;;  %v4337_v22 = vsel %vm2284_vm6, %v4333_v40, -inf  ;;  %v4336_v30 = vadd.f32 %v4332_v21, %v9050_v56 }
0x187b   : > { %4338 = vmax.xlane.f32.xlu0 %v4337_v22 }
0x187c   : > { %v4334_v26 = vadd.f32 %v4330_v16, %v9043_v24  ;;  %v4346_v63 = vsel %vm2284_vm6, %v4336_v30, -inf }
0x187e   : > { %v4340_v8 = vsel %vm2284_vm6, %v4334_v26, -inf }
0x187f   : > { %4344 = vmax.xlane.f32.xlu0 %v4343_v46  ;;  %4341 = vmax.xlane.f32.xlu1 %v4340_v8 }
0x1883   : > { %4347 = vmax.xlane.f32.xlu0 %v4346_v63 }
0x1890   : > { %4385 = vrot.lane.b32.xlu1 %v8982_v43, %s7782_s1 }
0x1904   : > { %v4339_v41 = vpop.xlane.xlu0 %4338 }
0x1905   : > { %v4349_v29 = vsub.f32 %v4333_v40, %v4339_v41 }
0x1907   : > { %v4353_v60 = vmul.f32 1.442695, %v4349_v29 }
0x1908   : > { %v4345_v31 = vpop.xlane.xlu0 %4344  ;;  %v4342_v34 = vpop.xlane.xlu1 %4341 }
0x1909   : > { %v4351_v51 = vsub.f32 %v4335_v58, %v4345_v31  ;;  %v4350_v52 = vsub.f32 %v4334_v26, %v4342_v34 }
0x190b   : > { %v4357_v23 = vmul.f32 1.442695, %v4351_v51  ;;  %v4355_v0 = vmul.f32 1.442695, %v4350_v52 }
0x190c   : > { %v4348_v44 = vpop.xlane.xlu0 %4347  ;;  %v4386_v54 = vpop.permute.xlu1 %4385 }
0x190d   : > { %7315 = vpow2.f32 %v4357_v23  ;;  %v4352_v5 = vsub.f32 %v4336_v30, %v4348_v44 }
0x190e   : > { %7317 = vpow2.f32 %v4353_v60 }
0x190f   : > { %v4359_v27 = vmul.f32 1.442695, %v4352_v5 }
0x1911   : > { %7319 = vpow2.f32 %v4359_v27 }
0x1912   : > { %7321 = vpow2.f32 %v4355_v0 }
0x191a   : > { %v7316_v38 = vpop.eup %7315 }
0x191b   : > { %v4367_v61 = vsel %vm2284_vm6, %v7316_v38, 0.0  ;;  %v7318_v20 = vpop.eup %7317 }
0x191c   : > { %4368 = vadd.xlane.f32.xlu0 %v4367_v61  ;;  %v4361_v13 = vsel %vm2284_vm6, %v7318_v20, 0.0 }
0x191e   : > { %v7320_v47 = vpop.eup %7319 }
0x191f   : > { %v4370_v50 = vsel %vm2284_vm6, %v7320_v47, 0.0  ;;  %v7322_v11 = vpop.eup %7321 }
0x1920   : > { %4362 = vadd.xlane.f32.xlu0 %v4361_v13  ;;  %4371 = vadd.xlane.f32.xlu1 %v4370_v50  ;;  %v4364_v53 = vsel %vm2284_vm6, %v7322_v11, 0.0 }
0x1924   : > { %4365 = vadd.xlane.f32.xlu1 %v4364_v53 }
0x1935   : > { %4452 = vrot.lane.b32.xlu1 %v8997_v42, %s7784_s22 }
0x1936   : > { %4387 = vrot.lane.b32.xlu0 %v8980_v39, %s7782_s1  ;;  %s9609_s1 = smov 80  }
0x1939   : > { %4450 = vrot.lane.b32.xlu1 %v9005_v14, %s7784_s22 }
0x193a   : > { %4446 = vrot.lane.b32.xlu0 %v9015_v48, %s7783_s25 }
0x193d   : > { %4448 = vrot.lane.b32.xlu1 %v9025_v45, %s7783_s25 }
0x19a5   : > { %v4369_v35 = vpop.xlane.xlu0 %4368 }
0x19a9   : > { %v4363_v9 = vpop.xlane.xlu0 %4362  ;;  %v4372_v57 = vpop.xlane.xlu1 %4371 }
0x19aa   : > { %7323 = vrcp.f32 %v4372_v57 }
0x19ab   : > { %7325 = vrcp.f32 %v4363_v9 }
0x19ac   : > { %7327 = vrcp.f32 %v4369_v35 }
0x19ad   : > { %v4388_v12 = vpop.permute.xlu0 %4387  ;;  %v4366_v36 = vpop.xlane.xlu1 %4365 }
0x19ae   : > { %7329 = vrcp.f32 %v4366_v36  ;;  %6733 = vmatprep.subr.bf16.mxu0 %v4388_v12 }
0x19af   : > { %6734 = vmatpush3.bf16.msra.mxu0 %v4388_v12 }
0x19b0   : > { %6735 = vmatprep.subr.bf16.mxu0 %v4386_v54 }
0x19b1   : > { %v4453_v17 = vpop.permute.xlu1 %4452  ;;  %v4447_v63 = vpop.permute.xlu0 %4446 }
0x19b2   : > { %v4464_v41 = vsel %vm2214_vm5, %v4453_v17, 0 }
0x19b3   : > { %6736 = vmatpush3.bf16.msra.mxu0 %v4386_v54 }
0x19b4   : > { %6821 = vmatprep.subr.msk.bf16.mxu0 %vm2214_vm5, %v4453_v17 }
0x19b5   : > { %v4451_v29 = vpop.permute.xlu1 %4450 }
0x19b6   : > { %v4461_v31 = vsel %vm2214_vm5, %v4451_v29, 0 }
0x19b7   : > { %v7324_v40 = vpop.eup %7323 }
0x19b8   : > { %v7326_v2 = vpop.eup %7325  ;;  %v4380_v16 = vmul.f32 %v7324_v40, %v7320_v47 }
0x19b9   : > { %v7328_v58 = vpop.eup %7327  ;;  %v4377_v22 = vmul.f32 %v7326_v2, %v7318_v20  ;;  %v4449_v34 = vpop.permute.xlu1 %4448 }
0x19ba   : > { %v4379_v30 = vmul.f32 %v7328_v58, %v7316_v38 }
0x19bb   : > { %v7330_v21 = vpop.eup %7329 }
0x19bc   : > { %v4378_v26 = vmul.f32 %v7330_v21, %v7322_v11  ;;  %v4382_v8 = vpack.c.bf16 %v4380_v16, %v4379_v30 }
0x19be   : > { %v4381_v46 = vpack.c.bf16 %v4378_v26, %v4377_v22 }
0x19c0   : > { %6737 = vmatprep.mubr.msk.bf16.mxu0 %vm2284_vm6, %v4381_v46 }
0x19c1   : > { %6738 = vmatmul.mubr.msk.bf16.vlgmr.msra.gmra.mxu0 %vm2284_vm6, %v4382_v8 }
0x19c2   : > { %6742 = vmatpush3.bf16.xpose.msra.mxu0 %v4464_v41  ;;  %6745 = vmatprep.mubr.msk.bf16.mxu0 %vm2214_vm5, %v4447_v63 }
0x19c3   : > { %6822 = vmatprep.subr.msk.bf16.mxu0 %vm2214_vm5, %v4451_v29 }
0x19ca   : > { %6744 = vmatpush3.bf16.xpose.msra.mxu0 %v4461_v31 }
0x19d1   : > { %6746 = vmatmul.mubr.msk.bf16.vlgmr.msra.gmra.mxu0 %vm2214_vm5, %v4449_v34 }
0x1a81   : > { %v9117_v51 = vpop.f32.mrf.mxu0 }
0x1a83   : > { %v9119_v60 = vpop.f32.mrf.mxu0 }
0x1a85   : > { %v9121_v23 = vpop.f32.mrf.mxu0 }
0x1a86   : > { %v7038_v52 = vpack.i.bf16 %v9121_v23, %v9117_v51 }
0x1a87   : > { %v9125_v44 = vpop.f32.mrf.mxu0 }
0x1a88   : > { %v7033_v5 = vpack.i.bf16 %v9125_v44, %v9119_v60 }
0x1a91   : > { %v6747_v0 = vpop.f32.mrf.mxu0 }
0x1a92   : > { %v4517_v38 = vmul.f32 0.25, %v6747_v0 }
0x1a93   : > { %v4500_v27 = vpop.f32.mrf.mxu0 }
0x1a94   : > { %v4515_v61 = vmul.f32 0.25, %v4500_v27  ;;  %v4521_v50 = vadd.f32 %v4517_v38, %v9037_v37 }
0x1a95   : > { %v6748_v20 = vpop.f32.mrf.mxu0 }
0x1a96   : > { %v4519_v47 = vadd.f32 %v4515_v61, %v9032_v3  ;;  %v4518_v11 = vmul.f32 0.25, %v6748_v20  ;;  %v4529_v57 = vsel %vm2284_vm6, %v4521_v50, -inf }
0x1a97   : > { %v4503_v13 = vpop.f32.mrf.mxu0 }
0x1a98   : > { %v4516_v53 = vmul.f32 0.25, %v4503_v13  ;;  %v4523_v54 = vsel %vm2284_vm6, %v4519_v47, -inf  ;;  %v4522_v9 = vadd.f32 %v4518_v11, %v9050_v56 }
0x1a99   : > { %4524 = vmax.xlane.f32.xlu0 %v4523_v54 }
0x1a9a   : > { %v4520_v35 = vadd.f32 %v4516_v53, %v9043_v24  ;;  %v4532_v36 = vsel %vm2284_vm6, %v4522_v9, -inf }
0x1a9c   : > { %v4526_v12 = vsel %vm2284_vm6, %v4520_v35, -inf }
0x1a9d   : > { %4530 = vmax.xlane.f32.xlu0 %v4529_v57  ;;  %4527 = vmax.xlane.f32.xlu1 %v4526_v12 }
0x1aa1   : > { %4533 = vmax.xlane.f32.xlu0 %v4532_v36 }
0x1aae   : > { %4569 = vrot.lane.b32.xlu1 %v8982_v43, %s7783_s25 }
0x1b22   : > { %v4525_v17 = vpop.xlane.xlu0 %4524 }
0x1b23   : > { %v4535_v40 = vsub.f32 %v4519_v47, %v4525_v17 }
0x1b25   : > { %v4539_v16 = vmul.f32 1.442695, %v4535_v40 }
0x1b26   : > { %v4531_v2 = vpop.xlane.xlu0 %4530  ;;  %v4528_v58 = vpop.xlane.xlu1 %4527 }
0x1b27   : > { %v4537_v21 = vsub.f32 %v4521_v50, %v4531_v2  ;;  %v4536_v26 = vsub.f32 %v4520_v35, %v4528_v58 }
0x1b29   : > { %v4543_v22 = vmul.f32 1.442695, %v4537_v21  ;;  %v4541_v8 = vmul.f32 1.442695, %v4536_v26 }
0x1b2a   : > { %v4534_v30 = vpop.xlane.xlu0 %4533  ;;  %v4570_v20 = vpop.permute.xlu1 %4569 }
0x1b2b   : > { %7331 = vpow2.f32 %v4543_v22  ;;  %v4538_v46 = vsub.f32 %v4522_v9, %v4534_v30 }
0x1b2c   : > { %7333 = vpow2.f32 %v4539_v16 }
0x1b2d   : > { %v4545_v63 = vmul.f32 1.442695, %v4538_v46 }
0x1b2f   : > { %7335 = vpow2.f32 %v4545_v63 }
0x1b30   : > { %7337 = vpow2.f32 %v4541_v8 }
0x1b38   : > { %v7332_v41 = vpop.eup %7331 }
0x1b39   : > { %v4553_v29 = vsel %vm2284_vm6, %v7332_v41, 0.0  ;;  %v7334_v31 = vpop.eup %7333 }
0x1b3a   : > { %4554 = vadd.xlane.f32.xlu0 %v4553_v29  ;;  %v4547_v0 = vsel %vm2284_vm6, %v7334_v31, 0.0 }
0x1b3c   : > { %v7336_v34 = vpop.eup %7335 }
0x1b3d   : > { %v4556_v27 = vsel %vm2284_vm6, %v7336_v34, 0.0  ;;  %v7338_v38 = vpop.eup %7337 }
0x1b3e   : > { %4548 = vadd.xlane.f32.xlu0 %v4547_v0  ;;  %4557 = vadd.xlane.f32.xlu1 %v4556_v27  ;;  %v4550_v61 = vsel %vm2284_vm6, %v7338_v38, 0.0 }
0x1b42   : > { %4551 = vadd.xlane.f32.xlu1 %v4550_v61 }
0x1b53   : > { %4636 = vrot.lane.b32.xlu1 %v8997_v42, %s9608_s8 }
0x1b54   : > { %4571 = vrot.lane.b32.xlu0 %v8980_v39, %s7783_s25 }
0x1b57   : > { %4634 = vrot.lane.b32.xlu1 %v9005_v14, %s9608_s8 }
0x1b58   : > { %4630 = vrot.lane.b32.xlu0 %v9015_v48, %s9609_s1 }
0x1b5b   : > { %4632 = vrot.lane.b32.xlu1 %v9025_v45, %s9609_s1 }
0x1bc3   : > { %v4555_v47 = vpop.xlane.xlu0 %4554 }
0x1bc7   : > { %v4549_v13 = vpop.xlane.xlu0 %4548  ;;  %v4558_v50 = vpop.xlane.xlu1 %4557 }
0x1bc8   : > { %7339 = vrcp.f32 %v4558_v50 }
0x1bc9   : > { %7341 = vrcp.f32 %v4549_v13 }
0x1bca   : > { %7343 = vrcp.f32 %v4555_v47 }
0x1bcb   : > { %v4572_v42 = vpop.permute.xlu0 %4571  ;;  %v4552_v11 = vpop.xlane.xlu1 %4551 }
0x1bcc   : > { %7345 = vrcp.f32 %v4552_v11  ;;  %6749 = vmatprep.subr.bf16.mxu1 %v4572_v42 }
0x1bcd   : > { %6750 = vmatpush3.bf16.msra.mxu1 %v4572_v42 }
0x1bce   : > { %6751 = vmatprep.subr.bf16.mxu1 %v4570_v20 }
0x1bcf   : > { %v4637_v14 = vpop.permute.xlu1 %4636  ;;  %v4631_v40 = vpop.permute.xlu0 %4630 }
0x1bd0   : > { %v4648_v2 = vsel %vm2214_vm5, %v4637_v14, 0 }
0x1bd1   : > { %6752 = vmatpush3.bf16.msra.mxu1 %v4570_v20 }
0x1bd2   : > { %6823 = vmatprep.subr.msk.bf16.mxu1 %vm2214_vm5, %v4637_v14 }
0x1bd3   : > { %v4635_v58 = vpop.permute.xlu1 %4634 }
0x1bd4   : > { %v4645_v21 = vsel %vm2214_vm5, %v4635_v58, 0 }
0x1bd5   : > { %v7340_v48 = vpop.eup %7339 }
0x1bd6   : > { %v7342_v53 = vpop.eup %7341  ;;  %v4566_v35 = vmul.f32 %v7340_v48, %v7336_v34 }
0x1bd7   : > { %v7344_v45 = vpop.eup %7343  ;;  %v4563_v9 = vmul.f32 %v7342_v53, %v7334_v31  ;;  %v4633_v16 = vpop.permute.xlu1 %4632 }
0x1bd8   : > { %v4565_v12 = vmul.f32 %v7344_v45, %v7332_v41 }
0x1bd9   : > { %v7346_v54 = vpop.eup %7345 }
0x1bda   : > { %v4564_v57 = vmul.f32 %v7346_v54, %v7338_v38  ;;  %v4568_v17 = vpack.c.bf16 %v4566_v35, %v4565_v12 }
0x1bdc   : > { %v4567_v36 = vpack.c.bf16 %v4564_v57, %v4563_v9 }
0x1bde   : > { %6753 = vmatprep.mubr.msk.bf16.mxu1 %vm2284_vm6, %v4567_v36 }
0x1bdf   : > { %6754 = vmatmul.mubr.msk.bf16.vlgmr.msra.gmra.mxu1 %vm2284_vm6, %v4568_v17 }
0x1be0   : > { %6758 = vmatpush3.bf16.xpose.msra.mxu1 %v4648_v2  ;;  %6761 = vmatprep.mubr.msk.bf16.mxu1 %vm2214_vm5, %v4631_v40 }
0x1be1   : > { %6824 = vmatprep.subr.msk.bf16.mxu1 %vm2214_vm5, %v4635_v58 }
0x1be8   : > { %6760 = vmatpush3.bf16.xpose.msra.mxu1 %v4645_v21 }
0x1bef   : > { %6762 = vmatmul.mubr.msk.bf16.vlgmr.msra.gmra.mxu1 %vm2214_vm5, %v4633_v16 }
0x1bf0   : > { %5220 = vmatprep.mubr.bf16.mxu1 %v7778_v6 }
0x1c9f   : > { %v6755_v22 = vpop.f32.mrf.mxu1 }
0x1ca1   : > { %v4615_v26 = vpop.f32.mrf.mxu1 }
0x1ca3   : > { %v6756_v30 = vpop.f32.mrf.mxu1 }
0x1ca4   : > { %v7048_v46 = vpack.i.bf16 %v6756_v30, %v6755_v22 }
0x1ca5   : > { %v4618_v8 = vpop.f32.mrf.mxu1 }
0x1ca6   : > { %v7043_v63 = vpack.i.bf16 %v4618_v8, %v4615_v26 }
0x1caf   : > { %v6763_v41 = vpop.f32.mrf.mxu1 }
0x1cb0   : > { %v4701_v31 = vmul.f32 0.25, %v6763_v41 }
0x1cb1   : > { %v4684_v29 = vpop.f32.mrf.mxu1 }
0x1cb2   : > { %v4699_v34 = vmul.f32 0.25, %v4684_v29  ;;  %v4705_v61 = vadd.f32 %v4701_v31, %v9037_v37 }
0x1cb3   : > { %v6764_v0 = vpop.f32.mrf.mxu1 }
0x1cb4   : > { %v4703_v27 = vadd.f32 %v4699_v34, %v9032_v3  ;;  %v4702_v20 = vmul.f32 0.25, %v6764_v0  ;;  %v4713_v11 = vsel %vm2284_vm6, %v4705_v61, -inf  ;;  %v7163_v0 = vld [vmem:[%s8249_s27 + $0x38] sm:$0xff]  }
0x1cb5   : > { %v4687_v38 = vpop.f32.mrf.mxu1 }
0x1cb6   : > { %v4700_v47 = vmul.f32 0.25, %v4687_v38  ;;  %v4707_v13 = vsel %vm2284_vm6, %v4703_v27, -inf  ;;  %v4706_v42 = vadd.f32 %v4702_v20, %v9050_v56  ;;  %v7165_v38 = vld [vmem:[%s8249_s27 + $0x28] sm:$0xff]  }
0x1cb7   : > { %4708 = vmax.xlane.f32.xlu0 %v4707_v13 }
0x1cb8   : > { %v4704_v50 = vadd.f32 %v4700_v47, %v9043_v24  ;;  %v4716_v3 = vsel %vm2284_vm6, %v4706_v42, -inf }
0x1cba   : > { %v4710_v14 = vsel %vm2284_vm6, %v4704_v50, -inf }
0x1cbb   : > { %4714 = vmax.xlane.f32.xlu0 %v4713_v11  ;;  %4711 = vmax.xlane.f32.xlu1 %v4710_v14 }
0x1cbf   : > { %4717 = vmax.xlane.f32.xlu0 %v4716_v3 }
0x1d40   : > { %v4709_v48 = vpop.xlane.xlu0 %4708 }
0x1d41   : > { %v4719_v37 = vsub.f32 %v4703_v27, %v4709_v48  ;;  %v7164_v27 = vld [vmem:[%s8249_s27 + $0x30] sm:$0xff]  }
0x1d43   : > { %v4723_v35 = vmul.f32 1.442695, %v4719_v37 }
0x1d44   : > { %v4715_v53 = vpop.xlane.xlu0 %4714  ;;  %v4712_v45 = vpop.xlane.xlu1 %4711 }
0x1d45   : > { %v4721_v54 = vsub.f32 %v4705_v61, %v4715_v53  ;;  %v4720_v57 = vsub.f32 %v4704_v50, %v4712_v45  ;;  %v7166_v61 = vld [vmem:[%s8249_s27 + $0x20] sm:$0xff]  }
0x1d47   : > { %v4727_v9 = vmul.f32 1.442695, %v4721_v54  ;;  %v4725_v12 = vmul.f32 1.442695, %v4720_v57 }
0x1d48   : > { %v4718_v24 = vpop.xlane.xlu0 %4717 }
0x1d49   : > { %7347 = vpow2.f32 %v4727_v9  ;;  %v4722_v56 = vsub.f32 %v4706_v42, %v4718_v24 }
0x1d4a   : > { %7349 = vpow2.f32 %v4723_v35 }
0x1d4b   : > { %v4729_v36 = vmul.f32 1.442695, %v4722_v56 }
0x1d4d   : > { %7351 = vpow2.f32 %v4729_v36 }
0x1d4e   : > { %7353 = vpow2.f32 %v4725_v12 }
0x1d56   : > { %v7348_v17 = vpop.eup %7347 }
0x1d57   : > { %v4737_v40 = vsel %vm2284_vm6, %v7348_v17, 0.0  ;;  %v7350_v2 = vpop.eup %7349 }
0x1d58   : > { %4738 = vadd.xlane.f32.xlu0 %v4737_v40  ;;  %v4731_v21 = vsel %vm2284_vm6, %v7350_v2, 0.0 }
0x1d5a   : > { %v7352_v58 = vpop.eup %7351 }
0x1d5b   : > { %v4740_v16 = vsel %vm2284_vm6, %v7352_v58, 0.0  ;;  %v7354_v22 = vpop.eup %7353 }
0x1d5c   : > { %4732 = vadd.xlane.f32.xlu0 %v4731_v21  ;;  %4741 = vadd.xlane.f32.xlu1 %v4740_v16  ;;  %v4734_v26 = vsel %vm2284_vm6, %v7354_v22, 0.0 }
0x1d60   : > { %4735 = vadd.xlane.f32.xlu1 %v4734_v26 }
0x1d71   : > { %4753 = vrot.lane.b32.xlu1 %v8982_v43, %s9609_s1 }
0x1d72   : > { %4755 = vrot.lane.b32.xlu0 %v8980_v39, %s9609_s1 }
0x1d75   : > { %7034 = vrot.lane.b32.xlu1 %v7033_v5, %s9608_s8 }
0x1d76   : > { %7044 = vrot.lane.b32.xlu0 %v7043_v63, %s7784_s22 }
0x1d79   : > { %7039 = vrot.lane.b32.xlu1 %v7038_v52, %s9608_s8 }
0x1d7d   : > { %7049 = vrot.lane.b32.xlu1 %v7048_v46, %s7784_s22 }
0x1de1   : > { %v4739_v30 = vpop.xlane.xlu0 %4738 }
0x1de5   : > { %v4733_v8 = vpop.xlane.xlu0 %4732  ;;  %v4742_v43 = vpop.xlane.xlu1 %4741 }
0x1de6   : > { %7355 = vrcp.f32 %v4742_v43 }
0x1de7   : > { %7357 = vrcp.f32 %v4733_v8 }
0x1de8   : > { %7359 = vrcp.f32 %v4739_v30 }
0x1de9   : > { %v4756_v39 = vpop.permute.xlu0 %4755  ;;  %v4736_v41 = vpop.xlane.xlu1 %4735 }
0x1dea   : > { %7361 = vrcp.f32 %v4736_v41  ;;  %6765 = vmatprep.subr.bf16.mxu0 %v4756_v39 }
0x1deb   : > { %6766 = vmatpush3.bf16.msra.mxu0 %v4756_v39 }
0x1ded   : > { %v4754_v60 = vpop.permute.xlu1 %4753  ;;  %v7045_v45 = vpop.permute.xlu0 %7044 }
0x1dee   : > { %6767 = vmatprep.subr.bf16.mxu0 %v4754_v60  ;;  %v7047_v40 = vunpack.i.h.bf16 %v7045_v45 }
0x1def   : > { %6768 = vmatpush3.bf16.msra.mxu0 %v4754_v60 }
0x1df0   : > { %6773 = vmatprep.subr.bf16.mxu0 %v7163_v0 }
0x1df1   : > { %v7035_v14 = vpop.permute.xlu1 %7034 }
0x1df2   : > { %v7037_v37 = vunpack.i.h.bf16 %v7035_v14  ;;  %v7036_v53 = vunpack.i.l.bf16 %v7035_v14 }
0x1df3   : > { %v7356_v51 = vpop.eup %7355 }
0x1df4   : > { %v7358_v23 = vpop.eup %7357  ;;  %v4750_v5 = vmul.f32 %v7356_v51, %v7352_v58  ;;  %v4863_v56 = vsel %vm2214_vm5, %v9083_v28, %v7037_v37  ;;  %v4862_v12 = vsel %vm2214_vm5, %v9079_v15, %v7036_v53  ;;  %v1551_v51 = vsub.s32 4, %v8419_v1 }
0x1df5   : > { %v7360_v52 = vpop.eup %7359  ;;  %v4747_v46 = vmul.f32 %v7358_v23, %v7350_v2  ;;  %v7040_v3 = vpop.permute.xlu1 %7039  ;;  %v7046_v2 = vunpack.i.l.bf16 %v7045_v45  ;;  %v9216_v23 = vld [vmem:[%s8220_s23] sm:$0x3f]  ;;  %s9610_s23 = smov 64  }
0x1df6   : > { %v4749_v29 = vmul.f32 %v7360_v52, %v7348_v17  ;;  %v7042_v54 = vunpack.i.h.bf16 %v7040_v3  ;;  %v7041_v35 = vunpack.i.l.bf16 %v7040_v3  ;;  %v1552_v52 = vrot.slane %v9216_v23, %v1551_v51  ;;  %v7178_v51 = vld [vmem:[%s8264_s18 + $0x44] ss:$8 sps:$4 sm:$0xff]  }
0x1df7   : > { %v7362_v44 = vpop.eup %7361  ;;  %v4866_v43 = vsel %vm2284_vm6, %v4862_v12, %v7046_v2 }
0x1df8   : > { %v4748_v63 = vmul.f32 %v7362_v44, %v7354_v22  ;;  %v4752_v34 = vpack.c.bf16 %v4750_v5, %v4749_v29  ;;  %v4865_v58 = vsel %vm2214_vm5, %v9081_v18, %v7042_v54  ;;  %v4864_v21 = vsel %vm2214_vm5, %v9077_v59, %v7041_v35 }
0x1df9   : > { %v7050_v48 = vpop.permute.xlu1 %7049  ;;  %v4867_v18 = vsel %vm2284_vm6, %v4863_v56, %v7047_v40  ;;  %v1804_v44 = vadd.f32 %v8481_v25, %v1552_v52  ;;  %v7176_v52 = vld [vmem:[%s8264_s18 + $0x40] ss:$8 sps:$4 sm:$0xff]  }
0x1dfa   : > { %v4751_v31 = vpack.c.bf16 %v4748_v63, %v4747_v46  ;;  %v7052_v9 = vunpack.i.h.bf16 %v7050_v48  ;;  %v7051_v57 = vunpack.i.l.bf16 %v7050_v48  ;;  %v6308_v63 = vld [vmem:[%s8226_s17 + $0x1] ss:$0 sm:$0xff]  ;;  %s7789_s17 = smov (!%p6384_p8), 64  }
0x1dfb   : > { %v4979_v5 = vrot.slane %v1804_v44, %v8428_v10  ;;  %v1555_v44 = vsub.s32 5, %v8419_v1 }
0x1dfc   : > { %6769 = vmatprep.mubr.msk.bf16.mxu0 %vm2284_vm6, %v4751_v31  ;;  %v4868_v22 = vsel %vm2284_vm6, %v4864_v21, %v7051_v57  ;;  %v4869_v26 = vsel %vm2284_vm6, %v4865_v58, %v7052_v9 }
0x1dfd   : > { %6770 = vmatmul.mubr.msk.bf16.vlgmr.msra.gmra.mxu0 %vm2284_vm6, %v4752_v34  ;;  %v4980_v46 = vcombine.high %v4979_v5, %v4979_v5  ;;  %v4987_v29 = vrot.slane %v4979_v5, %v8428_v10 }
0x1dfe   : > { %6774 = vmatpush3.bf16.msra.mxu0 %v7163_v0 }
0x1dff   : > { %6775 = vmatprep.subr.bf16.mxu0 %v7164_v27  ;;  %v4994_v31 = vrot.slane %v4980_v46, %v8428_v10  ;;  %v1556_v46 = vrot.slane %v9216_v23, %v1555_v44  ;;  %v7192_v44 = vld [vmem:[%s8269_s9 + $0x88] sm:$0xff]  }
0x1e02   : > { %6776 = vmatpush3.bf16.msra.mxu0 %v7164_v27 }
0x1e03   : > { %6777 = vmatprep.subr.bf16.mxu0 %v7165_v38 }
0x1e06   : > { %6778 = vmatpush3.bf16.msra.mxu0 %v7165_v38  ;;  %v4998_v38 = vrot.slane %v4987_v29, %v8422_v4 }
0x1e07   : > { %6779 = vmatprep.subr.bf16.mxu0 %v7166_v61 }
0x1e0a   : > { %6780 = vmatpush3.bf16.msra.mxu0 %v7166_v61  ;;  %v5002_v61 = vrot.slane %v4994_v31, %v8422_v4 }
0x1ebd   : > { %v6771_v20 = vpop.f32.mrf.mxu0 }
0x1ebf   : > { %v4799_v47 = vpop.f32.mrf.mxu0 }
0x1ec1   : > { %v6772_v13 = vpop.f32.mrf.mxu0 }
0x1ec2   : > { %v7058_v50 = vpack.i.bf16 %v6772_v13, %v6771_v20 }
0x1ec3   : > { %v4802_v42 = vpop.f32.mrf.mxu0 }
0x1ec4   : > { %v7053_v11 = vpack.i.bf16 %v4802_v42, %v4799_v47  ;;  %7059 = vrot.lane.b32.xlu1 %v7058_v50, %s7781_s7 }
0x1ec6   : > { %7054 = vrot.lane.b32.xlu0 %v7053_v11, %s7781_s7 }
0x1f36   : > { %v7060_v24 = vpop.permute.xlu1 %7059 }
0x1f37   : > { %v7062_v36 = vunpack.i.h.bf16 %v7060_v24  ;;  %v7061_v17 = vunpack.i.l.bf16 %v7060_v24 }
0x1f38   : > { %v7055_v16 = vpop.permute.xlu0 %7054 }
0x1f39   : > { %v7057_v28 = vunpack.i.h.bf16 %v7055_v16  ;;  %v7056_v30 = vunpack.i.l.bf16 %v7055_v16  ;;  %v4872_v15 = vsel %vm2998_vm7, %v4868_v22, %v7061_v17  ;;  %v4873_v8 = vsel %vm2998_vm7, %v4869_v26, %v7062_v36 }
0x1f3a   : > { %v4875_v60 = vpack.c.bf16 %v4873_v8, %v4872_v15 }
0x1f3b   : > { %v4870_v39 = vsel %vm2998_vm7, %v4866_v43, %v7056_v30  ;;  %v4871_v59 = vsel %vm2998_vm7, %v4867_v18, %v7057_v28  ;;  %v7169_v43 = vld [vmem:[%s8264_s18 + $0x74] ss:$8 sps:$4 sm:$0xff]   ;;  %v7167_v18 = vld [vmem:[%s8264_s18 + $0x70] ss:$8 sps:$4 sm:$0xff]  }
0x1f3c   : > { %v4874_v41 = vpack.c.bf16 %v4871_v59, %v4870_v39  ;;  %5196 = vmatprep.subr.bf16.mxu1 %v7169_v43  ;;  %v7172_v39 = vld [vmem:[%s8264_s18 + $0x64] ss:$8 sps:$4 sm:$0xff]   ;;  %v7170_v59 = vld [vmem:[%s8264_s18 + $0x60] ss:$8 sps:$4 sm:$0xff]  }
0x1f3d   : > { %5197 = vmatpush1.bf16.msra.mxu1 %v7167_v18  ;;  %v7184_v43 = vld [vmem:[%s8269_s9 + $0xa8] sm:$0xff]   ;;  %v7185_v18 = vld [vmem:[%s8269_s9 + $0xe0] sm:$0xff]  }
0x1f3e   : > { %6781 = vmatprep.mubr.msk.bf16.mxu0 %vm1683_vm4, %v4874_v41  ;;  %5198 = vmatprep.subr.bf16.mxu1 %v7172_v39  ;;  %v7175_v41 = vld [vmem:[%s8264_s18 + $0x54] ss:$8 sps:$4 sm:$0xff]   ;;  %v7186_v39 = vld [vmem:[%s8269_s9 + $0xa0] sm:$0xff]  }
0x1f3f   : > { %6782 = vmatmul.mubr.msk.bf16.vlgmr.msra.gmra.mxu0 %vm1683_vm4, %v4875_v60  ;;  %v7173_v60 = vld [vmem:[%s8264_s18 + $0x50] ss:$8 sps:$4 sm:$0xff]   ;;  %s9613_s18 = sld [smem:[#allocation52_spill]] (!%p6384_p8) }
0x1f41   : > { %5199 = vmatpush1.bf16.msra.mxu1 %v7170_v59  ;;  %v7187_v59 = vld [vmem:[%s8269_s9 + $0xd8] sm:$0xff]  }
0x1f42   : > { %5200 = vmatprep.subr.bf16.mxu1 %v7175_v41  ;;  %v7188_v41 = vld [vmem:[%s8269_s9 + $0x98] sm:$0xff]  }
0x1f45   : > { %5201 = vmatpush1.bf16.msra.mxu1 %v7173_v60  ;;  %v7189_v60 = vld [vmem:[%s8269_s9 + $0xd0] sm:$0xff]  }
0x1f46   : > { %5202 = vmatprep.subr.bf16.mxu1 %v7178_v51  ;;  %v7190_v51 = vld [vmem:[%s8269_s9 + $0x90] sm:$0xff]  }
0x1f49   : > { %5203 = vmatpush1.bf16.msra.mxu1 %v7176_v52  ;;  %v7191_v52 = vld [vmem:[%s8269_s9 + $0xc8] sm:$0xff]  }
0x1fff   : > { %v6783_v34 = vpop.f32.mrf.mxu0 }
0x2000   : > { %v4966_v0 = vadd.f32 %v6783_v34, %v6308_v63 }
0x2001   : > { %v4957_v27 = vpop.f32.mrf.mxu0 }
0x2002   : > { %v4958_v20 = vadd.f32 %v6308_v63, %v4957_v27  ;;  %v5007_v13 = vmul.f32 %v5002_v61, %v4966_v0  ;;  %v1806_v0 = vadd.f32 %v8485_v7, %v1556_v46  ;;  %v7194_v46 = vld [vmem:[%s8269_s9 + $0x80] sm:$0xff]  }
0x2003   : > { %v6784_v47 = vpop.f32.mrf.mxu0 }
0x2004   : > { %v5005_v50 = vmul.f32 %v4998_v38, %v4958_v20  ;;  %v4969_v25 = vadd.f32 %v6784_v47, %v6308_v63  ;;  %v9230_v3 = vadd.f32 %v5007_v13, %v8898_v49  ;;  %v5072_v13 = vrot.slane %v1806_v0, %v8428_v10 }
0x2005   : > { %v4960_v42 = vpop.f32.mrf.mxu0 }
0x2006   : > { %v9227_v11 = vadd.f32 %v5005_v50, %v8888_v62  ;;  %v4961_v14 = vadd.f32 %v6308_v63, %v4960_v42  ;;  %v5008_v48 = vmul.f32 %v5002_v61, %v4969_v25  ;;  %v5019_v35 = vsel %vm1683_vm4, %v9230_v3, 0.0 }
0x2007   : > { %v9285_v23 = vrot.slane %v5072_v13, %v8428_v10  ;;  %v5073_v25 = vcombine.high %v5072_v13, %v5072_v13 }
0x2008   : > { %v5006_v37 = vmul.f32 %v4998_v38, %v4961_v14  ;;  %v5013_v53 = vsel %vm1683_vm4, %v9227_v11, 0.0  ;;  %v9238_v54 = vadd.f32 %v5008_v48, %v8903_v55 }
0x2009   : > { %5014 = vadd.xlane.f32.xlu0 %v5013_v53  ;;  %v5090_v42 = vadd.f32 1.0, %v9285_v23  ;;  %v9289_v14 = vrot.slane %v5073_v25, %v8428_v10 }
0x200a   : > { %v9235_v45 = vadd.f32 %v5006_v37, %v8893_v32  ;;  %v5022_v49 = vsel %vm1683_vm4, %v9238_v54, 0.0 }
0x200b   : > { %v5097_v37 = vrot.slane %v5090_v42, %v8422_v4 }
0x200c   : > { %v5016_v62 = vsel %vm1683_vm4, %v9235_v45, 0.0 }
0x200d   : > { %5017 = vadd.xlane.f32.xlu1 %v5016_v62  ;;  %5020 = vadd.xlane.f32.xlu0 %v5019_v35  ;;  %v5091_v62 = vadd.f32 1.0, %v9289_v14 }
0x2011   : > { %5023 = vadd.xlane.f32.xlu0 %v5022_v49 }
0x2092   : > { %v5015_v9 = vpop.xlane.xlu0 %5014 }
0x2093   : > { %v5025_v57 = vmul.f32 0.015625, %v5015_v9 }
0x2095   : > { %v9247_v32 = vsub.f32 %v9227_v11, %v5025_v57 }
0x2096   : > { %v5018_v24 = vpop.xlane.xlu1 %5017  ;;  %v5021_v55 = vpop.xlane.xlu0 %5020 }
0x2097   : > { %v5026_v56 = vmul.f32 0.015625, %v5018_v24  ;;  %v5027_v12 = vmul.f32 0.015625, %v5021_v55  ;;  %v5033_v36 = vmul.f32 %v9247_v32, %v9247_v32 }
0x2099   : > { %v9252_v17 = vsub.f32 %v9235_v45, %v5026_v56  ;;  %v9255_v40 = vsub.f32 %v9230_v3, %v5027_v12  ;;  %v5037_v2 = vsel %vm1683_vm4, %v5033_v36, 0.0  ;;  %v5101_v56 = vrot.slane %v5091_v62, %v8422_v4 }
0x209a   : > { %5038 = vadd.xlane.f32.xlu0 %v5037_v2  ;;  %v5024_v58 = vpop.xlane.xlu0 %5023 }
0x209b   : > { %v5028_v21 = vmul.f32 0.015625, %v5024_v58  ;;  %v5034_v16 = vmul.f32 %v9252_v17, %v9252_v17  ;;  %v5035_v22 = vmul.f32 %v9255_v40, %v9255_v40 }
0x209d   : > { %v9263_v26 = vsub.f32 %v9238_v54, %v5028_v21  ;;  %v5040_v28 = vsel %vm1683_vm4, %v5034_v16, 0.0  ;;  %v5043_v30 = vsel %vm1683_vm4, %v5035_v22, 0.0 }
0x209e   : > { %5041 = vadd.xlane.f32.xlu1 %v5040_v28  ;;  %5044 = vadd.xlane.f32.xlu0 %v5043_v30 }
0x209f   : > { %v5036_v15 = vmul.f32 %v9263_v26, %v9263_v26 }
0x20a1   : > { %v5046_v8 = vsel %vm1683_vm4, %v5036_v15, 0.0  ;;  %v7181_v15 = vld [vmem:[%s8269_s9 + $0xf0] sm:$0xff]  }
0x20a2   : > { %5047 = vadd.xlane.f32.xlu1 %v5046_v8  ;;  %v7182_v8 = vld [vmem:[%s8269_s9 + $0xb0] sm:$0xff]  }
0x20b3   : > { %5110 = vrot.lane.b32.xlu1 %v5002_v61, %s9610_s23 }
0x20b4   : > { %5108 = vrot.lane.b32.xlu0 %v4998_v38, %s9610_s23 }
0x2123   : > { %v5039_v5 = vpop.xlane.xlu0 %5038 }
0x2124   : > { %v5049_v63 = vmul.f32 0.015625, %v5039_v5  ;;  %v7193_v5 = vld [vmem:[%s8269_s9 + $0xc0] sm:$0xff]  }
0x2126   : > { %v5053_v29 = vadd.f32 1e-06, %v5049_v63  ;;  %v6323_v63 = vld [vmem:[%s8228_s10 + $0x2] sm:$0x3] }
0x2127   : > { %v5042_v31 = vpop.xlane.xlu1 %5041  ;;  %v5045_v34 = vpop.xlane.xlu0 %5044 }
0x2128   : > { %7363 = vrsqrt.f32 %v5053_v29  ;;  %v5050_v27 = vmul.f32 0.015625, %v5042_v31  ;;  %v5051_v38 = vmul.f32 0.015625, %v5045_v34  ;;  %v5135_v29 = vrot.slane %v6323_v63, %v8422_v4 }
0x2129   : > { %v5139_v31 = vrot.slane %v6323_v63, %v8727_v33 }
0x212a   : > { %v5054_v61 = vadd.f32 1e-06, %v5050_v27  ;;  %v5055_v20 = vadd.f32 1e-06, %v5051_v38 }
0x212b   : > { %v5048_v47 = vpop.xlane.xlu1 %5047  ;;  %v5109_v55 = vpop.permute.xlu0 %5108 }
0x212c   : > { %7365 = vrsqrt.f32 %v5054_v61  ;;  %v5052_v50 = vmul.f32 0.015625, %v5048_v47 }
0x212d   : > { %7367 = vrsqrt.f32 %v5055_v20 }
0x212e   : > { %v5056_v1 = vadd.f32 1e-06, %v5052_v50 }
0x212f   : > { %v5111_v16 = vpop.permute.xlu1 %5110 }
0x2130   : > { %7369 = vrsqrt.f32 %v5056_v1 }
0x2135   : > { %v7364_v7 = vpop.eup %7363 }
0x2136   : > { %v5061_v48 = vmul.f32 %v7364_v7, %v9247_v32 }
0x2138   : > { %v5104_v49 = vmul.f32 %v5097_v37, %v5061_v48 }
0x2139   : > { %v7366_v53 = vpop.eup %7365 }
0x213a   : > { %v5062_v35 = vmul.f32 %v7366_v53, %v9252_v17  ;;  %v7368_v9 = vpop.eup %7367  ;;  %v5114_v12 = vadd.f32 %v5109_v55, %v5104_v49 }
0x213b   : > { %v5063_v2 = vmul.f32 %v7368_v9, %v9255_v40  ;;  %v7180_v40 = vld [vmem:[%s8269_s9 + $0xb8] sm:$0xff]  }
0x213c   : > { %v5105_v57 = vmul.f32 %v5097_v37, %v5062_v35 }
0x213d   : > { %v7370_v24 = vpop.eup %7369  ;;  %v5106_v17 = vmul.f32 %v5101_v56, %v5063_v2 }
0x213e   : > { %v5115_v36 = vadd.f32 %v5109_v55, %v5105_v57  ;;  %v5064_v32 = vmul.f32 %v7370_v24, %v9263_v26  ;;  %v7179_v26 = vld [vmem:[%s8269_s9 + $0xf8] sm:$0xff]  }
0x213f   : > { %v5116_v28 = vadd.f32 %v5111_v16, %v5106_v17  ;;  %6552 = vmatprep.subr.bf16.mxu0 %v7179_v26 }
0x2140   : > { %v5118_v58 = vpack.c.bf16 %v5115_v36, %v5114_v12  ;;  %v5107_v21 = vmul.f32 %v5101_v56, %v5064_v32  ;;  %6553 = vmatpush3.bf16.msra.mxu0 %v7180_v40 }
0x2141   : > { %6554 = vmatprep.subr.bf16.mxu0 %v7181_v15 }
0x2142   : > { %6332 = vmatmul.mubr.msk.bf16.vlgmr.msra.gmra.mxu1 %vm1683_vm4, %v5118_v58  ;;  %v5117_v22 = vadd.f32 %v5111_v16, %v5107_v21 }
0x2143   : > { %5230 = vmatprep.mubr.bf16.mxu1 %v7778_v6  ;;  %v7183_v6 = vld [vmem:[%s8269_s9 + $0xe8] sm:$0xff]  }
0x2144   : > { %v5119_v30 = vpack.c.bf16 %v5117_v22, %v5116_v28  ;;  %6555 = vmatpush3.bf16.msra.mxu0 %v7182_v8 }
0x2145   : > { %6556 = vmatprep.subr.bf16.mxu0 %v7183_v6 }
0x2148   : > { %6557 = vmatpush3.bf16.msra.mxu0 %v7184_v43 }
0x2149   : > { %6558 = vmatprep.subr.bf16.mxu0 %v7185_v18 }
0x214a   : > { %6333 = vmatmul.mubr.msk.bf16.gmra.mxu1 %vm1683_vm4, %v5119_v30 }
0x214c   : > { %6559 = vmatpush3.bf16.msra.mxu0 %v7186_v39 }
0x214d   : > { %6560 = vmatprep.subr.bf16.mxu0 %v7187_v59 }
0x2150   : > { %6561 = vmatpush3.bf16.msra.mxu0 %v7188_v41 }
0x2151   : > { %6562 = vmatprep.subr.bf16.mxu0 %v7189_v60 }
0x2154   : > { %6563 = vmatpush3.bf16.msra.mxu0 %v7190_v51 }
0x2155   : > { %6564 = vmatprep.subr.bf16.mxu0 %v7191_v52 }
0x2158   : > { %6565 = vmatpush3.bf16.msra.mxu0 %v7192_v44 }
0x2159   : > { %6566 = vmatprep.subr.bf16.mxu0 %v7193_v5 }
0x215c   : > { %6567 = vmatpush3.bf16.msra.mxu0 %v7194_v46 }
0x2202   : > { %v5222_v34 = vpop.f32.mrf.mxu1 }
0x2203   : > { %v9320_v0 = vadd.f32 %v5222_v34, %v5135_v29 }
0x2204   : > { %v5224_v27 = vpop.f32.mrf.mxu1 }
0x2205   : > { %v5241_v38 = vmul.f32 %v9320_v0, %v9320_v0  ;;  %v9324_v61 = vadd.f32 %v5224_v27, %v5139_v31 }
0x2206   : > { %v5226_v20 = vpop.f32.mrf.mxu1 }
0x2207   : > { %v5249_v47 = vmul.f32 %v5241_v38, %v9320_v0  ;;  %v5242_v13 = vmul.f32 %v9324_v61, %v9324_v61  ;;  %v9329_v50 = vadd.f32 %v5226_v20, %v5135_v29 }
0x2208   : > { %v5228_v1 = vpop.f32.mrf.mxu1 }
0x2209   : > { %v5257_v25 = vmul.f32 0.044715, %v5249_v47  ;;  %v5250_v33 = vmul.f32 %v5242_v13, %v9324_v61  ;;  %v5243_v42 = vmul.f32 %v9329_v50, %v9329_v50  ;;  %v9334_v7 = vadd.f32 %v5228_v1, %v5139_v31 }
0x220a   : > { %v5232_v48 = vpop.f32.mrf.mxu1 }
0x220b   : > { %v5265_v37 = vadd.f32 %v5257_v25, %v9320_v0  ;;  %v5258_v53 = vmul.f32 0.044715, %v5250_v33  ;;  %v5251_v62 = vmul.f32 %v5243_v42, %v9329_v50  ;;  %v5244_v35 = vmul.f32 %v9334_v7, %v9334_v7 }
0x220c   : > { %v9340_v49 = vadd.f32 %v5232_v48, %v5135_v29  ;;  %v5234_v9 = vpop.f32.mrf.mxu1 }
0x220d   : > { %v5273_v57 = vmul.f32 0.7978846, %v5265_v37  ;;  %v5266_v24 = vadd.f32 %v5258_v53, %v9324_v61  ;;  %v5259_v55 = vmul.f32 0.044715, %v5251_v62  ;;  %v5252_v56 = vmul.f32 %v5244_v35, %v9334_v7 }
0x220e   : > { %v5245_v12 = vmul.f32 %v9340_v49, %v9340_v49  ;;  %v9346_v36 = vadd.f32 %v5234_v9, %v5139_v31  ;;  %v5236_v32 = vpop.f32.mrf.mxu1 }
0x220f   : > { %v5274_v2 = vmul.f32 0.7978846, %v5266_v24  ;;  %v5267_v58 = vadd.f32 %v5259_v55, %v9329_v50  ;;  %v5260_v21 = vmul.f32 0.044715, %v5252_v56  ;;  %7371 = vtanh.f32 %v5273_v57 }
0x2210   : > { %v5253_v17 = vmul.f32 %v5245_v12, %v9340_v49  ;;  %v5246_v16 = vmul.f32 %v9346_v36, %v9346_v36  ;;  %v5237_v22 = vadd.f32 %v5236_v32, %v5135_v29  ;;  %v5238_v28 = vpop.f32.mrf.mxu1 }
0x2211   : > { %7373 = vtanh.f32 %v5274_v2  ;;  %v5275_v30 = vmul.f32 0.7978846, %v5267_v58  ;;  %v5268_v26 = vadd.f32 %v5260_v21, %v9334_v7  ;;  %v5239_v40 = vadd.f32 %v5238_v28, %v5139_v31 }
0x2212   : > { %v5261_v15 = vmul.f32 0.044715, %v5253_v17  ;;  %v5254_v8 = vmul.f32 %v5246_v16, %v9346_v36  ;;  %v5247_v6 = vmul.f32 %v5237_v22, %v5237_v22 }
0x2213   : > { %7375 = vtanh.f32 %v5275_v30  ;;  %v5276_v43 = vmul.f32 0.7978846, %v5268_v26  ;;  %v5248_v18 = vmul.f32 %v5239_v40, %v5239_v40 }
0x2214   : > { %v5269_v39 = vadd.f32 %v5261_v15, %v9340_v49  ;;  %v5262_v59 = vmul.f32 0.044715, %v5254_v8  ;;  %v5255_v41 = vmul.f32 %v5247_v6, %v5237_v22 }
0x2215   : > { %7377 = vtanh.f32 %v5276_v43  ;;  %v5256_v60 = vmul.f32 %v5248_v18, %v5239_v40  ;;  %v6367_v18 = vld [vmem:[%s8234_s2 + $0x1] ss:$0 sm:$0xff]  ;;  %s9611_s2 = sld [smem:[#allocation49_spill]] (!%p6384_p8) }
0x2216   : > { %v5277_v51 = vmul.f32 0.7978846, %v5269_v39  ;;  %v5270_v52 = vadd.f32 %v5262_v59, %v9346_v36  ;;  %v5263_v44 = vmul.f32 0.044715, %v5255_v41 }
0x2217   : > { %v5264_v5 = vmul.f32 0.044715, %v5256_v60 }
0x2218   : > { %7379 = vtanh.f32 %v5277_v51  ;;  %v5278_v46 = vmul.f32 0.7978846, %v5270_v52  ;;  %v5271_v63 = vadd.f32 %v5263_v44, %v5237_v22 }
0x2219   : > { %v5272_v29 = vadd.f32 %v5264_v5, %v5239_v40 }
0x221a   : > { %7381 = vtanh.f32 %v5278_v46  ;;  %v5279_v31 = vmul.f32 0.7978846, %v5271_v63 }
0x221b   : > { %v5280_v34 = vmul.f32 0.7978846, %v5272_v29 }
0x221c   : > { %7383 = vtanh.f32 %v5279_v31  ;;  %v7372_v27 = vpop.eup %7371  ;;  %v5506_v31 = vrot.slane %v9285_v23, %v8422_v4 }
0x221d   : > { %7385 = vtanh.f32 %v5280_v34  ;;  %v5289_v13 = vadd.f32 1.0, %v7372_v27 }
0x221e   : > { %v7374_v38 = vpop.eup %7373 }
0x221f   : > { %v5290_v20 = vadd.f32 1.0, %v7374_v38  ;;  %v5297_v37 = vmul.f32 0.5, %v5289_v13 }
0x2220   : > { %v7376_v47 = vpop.eup %7375 }
0x2221   : > { %v5291_v1 = vadd.f32 1.0, %v7376_v47  ;;  %v5298_v48 = vmul.f32 0.5, %v5290_v20  ;;  %v5305_v55 = vmul.f32 %v5297_v37, %v9320_v0  ;;  %v5510_v47 = vrot.slane %v9289_v14, %v8422_v4 }
0x2222   : > { %v7378_v25 = vpop.eup %7377 }
0x2223   : > { %v5299_v33 = vmul.f32 0.5, %v5291_v1  ;;  %v5292_v42 = vadd.f32 1.0, %v7378_v25  ;;  %v5306_v57 = vmul.f32 %v5298_v48, %v9324_v61 }
0x2225   : > { %v7380_v53 = vpop.eup %7379  ;;  %v5300_v62 = vmul.f32 0.5, %v5292_v42  ;;  %v5307_v35 = vmul.f32 %v5299_v33, %v9329_v50 }
0x2226   : > { %v5293_v12 = vadd.f32 1.0, %v7380_v53 }
0x2227   : > { %v7382_v9 = vpop.eup %7381  ;;  %v5308_v24 = vmul.f32 %v5300_v62, %v9334_v7  ;;  %v5313_v21 = vpack.c.bf16 %v5307_v35, %v5305_v55 }
0x2228   : > { %v5294_v56 = vadd.f32 1.0, %v7382_v9  ;;  %v5301_v50 = vmul.f32 0.5, %v5293_v12 }
0x2229   : > { %v7384_v32 = vpop.eup %7383  ;;  %v5314_v2 = vpack.c.bf16 %v5308_v24, %v5306_v57 }
0x222a   : > { %v7386_v58 = vpop.eup %7385  ;;  %v5295_v17 = vadd.f32 1.0, %v7384_v32  ;;  %v5302_v28 = vmul.f32 0.5, %v5294_v56  ;;  %v5309_v0 = vmul.f32 %v5301_v50, %v9340_v49 }
0x222b   : > { %5486 = vmatprep.mubr.bf16.mxu0 %v5314_v2  ;;  %v5296_v16 = vadd.f32 1.0, %v7386_v58 }
0x222c   : > { %5487 = vmatmul.mubr.bf16.vlgmr.msra.gmra.mxu0 %v5313_v21  ;;  %v5303_v30 = vmul.f32 0.5, %v5295_v17  ;;  %v5310_v7 = vmul.f32 %v5302_v28, %v9346_v36 }
0x222d   : > { %v5304_v26 = vmul.f32 0.5, %v5296_v16 }
0x222e   : > { %v5311_v61 = vmul.f32 %v5303_v30, %v5237_v22 }
0x222f   : > { %v5312_v15 = vmul.f32 %v5304_v26, %v5239_v40 }
0x2230   : > { %v5315_v6 = vpack.c.bf16 %v5311_v61, %v5309_v0 }
0x2231   : > { %v5316_v8 = vpack.c.bf16 %v5312_v15, %v5310_v7 }
0x2233   : > { %5494 = vmatprep.mubr.bf16.mxu0 %v5316_v8 }
0x2234   : > { %5495 = vmatmul.mubr.bf16.gmra.mxu0 %v5315_v6 }
0x22ec   : > { %v6568_v43 = vpop.f32.mrf.mxu0 }
0x22ee   : > { %v6569_v39 = vpop.f32.mrf.mxu0 }
0x22ef   : > { %v6570_v59 = vadd.f32 %v6569_v39, %v6568_v43 }
0x22f0   : > { %v6571_v41 = vpop.f32.mrf.mxu0 }
0x22f1   : > { %v5489_v60 = vadd.f32 %v6570_v59, %v6367_v18 }
0x22f2   : > { %v6572_v51 = vpop.f32.mrf.mxu0 }
0x22f3   : > { %v6573_v52 = vadd.f32 %v6572_v51, %v6571_v41  ;;  %5517 = vrot.lane.b32.xlu1 %v5489_v60, %s9610_s23 }
0x22f4   : > { %v6574_v22 = vpop.f32.mrf.mxu0 }
0x22f5   : > { %v5492_v44 = vadd.f32 %v6573_v52, %v6367_v18 }
0x22f6   : > { %v6575_v36 = vpop.f32.mrf.mxu0 }
0x22f7   : > { %v6576_v40 = vadd.f32 %v6575_v36, %v6574_v22  ;;  %5519 = vrot.lane.b32.xlu1 %v5492_v44, %s9610_s23 }
0x22f8   : > { %v6577_v49 = vpop.f32.mrf.mxu0 }
0x22f9   : > { %v5497_v5 = vadd.f32 %v6576_v40, %v6367_v18 }
0x22fa   : > { %v6578_v46 = vpop.f32.mrf.mxu0 }
0x22fb   : > { %v6579_v63 = vadd.f32 %v6578_v46, %v6577_v49  ;;  %5521 = vrot.lane.b32.xlu0 %v5497_v5, %s9610_s23 }
0x22fd   : > { %v5500_v29 = vadd.f32 %v6579_v63, %v6367_v18 }
0x22ff   : > { %5523 = vrot.lane.b32.xlu1 %v5500_v29, %s9610_s23 }
0x2365   : > { %v5518_v34 = vpop.permute.xlu1 %5517 }
0x2366   : > { %v5529_v27 = vmul.f32 %v5518_v34, %v5506_v31 }
0x2368   : > { %5537 = vrot.lane.b32.xlu0 %v5529_v27, %s9610_s23 }
0x2369   : > { %v5520_v38 = vpop.permute.xlu1 %5519 }
0x236a   : > { %v5530_v20 = vmul.f32 %v5520_v38, %v5506_v31 }
0x236c   : > { %5539 = vrot.lane.b32.xlu1 %v5530_v20, %s9610_s23 }
0x236d   : > { %v5522_v13 = vpop.permute.xlu0 %5521 }
0x236e   : > { %v5531_v1 = vmul.f32 %v5522_v13, %v5510_v47 }
0x2370   : > { %5541 = vrot.lane.b32.xlu0 %v5531_v1, %s9610_s23 }
0x2371   : > { %v5524_v25 = vpop.permute.xlu1 %5523 }
0x2372   : > { %v5532_v33 = vmul.f32 %v5524_v25, %v5510_v47 }
0x2374   : > { %5543 = vrot.lane.b32.xlu1 %v5532_v33, %s9610_s23 }
0x23da   : > { %v5538_v23 = vpop.permute.xlu0 %5537 }
0x23db   : > { %v5549_v42 = vadd.f32 %v5538_v23, %v9227_v11 }
0x23dd   : > { %5553 = vst.msk [vmem:[#allocation2] sm:$0xff] %vm1683_vm4, %v5549_v42 }
0x23de   : > { %v5540_v48 = vpop.permute.xlu1 %5539 }
0x23df   : > { %v5550_v37 = vadd.f32 %v5540_v48, %v9235_v45 }
0x23e1   : > { %5554 = vst.msk [vmem:[#allocation2 + $0x8] sm:$0xff] %vm1683_vm4, %v5550_v37 }
0x23e2   : > { %v5542_v53 = vpop.permute.xlu0 %5541 }
0x23e3   : > { %v5551_v14 = vadd.f32 %v5542_v53, %v9230_v3 }
0x23e5   : > { %5555 = vst.msk [vmem:[#allocation2 + $0x10] sm:$0xff] %vm1683_vm4, %v5551_v14  ;;  %5560 = sbr.rel (%p6384_p8) target bundleno = 9739 (0x260b), region = 180 }
0x23e6   : > { %v5544_v62 = vpop.permute.xlu1 %5543 }
0x23e7   : > { %v5552_v35 = vadd.f32 %v5544_v62, %v9238_v54 }
0x23e9   : > { %5556 = vst.msk [vmem:[#allocation2 + $0x18] sm:$0xff] %vm1683_vm4, %v5552_v35 }
0x23ea   : > { %v5640_v11 = vsel %vm1683_vm4, %v5549_v42, 0.0  ;;  %v7787_v9 = vmov 0.0   ;;  %v7393_v45 = vld [vmem:[%s9611_s2 + $0x18] sm:$0xff]   ;;  %v5646_v3 = vsel %vm1683_vm4, %v5551_v14, 0.0  ;;  %v5643_v57 = vsel %vm1683_vm4, %v5550_v37, 0.0  ;;  %v7394_v54 = vld [vmem:[%s9611_s2 + $0x10] sm:$0xff]  }
0x23eb   : > { %5641 = vadd.xlane.f32.xlu0 %v5640_v11  ;;  %6785 = vmatprep.subr.bf16.mxu0 %v7787_v9  ;;  %v5649_v24 = vsel %vm1683_vm4, %v5552_v35, 0.0  ;;  %vm7788_vm8 = vmmov 0   ;;  %v7395_v55 = vld [vmem:[%s9611_s2 + $0x8] sm:$0xff]   ;;  %v7396_v56 = vld [vmem:[%s9611_s2] sm:$0xff]   ;;  %v7397_v39 = vld [vmem:[%s9612_s14 + $0x18] sm:$0xff]  }
0x23ec   : > { %5647 = vadd.xlane.f32.xlu1 %v5646_v3  ;;  %6786 = vmatpush3.bf16.msra.mxu0 %v7393_v45  ;;  %v7398_v59 = vld [vmem:[%s9612_s14 + $0x10] sm:$0xff]   ;;  %v7399_v41 = vld [vmem:[%s9612_s14 + $0x8] sm:$0xff]   ;;  %v7400_v52 = vld [vmem:[%s9612_s14] sm:$0xff]  }
0x23ed   : > { %6787 = vmatprep.subr.bf16.mxu0 %v7787_v9  ;;  %6793 = vmatprep.mubr.msk.bf16.mxu0 %vm7788_vm8, %v7787_v9  ;;  %v6385_v60 = vld [vmem:[#allocation18] ss:$0 sm:$0xff] }
0x23ee   : > { %6797 = vmatprep.subr.bf16.mxu1 %v7397_v39 }
0x23ef   : > { %5644 = vadd.xlane.f32.xlu0 %v5643_v57  ;;  %6798 = vmatpush3.bf16.msra.mxu1 %v7397_v39 }
0x23f0   : > { %5650 = vadd.xlane.f32.xlu1 %v5649_v24  ;;  %6788 = vmatpush3.bf16.msra.mxu0 %v7394_v54 }
0x23f1   : > { %6789 = vmatprep.subr.bf16.mxu0 %v7787_v9  ;;  %6799 = vmatprep.subr.bf16.mxu1 %v7398_v59 }
0x23f3   : > { %6800 = vmatpush3.bf16.msra.mxu1 %v7398_v59 }
0x23f4   : > { %6790 = vmatpush3.bf16.msra.mxu0 %v7395_v55  ;;  %6801 = vmatprep.subr.bf16.mxu1 %v7399_v41 }
0x23f5   : > { %6791 = vmatprep.subr.bf16.mxu0 %v7787_v9 }
0x23f7   : > { %6802 = vmatpush3.bf16.msra.mxu1 %v7399_v41 }
0x23f8   : > { %6792 = vmatpush3.bf16.msra.mxu0 %v7396_v56  ;;  %6803 = vmatprep.subr.bf16.mxu1 %v7400_v52 }
0x23fb   : > { %6794 = vmatmul.mubr.msk.bf16.vlgmr.msra.gmra.mxu0 %vm1683_vm4, %v8365_v19  ;;  %6804 = vmatpush3.bf16.msra.mxu1 %v7400_v52 }
0x2474   : > { %v5642_v12 = vpop.xlane.xlu0 %5641 }
0x2475   : > { %v5652_v32 = vmul.f32 0.015625, %v5642_v12  ;;  %v5648_v2 = vpop.xlane.xlu1 %5647 }
0x2476   : > { %v5654_v58 = vmul.f32 0.015625, %v5648_v2 }
0x2477   : > { %v9402_v21 = vsub.f32 %v5549_v42, %v5652_v32 }
0x2478   : > { %v9404_v17 = vsub.f32 %v5551_v14, %v5654_v58  ;;  %v5645_v16 = vpop.xlane.xlu0 %5644 }
0x2479   : > { %v5653_v28 = vmul.f32 0.015625, %v5645_v16  ;;  %v5651_v50 = vpop.xlane.xlu1 %5650  ;;  %v5660_v30 = vmul.f32 %v9402_v21, %v9402_v21 }
0x247a   : > { %v5655_v26 = vmul.f32 0.015625, %v5651_v50  ;;  %v5662_v61 = vmul.f32 %v9404_v17, %v9404_v17 }
0x247b   : > { %v5657_v7 = vsub.f32 %v5550_v37, %v5653_v28  ;;  %v5664_v19 = vsel %vm1683_vm4, %v5660_v30, 0.0 }
0x247c   : > { %v9411_v15 = vsub.f32 %v5552_v35, %v5655_v26  ;;  %5665 = vadd.xlane.f32.xlu0 %v5664_v19  ;;  %v5670_v0 = vsel %vm1683_vm4, %v5662_v61, 0.0  ;;  %v6391_v26 = vld [vmem:[#allocation20] ss:$0 sm:$0xff] }
0x247d   : > { %v5661_v8 = vmul.f32 %v5657_v7, %v5657_v7 }
0x247e   : > { %v5663_v6 = vmul.f32 %v9411_v15, %v9411_v15 }
0x247f   : > { %v5667_v43 = vsel %vm1683_vm4, %v5661_v8, 0.0 }
0x2480   : > { %5671 = vadd.xlane.f32.xlu0 %v5670_v0  ;;  %5668 = vadd.xlane.f32.xlu1 %v5667_v43  ;;  %v5673_v18 = vsel %vm1683_vm4, %v5663_v6, 0.0 }
0x2484   : > { %5674 = vadd.xlane.f32.xlu1 %v5673_v18 }
0x24bb   : > { %v5634_v51 = vpop.f32.mrf.mxu0 }
0x24bc   : > { %v5635_v22 = vadd.f32 %v6385_v60, %v5634_v51 }
0x24bd   : > { %v6795_v44 = vpop.f32.mrf.mxu0 }
0x24be   : > { %v5699_v36 = vrot.slane %v5635_v22, %v8428_v10 }
0x24bf   : > { %v5637_v40 = vpop.f32.mrf.mxu0 }
0x24c0   : > { %v5700_v49 = vcombine.high %v5699_v36, %v5699_v36  ;;  %v5707_v5 = vrot.slane %v5699_v36, %v8428_v10 }
0x24c1   : > { %v6796_v46 = vpop.f32.mrf.mxu0 }
0x24c2   : > { %v5714_v63 = vrot.slane %v5700_v49, %v8428_v10  ;;  %v5717_v29 = vadd.f32 1.0, %v5707_v5  ;;  %v5742_v3 = vrot.slane %v5707_v5, %v8422_v4 }
0x24c4   : > { %v5724_v31 = vrot.slane %v5717_v29, %v8422_v4  ;;  %v5718_v34 = vadd.f32 1.0, %v5714_v63  ;;  %v5746_v56 = vrot.slane %v5714_v63, %v8422_v4 }
0x24c6   : > { %5729 = vrot.lane.b32.xlu0 %v5724_v31, %s7789_s17  ;;  %v5728_v27 = vrot.slane %v5718_v34, %v8422_v4 }
0x24c8   : > { %5731 = vrot.lane.b32.xlu1 %v5728_v27, %s7789_s17 }
0x2505   : > { %v5666_v38 = vpop.xlane.xlu0 %5665 }
0x2506   : > { %v5676_v13 = vmul.f32 0.015625, %v5666_v38 }
0x2508   : > { %v5680_v42 = vadd.f32 1e-06, %v5676_v13 }
0x2509   : > { %v5669_v20 = vpop.xlane.xlu1 %5668  ;;  %v5672_v47 = vpop.xlane.xlu0 %5671 }
0x250a   : > { %v5677_v25 = vmul.f32 0.015625, %v5669_v20  ;;  %v5678_v33 = vmul.f32 0.015625, %v5672_v47  ;;  %7401 = vrsqrt.f32 %v5680_v42 }
0x250c   : > { %v5681_v48 = vadd.f32 1e-06, %v5677_v25  ;;  %v5682_v10 = vadd.f32 1e-06, %v5678_v33 }
0x250d   : > { %v5675_v1 = vpop.xlane.xlu1 %5674 }
0x250e   : > { %v5679_v23 = vmul.f32 0.015625, %v5675_v1  ;;  %7403 = vrsqrt.f32 %v5681_v48 }
0x250f   : > { %7405 = vrsqrt.f32 %v5682_v10 }
0x2510   : > { %v5683_v37 = vadd.f32 1e-06, %v5679_v23 }
0x2512   : > { %7407 = vrsqrt.f32 %v5683_v37 }
0x2517   : > { %v7402_v53 = vpop.eup %7401 }
0x2518   : > { %v5688_v11 = vmul.f32 %v7402_v53, %v9402_v21 }
0x251b   : > { %v7404_v14 = vpop.eup %7403 }
0x251c   : > { %v7406_v62 = vpop.eup %7405  ;;  %v5689_v9 = vmul.f32 %v7404_v14, %v5657_v7 }
0x251d   : > { %v5690_v24 = vmul.f32 %v7406_v62, %v9404_v17 }
0x251f   : > { %v7408_v35 = vpop.eup %7407 }
0x2520   : > { %v5691_v55 = vmul.f32 %v7408_v35, %v9411_v15 }
0x2538   : > { %v5730_v45 = vpop.permute.xlu0 %5729 }
0x2539   : > { %v5735_v57 = vmul.f32 %v5730_v45, %v5688_v11  ;;  %v5736_v54 = vmul.f32 %v5730_v45, %v5689_v9 }
0x253a   : > { %v5732_v12 = vpop.permute.xlu1 %5731 }
0x253b   : > { %v5737_v32 = vmul.f32 %v5732_v12, %v5690_v24  ;;  %v5738_v2 = vmul.f32 %v5732_v12, %v5691_v55  ;;  %v5749_v58 = vadd.f32 %v5742_v3, %v5735_v57  ;;  %v5750_v16 = vadd.f32 %v5742_v3, %v5736_v54 }
0x253d   : > { %v5751_v28 = vadd.f32 %v5746_v56, %v5737_v32  ;;  %v5752_v50 = vadd.f32 %v5746_v56, %v5738_v2  ;;  %v5753_v21 = vpack.c.bf16 %v5750_v16, %v5749_v58 }
0x253f   : > { %6805 = vmatprep.mubr.msk.bf16.mxu1 %vm1683_vm4, %v5753_v21  ;;  %v5754_v30 = vpack.c.bf16 %v5752_v50, %v5751_v28 }
0x2541   : > { %6806 = vmatmul.mubr.msk.bf16.vlgmr.msra.gmra.mxu1 %vm1683_vm4, %v5754_v30 }
0x2601   : > { %v6807_v61 = vpop.f32.mrf.mxu1 }
0x2602   : > { %v5843_v17 = vadd.f32 %v6807_v61, %v6391_v26 }
0x2603   : > { %v5834_v7 = vpop.f32.mrf.mxu1 }
0x2604   : > { %5851 = vst.msk [vmem:[%s9613_s18 + $0x10] sm:$0xff] %vm2214_vm5, %v5843_v17  ;;  %v5835_v4 = vadd.f32 %v6391_v26, %v5834_v7 }
0x2605   : > { %v6808_v19 = vpop.f32.mrf.mxu1 }
0x2606   : > { %5849 = vst.msk [vmem:[%s9613_s18] sm:$0xff] %vm2214_vm5, %v5835_v4  ;;  %v5846_v15 = vadd.f32 %v6808_v19, %v6391_v26 }
0x2607   : > { %v5837_v0 = vpop.f32.mrf.mxu1 }
0x2608   : > { %5852 = vst.msk [vmem:[%s9613_s18 + $0x18] sm:$0xff] %vm2214_vm5, %v5846_v15  ;;  %v5838_v8 = vadd.f32 %v6391_v26, %v5837_v0 }
0x260a   : > { %5850 = vst.msk [vmem:[%s9613_s18 + $0x8] sm:$0xff] %vm2214_vm5, %v5838_v8 }
0x260b PF: > { %s9614_s30 = sld [smem:[#allocation28_spill]]  ;;  %s9617_s7 = smov %s7749_s4 }
0x260c   : > { %s9615_s0 = sld [smem:[#allocation27_spill]] }
0x260d   : > { %s9616_s8 = sld [smem:[#allocation29_spill]] }
0x2611   : > { %p44_p12 = scmp.ge.s32.totalorder %s9614_s30, 4  }
0x2612   : > { %s9618_s4 = smov %s9615_s0 }
0x2613   :  { %46 = sbr.rel (!%p44_p12) target bundleno = 33 (0x21), region = 258 }
0x2618   :  { %5864 = vsyncpa [#allocation5], 1 }
0x2619   :  { %5866 = vsyncpa [#allocation5 + $0x1], 1 }
0x261a   :  { %5867 = vsyncpa [#allocation7], 1 }
0x261b   :  { %5868 = vsyncpa [#allocation10], 1 }
0x261c   :  { %5870 = vsyncpa [#allocation10 + $0x1], 1 }
0x261d   :  { %5871 = vsyncpa [#allocation13], 1 }
0x261e   :  { %5873 = vsyncpa [#allocation13 + $0x1], 1 }
0x261f   :  { %5874 = vsyncpa [#allocation16], 1 }
0x2620   :  { %5875 = vsyncpa [#allocation19], 1 }

</bundles_post_ra>
